<compile_context>
chip_gen: v7x
topology: tpu7x:2x2x1
jax: 0.10.0
libtpu: 0.0.40
codegen_flags: <defaults>
</compile_context>

<pallas_src>
import math

import jax
import jax.numpy as jnp
from jax.experimental import pallas as pl
from jax.experimental.pallas import tpu as pltpu

H = 128        # LSTM input / hidden size
SEQ = 4        # expanded sequence length
NCLS = 10      # output classes
TM_MAX = 128   # max batch rows per grid step (vreg-pressure driven)


def _round_up(n, m):
    return (n + m - 1) // m * m


def _gate_cols_for_device():
    """2 gate columns (N=256) per dot on 256-wide MXUs (v6e/v7x), 1 on v5e."""
    try:
        kind = jax.devices()[0].device_kind.lower()
    except Exception:
        return 2
    if "v5 lite" in kind or "v5lite" in kind or "v5e" in kind:
        return 1
    return 2


def make_decoder_kernel(gate_cols):
    hc = gate_cols * H          # gate columns produced per MXU dot

    def kernel(x_ref, wih1_ref, whh1_ref, b1_ref, w2_ref, b2_ref,
               wout_ref, bout_ref, out_ref,
               xp_ref, inp2_ref, h2_ref):
        tm = x_ref.shape[0]
        xb = x_ref[...].astype(jnp.bfloat16)                  # (TM, H) bf16 operand

        def xp_col(g):                                        # hoisted gate column, f32
            return xp_ref[:, g * H:(g + 1) * H]

        def gate_pre(inp_b, w_ref, extra_ref=None, row_hi=None):
            """All four gate pre-activations (f32), gate_cols columns per dot.

            extra_ref: ref added column-wise (bias row, or the hoisted per-row
            x-projection).  row_hi: use only the first `row_hi` weight rows
            (t=0 zero-state shortcut for the stacked layer-2 weight).
            """
            outs = []
            for g0 in range(0, 4, gate_cols):
                lo = g0 * H
                w = (w_ref[:, lo:lo + hc] if row_hi is None
                     else w_ref[0:row_hi, lo:lo + hc])
                r = jnp.dot(inp_b, w, preferred_element_type=jnp.float32)
                if extra_ref is not None:
                    r = r + extra_ref[:, lo:lo + hc]
                for j in range(gate_cols):
                    outs.append(r[:, j * H:(j + 1) * H])
            return outs                                       # [i, f, g, o]

        # ---- hoisted layer-1 input projection (x identical every timestep) --
        for g0 in range(0, 4, gate_cols):
            lo = g0 * H
            xp_ref[:, lo:lo + hc] = (
                jnp.dot(xb, wih1_ref[:, lo:lo + hc],
                        preferred_element_type=jnp.float32)
                + b1_ref[:, lo:lo + hc])

        # ---- t = 0: hidden/cell state is zero (skip h@W_hh and f*c terms) ---
        c1 = jax.nn.sigmoid(xp_col(0)) * jnp.tanh(xp_col(2))
        h1 = jax.nn.sigmoid(xp_col(3)) * jnp.tanh(c1)

        pre2 = gate_pre(h1.astype(jnp.bfloat16), w2_ref, b2_ref, row_hi=H)
        c2 = jax.nn.sigmoid(pre2[0]) * jnp.tanh(pre2[2])
        h2 = jax.nn.sigmoid(pre2[3]) * jnp.tanh(c2)
        h2_ref[0] = h2

        # ---- t = 1 .. SEQ-1 (tiny fixed trip count, unrolled) ---------------
        for t in range(1, SEQ):
            # layer 1: pre = hoisted x-proj (incl. bias) + h1 @ W_hh1
            pre1 = gate_pre(h1.astype(jnp.bfloat16), whh1_ref, xp_ref)
            c1 = (jax.nn.sigmoid(pre1[1]) * c1
                  + jax.nn.sigmoid(pre1[0]) * jnp.tanh(pre1[2]))
            h1 = jax.nn.sigmoid(pre1[3]) * jnp.tanh(c1)

            # layer 2: K=2H contraction off the persistent [h1, h2] scratch
            inp2_ref[:, 0:H] = h1.astype(jnp.bfloat16)
            inp2_ref[:, H:2 * H] = h2.astype(jnp.bfloat16)
            pre2 = gate_pre(inp2_ref[...], w2_ref, b2_ref)
            c2 = (jax.nn.sigmoid(pre2[1]) * c2
                  + jax.nn.sigmoid(pre2[0]) * jnp.tanh(pre2[2]))
            h2 = jax.nn.sigmoid(pre2[3]) * jnp.tanh(c2)
            h2_ref[t] = h2

        # ---- batched output head: one matmul, one softmax, one store --------
        h_all = h2_ref[...].reshape(SEQ * tm, H).astype(jnp.bfloat16)
        logits = (jnp.dot(h_all, wout_ref[...],
                          preferred_element_type=jnp.float32)
                  + bout_ref[...])
        m = jnp.max(logits, axis=-1, keepdims=True)
        e = jnp.exp(logits - m)
        inv = 1.0 / jnp.sum(e, axis=-1, keepdims=True)         # exact: rows sum to 1
        p = e * inv
        out_ref[...] = p.reshape(SEQ, tm, NCLS).astype(out_ref.dtype)

    return kernel


def decoder_forward(x, params, *, tm_max=TM_MAX, gate_cols=None):
    """x: any array whose size is a multiple of 128.  Returns (N, 4, 10) probs."""
    wih1, whh1, b1, wih2, whh2, b2, wout, bout = params
    if gate_cols is None:
        gate_cols = _gate_cols_for_device()

    # bf16 matmul operands (accumulation stays f32 inside the kernel)
    w2 = jnp.concatenate([wih2, whh2], axis=0).astype(jnp.bfloat16)   # (2H, 4H)
    wih1_b = wih1.astype(jnp.bfloat16)
    whh1_b = whh1.astype(jnp.bfloat16)
    wout_b = wout.astype(jnp.bfloat16)

    x = x.reshape(-1, H).astype(jnp.float32)                # mimics reshape(-1, 1, 128)
    n = x.shape[0]
    num_tiles = max(1, math.ceil(n / tm_max))
    if num_tiles == 1 and n >= 16:
        num_tiles = 2                                       # keep both v7x TCs busy
    tm = _round_up(math.ceil(n / num_tiles), 8)             # balanced tile, mult of 8
    padded = tm * num_tiles
    if padded != n:
        x = jnp.concatenate([x, jnp.zeros((padded - n, H), x.dtype)], axis=0)

    rep = lambda i: (0, 0)      # weights: same block every grid step (no re-fetch)
    out = pl.pallas_call(
        make_decoder_kernel(gate_cols),
        out_shape=jax.ShapeDtypeStruct((SEQ, padded, NCLS), jnp.float32),
        grid=(num_tiles,),
        in_specs=[
            pl.BlockSpec((tm, H), lambda i: (i, 0)),        # x tile
            pl.BlockSpec((H, 4 * H), rep),                  # W_ih layer 1 (transposed, bf16)
            pl.BlockSpec((H, 4 * H), rep),                  # W_hh layer 1 (transposed, bf16)
            pl.BlockSpec((1, 4 * H), rep),                  # b_ih + b_hh layer 1 (f32)
            pl.BlockSpec((2 * H, 4 * H), rep),              # [W_ih2; W_hh2] stacked (bf16)
            pl.BlockSpec((1, 4 * H), rep),                  # b_ih + b_hh layer 2 (f32)
            pl.BlockSpec((H, NCLS), rep),                   # Linear weight (transposed, bf16)
            pl.BlockSpec((1, NCLS), rep),                   # Linear bias (f32)
        ],
        out_specs=pl.BlockSpec((SEQ, tm, NCLS), lambda i: (0, i, 0)),
        scratch_shapes=[
            pltpu.VMEM((tm, 4 * H), jnp.float32),           # hoisted x-projection
            pltpu.VMEM((tm, 2 * H), jnp.bfloat16),          # persistent [h1, h2]
            pltpu.VMEM((SEQ, tm, H), jnp.float32),          # per-timestep h2
        ],
        compiler_params=pltpu.CompilerParams(
            dimension_semantics=("parallel",)),
    )(x, wih1_b, whh1_b, b1, w2, b2, wout_b, bout)
    return out.transpose(1, 0, 2)[:n]                       # (N, SEQ, NCLS)


def init_params(key):
    """Deterministic init matching PyTorch's default U(-1/sqrt(H), 1/sqrt(H))."""
    k = 1.0 / jnp.sqrt(jnp.float32(H))
    keys = jax.random.split(key, 10)
    u = lambda kk, shape: jax.random.uniform(kk, shape, jnp.float32, -k, k)
    # LSTM layer 1 (stored transposed: (in, 4H)); gate order i,f,g,o along cols
    wih1 = u(keys[0], (H, 4 * H))
    whh1 = u(keys[1], (H, 4 * H))
    b1 = (u(keys[2], (1, 4 * H)) + u(keys[3], (1, 4 * H)))   # b_ih + b_hh
    # LSTM layer 2
    wih2 = u(keys[4], (H, 4 * H))
    whh2 = u(keys[5], (H, 4 * H))
    b2 = (u(keys[6], (1, 4 * H)) + u(keys[7], (1, 4 * H)))
    # Linear(128, 10), stored transposed
    wout = u(keys[8], (H, NCLS))
    bout = u(keys[9], (1, NCLS))
    return (wih1, whh1, b1, wih2, whh2, b2, wout, bout)


def decoder_reference(x, params):
    """Pure-JAX f32 reference (same math, no Pallas) for correctness checking."""
    wih1, whh1, b1, wih2, whh2, b2, wout, bout = params
    x = x.reshape(-1, H)
    N = x.shape[0]
    h1 = jnp.zeros((N, H)); c1 = jnp.zeros((N, H))
    h2 = jnp.zeros((N, H)); c2 = jnp.zeros((N, H))
    outs = []

    def cell(inp, h, c, wih, whh, b):
        g = inp @ wih + h @ whh + b
        i = jax.nn.sigmoid(g[:, 0 * H:1 * H]); f = jax.nn.sigmoid(g[:, 1 * H:2 * H])
        gg = jnp.tanh(g[:, 2 * H:3 * H]); o = jax.nn.sigmoid(g[:, 3 * H:4 * H])
        c = f * c + i * gg
        return o * jnp.tanh(c), c

    for _ in range(SEQ):
        h1, c1 = cell(x, h1, c1, wih1, whh1, b1)
        h2, c2 = cell(h1, h2, c2, wih2, whh2, b2)
        outs.append(jax.nn.softmax(h2 @ wout + bout, axis=-1))
    return jnp.stack(outs, axis=1)                            # (N, 4, 10)


if __name__ == "__main__":
    key = jax.random.PRNGKey(0)
    pkey, xkey = jax.random.split(key)
    params = init_params(pkey)

    # 100 encoder-style feature vectors: default path uses 2 grid steps of 56
    # rows each (pad 100 -> 112), exercising the pad-to-tile logic.
    x = jax.random.normal(xkey, (100, H), jnp.float32)
    ref = decoder_reference(x, params)

    out = jax.block_until_ready(decoder_forward(x, params))
    assert out.shape == (100, SEQ, NCLS)
    # 1e-2 tolerance covers the bf16 matmul operands (accumulation is f32).
    assert jnp.allclose(out, ref, atol=1e-2), "mismatch vs reference (default tiling)"
    # Exact softmax normalization -> rows sum to 1 tightly.
    assert jnp.allclose(out.sum(-1), jnp.ones((100, SEQ)), atol=1e-3)

    # Smaller tile cap: 4 grid steps, tiled x/out, replicated weights.
    out_multi = jax.block_until_ready(decoder_forward(x, params, tm_max=32))
    assert jnp.allclose(out_multi, ref, atol=1e-2), "mismatch vs reference (grid>1)"

    # v5e-style per-gate (N=128) dot path.
    out_g1 = jax.block_until_ready(decoder_forward(x, params, gate_cols=1))
    assert jnp.allclose(out_g1, ref, atol=1e-2), "mismatch vs reference (gate_cols=1)"

    print("KERNEL_OK")
</pallas_src>

<mosaic_0001>
module attributes {stable_mosaic.version = 11 : i64} {
  func.func @kernel(%arg0: i32, %arg1: memref<56x128xf32, #tpu.memory_space<vmem>>, %arg2: memref<128x512xbf16, #tpu.memory_space<vmem>>, %arg3: memref<128x512xbf16, #tpu.memory_space<vmem>>, %arg4: memref<1x512xf32, #tpu.memory_space<vmem>>, %arg5: memref<256x512xbf16, #tpu.memory_space<vmem>>, %arg6: memref<1x512xf32, #tpu.memory_space<vmem>>, %arg7: memref<128x10xbf16, #tpu.memory_space<vmem>>, %arg8: memref<1x10xf32, #tpu.memory_space<vmem>>, %arg9: memref<4x56x10xf32, #tpu.memory_space<vmem>>, %arg10: memref<56x512xf32, #tpu.memory_space<vmem>>, %arg11: memref<56x256xbf16, #tpu.memory_space<vmem>>, %arg12: memref<4x56x128xf32, #tpu.memory_space<vmem>>) attributes {dimension_semantics = [#tpu.dimension_semantics<parallel>], iteration_bounds = array<i64: 2>, scalar_prefetch = 0 : i64, scratch_operands = 3 : i64, tpu.core_type = #tpu.core_type<tc>, window_params = [{transform_indices = @transform_0, window_bounds = array<i64: 56, 128>}, {pipeline_mode = #tpu.pipeline_mode<synchronous>, transform_indices = @transform_1, window_bounds = array<i64: 128, 512>}, {pipeline_mode = #tpu.pipeline_mode<synchronous>, transform_indices = @transform_2, window_bounds = array<i64: 128, 512>}, {pipeline_mode = #tpu.pipeline_mode<synchronous>, transform_indices = @transform_3, window_bounds = array<i64: 1, 512>}, {pipeline_mode = #tpu.pipeline_mode<synchronous>, transform_indices = @transform_4, window_bounds = array<i64: 256, 512>}, {pipeline_mode = #tpu.pipeline_mode<synchronous>, transform_indices = @transform_5, window_bounds = array<i64: 1, 512>}, {pipeline_mode = #tpu.pipeline_mode<synchronous>, transform_indices = @transform_6, window_bounds = array<i64: 128, 10>}, {pipeline_mode = #tpu.pipeline_mode<synchronous>, transform_indices = @transform_7, window_bounds = array<i64: 1, 10>}, {transform_indices = @transform_8, window_bounds = array<i64: 4, 56, 10>}]} {
    %c0 = arith.constant 0 : index
    %c0_0 = arith.constant 0 : index
    %0 = vector.load %arg1[%c0, %c0_0] : memref<56x128xf32, #tpu.memory_space<vmem>>, vector<56x128xf32>
    %1 = arith.truncf %0 : vector<56x128xf32> to vector<56x128xbf16>
    %c0_1 = arith.constant 0 : index
    %c0_2 = arith.constant 0 : index
    %2 = vector.load %arg2[%c0_1, %c0_2] : memref<128x512xbf16, #tpu.memory_space<vmem>>, vector<128x256xbf16>
    %cst = arith.constant dense<0.000000e+00> : vector<56x256xf32>
    %3 = tpu.matmul %1, %2, %cst {dimension_numbers = #tpu.dot_dimension_numbers<[1], [0], [0], [1], [0, 0, 1, 1], [], []>} : vector<56x128xbf16>, vector<128x256xbf16>, vector<56x256xf32> -> vector<56x256xf32>
    %c0_3 = arith.constant 0 : index
    %c0_4 = arith.constant 0 : index
    %4 = vector.load %arg4[%c0_3, %c0_4] : memref<1x512xf32, #tpu.memory_space<vmem>>, vector<1x256xf32>
    %5 = vector.broadcast %4 : vector<1x256xf32> to vector<56x256xf32>
    %6 = arith.addf %3, %5 : vector<56x256xf32>
    %c0_5 = arith.constant 0 : index
    %c0_6 = arith.constant 0 : index
    %7 = vector.load %arg10[%c0_5, %c0_6] : memref<56x512xf32, #tpu.memory_space<vmem>>, vector<56x256xf32>
    tpu.vector_store %arg10[%c0_5, %c0_6], %6 {strides = array<i32>} : memref<56x512xf32, #tpu.memory_space<vmem>>, vector<56x256xf32>,
    %c0_7 = arith.constant 0 : index
    %c256 = arith.constant 256 : index
    %8 = vector.load %arg2[%c0_7, %c256] : memref<128x512xbf16, #tpu.memory_space<vmem>>, vector<128x256xbf16>
    %cst_8 = arith.constant dense<0.000000e+00> : vector<56x256xf32>
    %9 = tpu.matmul %1, %8, %cst_8 {dimension_numbers = #tpu.dot_dimension_numbers<[1], [0], [0], [1], [0, 0, 1, 1], [], []>} : vector<56x128xbf16>, vector<128x256xbf16>, vector<56x256xf32> -> vector<56x256xf32>
    %c0_9 = arith.constant 0 : index
    %c256_10 = arith.constant 256 : index
    %10 = vector.load %arg4[%c0_9, %c256_10] : memref<1x512xf32, #tpu.memory_space<vmem>>, vector<1x256xf32>
    %11 = vector.broadcast %10 : vector<1x256xf32> to vector<56x256xf32>
    %12 = arith.addf %9, %11 : vector<56x256xf32>
    %c0_11 = arith.constant 0 : index
    %c256_12 = arith.constant 256 : index
    %13 = vector.load %arg10[%c0_11, %c256_12] : memref<56x512xf32, #tpu.memory_space<vmem>>, vector<56x256xf32>
    tpu.vector_store %arg10[%c0_11, %c256_12], %12 {strides = array<i32>} : memref<56x512xf32, #tpu.memory_space<vmem>>, vector<56x256xf32>,
    %c0_13 = arith.constant 0 : index
    %c0_14 = arith.constant 0 : index
    %14 = vector.load %arg10[%c0_13, %c0_14] : memref<56x512xf32, #tpu.memory_space<vmem>>, vector<56x128xf32>
    %15 = arith.negf %14 : vector<56x128xf32>
    %16 = math.exp %15 : vector<56x128xf32>
    %cst_15 = arith.constant 1.000000e+00 : f32
    %17 = vector.broadcast %cst_15 : f32 to vector<56x128xf32>
    %18 = arith.addf %17, %16 : vector<56x128xf32>
    %19 = arith.divf %17, %18 : vector<56x128xf32>
    %c0_16 = arith.constant 0 : index
    %c256_17 = arith.constant 256 : index
    %20 = vector.load %arg10[%c0_16, %c256_17] : memref<56x512xf32, #tpu.memory_space<vmem>>, vector<56x128xf32>
    %21 = math.tanh %20 : vector<56x128xf32>
    %22 = arith.mulf %19, %21 : vector<56x128xf32>
    %c0_18 = arith.constant 0 : index
    %c384 = arith.constant 384 : index
    %23 = vector.load %arg10[%c0_18, %c384] : memref<56x512xf32, #tpu.memory_space<vmem>>, vector<56x128xf32>
    %24 = arith.negf %23 : vector<56x128xf32>
    %25 = math.exp %24 : vector<56x128xf32>
    %cst_19 = arith.constant 1.000000e+00 : f32
    %26 = vector.broadcast %cst_19 : f32 to vector<56x128xf32>
    %27 = arith.addf %26, %25 : vector<56x128xf32>
    %28 = arith.divf %26, %27 : vector<56x128xf32>
    %29 = math.tanh %22 : vector<56x128xf32>
    %30 = arith.mulf %28, %29 : vector<56x128xf32>
    %31 = arith.truncf %30 : vector<56x128xf32> to vector<56x128xbf16>
    %c0_20 = arith.constant 0 : index
    %c0_21 = arith.constant 0 : index
    %32 = vector.load %arg5[%c0_20, %c0_21] : memref<256x512xbf16, #tpu.memory_space<vmem>>, vector<128x256xbf16>
    %cst_22 = arith.constant dense<0.000000e+00> : vector<56x256xf32>
    %33 = tpu.matmul %31, %32, %cst_22 {dimension_numbers = #tpu.dot_dimension_numbers<[1], [0], [0], [1], [0, 0, 1, 1], [], []>} : vector<56x128xbf16>, vector<128x256xbf16>, vector<56x256xf32> -> vector<56x256xf32>
    %c0_23 = arith.constant 0 : index
    %c0_24 = arith.constant 0 : index
    %34 = vector.load %arg6[%c0_23, %c0_24] : memref<1x512xf32, #tpu.memory_space<vmem>>, vector<1x256xf32>
    %35 = vector.broadcast %34 : vector<1x256xf32> to vector<56x256xf32>
    %36 = arith.addf %33, %35 : vector<56x256xf32>
    %37 = vector.extract_strided_slice %36 {offsets = [0, 0], sizes = [56, 128], strides = [1, 1]} : vector<56x256xf32> to vector<56x128xf32>
    %c0_25 = arith.constant 0 : index
    %c256_26 = arith.constant 256 : index
    %38 = vector.load %arg5[%c0_25, %c256_26] : memref<256x512xbf16, #tpu.memory_space<vmem>>, vector<128x256xbf16>
    %cst_27 = arith.constant dense<0.000000e+00> : vector<56x256xf32>
    %39 = tpu.matmul %31, %38, %cst_27 {dimension_numbers = #tpu.dot_dimension_numbers<[1], [0], [0], [1], [0, 0, 1, 1], [], []>} : vector<56x128xbf16>, vector<128x256xbf16>, vector<56x256xf32> -> vector<56x256xf32>
    %c0_28 = arith.constant 0 : index
    %c256_29 = arith.constant 256 : index
    %40 = vector.load %arg6[%c0_28, %c256_29] : memref<1x512xf32, #tpu.memory_space<vmem>>, vector<1x256xf32>
    %41 = vector.broadcast %40 : vector<1x256xf32> to vector<56x256xf32>
    %42 = arith.addf %39, %41 : vector<56x256xf32>
    %43 = vector.extract_strided_slice %42 {offsets = [0, 0], sizes = [56, 128], strides = [1, 1]} : vector<56x256xf32> to vector<56x128xf32>
    %44 = vector.extract_strided_slice %42 {offsets = [0, 128], sizes = [56, 128], strides = [1, 1]} : vector<56x256xf32> to vector<56x128xf32>
    %45 = arith.negf %37 : vector<56x128xf32>
    %46 = math.exp %45 : vector<56x128xf32>
    %cst_30 = arith.constant 1.000000e+00 : f32
    %47 = vector.broadcast %cst_30 : f32 to vector<56x128xf32>
    %48 = arith.addf %47, %46 : vector<56x128xf32>
    %49 = arith.divf %47, %48 : vector<56x128xf32>
    %50 = math.tanh %43 : vector<56x128xf32>
    %51 = arith.mulf %49, %50 : vector<56x128xf32>
    %52 = arith.negf %44 : vector<56x128xf32>
    %53 = math.exp %52 : vector<56x128xf32>
    %cst_31 = arith.constant 1.000000e+00 : f32
    %54 = vector.broadcast %cst_31 : f32 to vector<56x128xf32>
    %55 = arith.addf %54, %53 : vector<56x128xf32>
    %56 = arith.divf %54, %55 : vector<56x128xf32>
    %57 = math.tanh %51 : vector<56x128xf32>
    %58 = arith.mulf %56, %57 : vector<56x128xf32>
    %c0_32 = arith.constant 0 : index
    %c0_33 = arith.constant 0 : index
    %c0_34 = arith.constant 0 : index
    %59 = vector.load %arg12[%c0_32, %c0_33, %c0_34] : memref<4x56x128xf32, #tpu.memory_space<vmem>>, vector<1x56x128xf32>
    %60 = vector.shape_cast %59 : vector<1x56x128xf32> to vector<56x128xf32>
    %61 = vector.shape_cast %58 : vector<56x128xf32> to vector<1x56x128xf32>
    tpu.vector_store %arg12[%c0_32, %c0_33, %c0_34], %61 {strides = array<i32>} : memref<4x56x128xf32, #tpu.memory_space<vmem>>, vector<1x56x128xf32>,
    %62 = arith.truncf %30 : vector<56x128xf32> to vector<56x128xbf16>
    %c0_35 = arith.constant 0 : index
    %c0_36 = arith.constant 0 : index
    %63 = vector.load %arg3[%c0_35, %c0_36] : memref<128x512xbf16, #tpu.memory_space<vmem>>, vector<128x256xbf16>
    %cst_37 = arith.constant dense<0.000000e+00> : vector<56x256xf32>
    %64 = tpu.matmul %62, %63, %cst_37 {dimension_numbers = #tpu.dot_dimension_numbers<[1], [0], [0], [1], [0, 0, 1, 1], [], []>} : vector<56x128xbf16>, vector<128x256xbf16>, vector<56x256xf32> -> vector<56x256xf32>
    %c0_38 = arith.constant 0 : index
    %c0_39 = arith.constant 0 : index
    %65 = vector.load %arg10[%c0_38, %c0_39] : memref<56x512xf32, #tpu.memory_space<vmem>>, vector<56x256xf32>
    %66 = arith.addf %64, %65 : vector<56x256xf32>
    %67 = vector.extract_strided_slice %66 {offsets = [0, 0], sizes = [56, 128], strides = [1, 1]} : vector<56x256xf32> to vector<56x128xf32>
    %68 = vector.extract_strided_slice %66 {offsets = [0, 128], sizes = [56, 128], strides = [1, 1]} : vector<56x256xf32> to vector<56x128xf32>
    %c0_40 = arith.constant 0 : index
    %c256_41 = arith.constant 256 : index
    %69 = vector.load %arg3[%c0_40, %c256_41] : memref<128x512xbf16, #tpu.memory_space<vmem>>, vector<128x256xbf16>
    %cst_42 = arith.constant dense<0.000000e+00> : vector<56x256xf32>
    %70 = tpu.matmul %62, %69, %cst_42 {dimension_numbers = #tpu.dot_dimension_numbers<[1], [0], [0], [1], [0, 0, 1, 1], [], []>} : vector<56x128xbf16>, vector<128x256xbf16>, vector<56x256xf32> -> vector<56x256xf32>
    %c0_43 = arith.constant 0 : index
    %c256_44 = arith.constant 256 : index
    %71 = vector.load %arg10[%c0_43, %c256_44] : memref<56x512xf32, #tpu.memory_space<vmem>>, vector<56x256xf32>
    %72 = arith.addf %70, %71 : vector<56x256xf32>
    %73 = vector.extract_strided_slice %72 {offsets = [0, 0], sizes = [56, 128], strides = [1, 1]} : vector<56x256xf32> to vector<56x128xf32>
    %74 = vector.extract_strided_slice %72 {offsets = [0, 128], sizes = [56, 128], strides = [1, 1]} : vector<56x256xf32> to vector<56x128xf32>
    %75 = arith.negf %68 : vector<56x128xf32>
    %76 = math.exp %75 : vector<56x128xf32>
    %cst_45 = arith.constant 1.000000e+00 : f32
    %77 = vector.broadcast %cst_45 : f32 to vector<56x128xf32>
    %78 = arith.addf %77, %76 : vector<56x128xf32>
    %79 = arith.divf %77, %78 : vector<56x128xf32>
    %80 = arith.mulf %79, %22 : vector<56x128xf32>
    %81 = arith.negf %67 : vector<56x128xf32>
    %82 = math.exp %81 : vector<56x128xf32>
    %cst_46 = arith.constant 1.000000e+00 : f32
    %83 = vector.broadcast %cst_46 : f32 to vector<56x128xf32>
    %84 = arith.addf %83, %82 : vector<56x128xf32>
    %85 = arith.divf %83, %84 : vector<56x128xf32>
    %86 = math.tanh %73 : vector<56x128xf32>
    %87 = arith.mulf %85, %86 : vector<56x128xf32>
    %88 = arith.addf %80, %87 : vector<56x128xf32>
    %89 = arith.negf %74 : vector<56x128xf32>
    %90 = math.exp %89 : vector<56x128xf32>
    %cst_47 = arith.constant 1.000000e+00 : f32
    %91 = vector.broadcast %cst_47 : f32 to vector<56x128xf32>
    %92 = arith.addf %91, %90 : vector<56x128xf32>
    %93 = arith.divf %91, %92 : vector<56x128xf32>
    %94 = math.tanh %88 : vector<56x128xf32>
    %95 = arith.mulf %93, %94 : vector<56x128xf32>
    %96 = arith.truncf %95 : vector<56x128xf32> to vector<56x128xbf16>
    %c0_48 = arith.constant 0 : index
    %c0_49 = arith.constant 0 : index
    %97 = vector.load %arg11[%c0_48, %c0_49] : memref<56x256xbf16, #tpu.memory_space<vmem>>, vector<56x128xbf16>
    tpu.vector_store %arg11[%c0_48, %c0_49], %96 {strides = array<i32>} : memref<56x256xbf16, #tpu.memory_space<vmem>>, vector<56x128xbf16>,
    %98 = arith.truncf %58 : vector<56x128xf32> to vector<56x128xbf16>
    %c0_50 = arith.constant 0 : index
    %c128 = arith.constant 128 : index
    %99 = vector.load %arg11[%c0_50, %c128] : memref<56x256xbf16, #tpu.memory_space<vmem>>, vector<56x128xbf16>
    tpu.vector_store %arg11[%c0_50, %c128], %98 {strides = array<i32>} : memref<56x256xbf16, #tpu.memory_space<vmem>>, vector<56x128xbf16>,
    %c0_51 = arith.constant 0 : index
    %c0_52 = arith.constant 0 : index
    %100 = vector.load %arg11[%c0_51, %c0_52] : memref<56x256xbf16, #tpu.memory_space<vmem>>, vector<56x256xbf16>
    %c0_53 = arith.constant 0 : index
    %c0_54 = arith.constant 0 : index
    %101 = vector.load %arg5[%c0_53, %c0_54] : memref<256x512xbf16, #tpu.memory_space<vmem>>, vector<256x256xbf16>
    %cst_55 = arith.constant dense<0.000000e+00> : vector<56x256xf32>
    %102 = tpu.matmul %100, %101, %cst_55 {dimension_numbers = #tpu.dot_dimension_numbers<[1], [0], [0], [1], [0, 0, 1, 1], [], []>} : vector<56x256xbf16>, vector<256x256xbf16>, vector<56x256xf32> -> vector<56x256xf32>
    %c0_56 = arith.constant 0 : index
    %c0_57 = arith.constant 0 : index
    %103 = vector.load %arg6[%c0_56, %c0_57] : memref<1x512xf32, #tpu.memory_space<vmem>>, vector<1x256xf32>
    %104 = vector.broadcast %103 : vector<1x256xf32> to vector<56x256xf32>
    %105 = arith.addf %102, %104 : vector<56x256xf32>
    %106 = vector.extract_strided_slice %105 {offsets = [0, 0], sizes = [56, 128], strides = [1, 1]} : vector<56x256xf32> to vector<56x128xf32>
    %107 = vector.extract_strided_slice %105 {offsets = [0, 128], sizes = [56, 128], strides = [1, 1]} : vector<56x256xf32> to vector<56x128xf32>
    %c0_58 = arith.constant 0 : index
    %c256_59 = arith.constant 256 : index
    %108 = vector.load %arg5[%c0_58, %c256_59] : memref<256x512xbf16, #tpu.memory_space<vmem>>, vector<256x256xbf16>
    %cst_60 = arith.constant dense<0.000000e+00> : vector<56x256xf32>
    %109 = tpu.matmul %100, %108, %cst_60 {dimension_numbers = #tpu.dot_dimension_numbers<[1], [0], [0], [1], [0, 0, 1, 1], [], []>} : vector<56x256xbf16>, vector<256x256xbf16>, vector<56x256xf32> -> vector<56x256xf32>
    %c0_61 = arith.constant 0 : index
    %c256_62 = arith.constant 256 : index
    %110 = vector.load %arg6[%c0_61, %c256_62] : memref<1x512xf32, #tpu.memory_space<vmem>>, vector<1x256xf32>
    %111 = vector.broadcast %110 : vector<1x256xf32> to vector<56x256xf32>
    %112 = arith.addf %109, %111 : vector<56x256xf32>
    %113 = vector.extract_strided_slice %112 {offsets = [0, 0], sizes = [56, 128], strides = [1, 1]} : vector<56x256xf32> to vector<56x128xf32>
    %114 = vector.extract_strided_slice %112 {offsets = [0, 128], sizes = [56, 128], strides = [1, 1]} : vector<56x256xf32> to vector<56x128xf32>
    %115 = arith.negf %107 : vector<56x128xf32>
    %116 = math.exp %115 : vector<56x128xf32>
    %cst_63 = arith.constant 1.000000e+00 : f32
    %117 = vector.broadcast %cst_63 : f32 to vector<56x128xf32>
    %118 = arith.addf %117, %116 : vector<56x128xf32>
    %119 = arith.divf %117, %118 : vector<56x128xf32>
    %120 = arith.mulf %119, %51 : vector<56x128xf32>
    %121 = arith.negf %106 : vector<56x128xf32>
    %122 = math.exp %121 : vector<56x128xf32>
    %cst_64 = arith.constant 1.000000e+00 : f32
    %123 = vector.broadcast %cst_64 : f32 to vector<56x128xf32>
    %124 = arith.addf %123, %122 : vector<56x128xf32>
    %125 = arith.divf %123, %124 : vector<56x128xf32>
    %126 = math.tanh %113 : vector<56x128xf32>
    %127 = arith.mulf %125, %126 : vector<56x128xf32>
    %128 = arith.addf %120, %127 : vector<56x128xf32>
    %129 = arith.negf %114 : vector<56x128xf32>
    %130 = math.exp %129 : vector<56x128xf32>
    %cst_65 = arith.constant 1.000000e+00 : f32
    %131 = vector.broadcast %cst_65 : f32 to vector<56x128xf32>
    %132 = arith.addf %131, %130 : vector<56x128xf32>
    %133 = arith.divf %131, %132 : vector<56x128xf32>
    %134 = math.tanh %128 : vector<56x128xf32>
    %135 = arith.mulf %133, %134 : vector<56x128xf32>
    %c1 = arith.constant 1 : index
    %c0_66 = arith.constant 0 : index
    %c0_67 = arith.constant 0 : index
    %136 = vector.load %arg12[%c1, %c0_66, %c0_67] : memref<4x56x128xf32, #tpu.memory_space<vmem>>, vector<1x56x128xf32>
    %137 = vector.shape_cast %136 : vector<1x56x128xf32> to vector<56x128xf32>
    %138 = vector.shape_cast %135 : vector<56x128xf32> to vector<1x56x128xf32>
    tpu.vector_store %arg12[%c1, %c0_66, %c0_67], %138 {strides = array<i32>} : memref<4x56x128xf32, #tpu.memory_space<vmem>>, vector<1x56x128xf32>,
    %139 = arith.truncf %95 : vector<56x128xf32> to vector<56x128xbf16>
    %c0_68 = arith.constant 0 : index
    %c0_69 = arith.constant 0 : index
    %140 = vector.load %arg3[%c0_68, %c0_69] : memref<128x512xbf16, #tpu.memory_space<vmem>>, vector<128x256xbf16>
    %cst_70 = arith.constant dense<0.000000e+00> : vector<56x256xf32>
    %141 = tpu.matmul %139, %140, %cst_70 {dimension_numbers = #tpu.dot_dimension_numbers<[1], [0], [0], [1], [0, 0, 1, 1], [], []>} : vector<56x128xbf16>, vector<128x256xbf16>, vector<56x256xf32> -> vector<56x256xf32>
    %c0_71 = arith.constant 0 : index
    %c0_72 = arith.constant 0 : index
    %142 = vector.load %arg10[%c0_71, %c0_72] : memref<56x512xf32, #tpu.memory_space<vmem>>, vector<56x256xf32>
    %143 = arith.addf %141, %142 : vector<56x256xf32>
    %144 = vector.extract_strided_slice %143 {offsets = [0, 0], sizes = [56, 128], strides = [1, 1]} : vector<56x256xf32> to vector<56x128xf32>
    %145 = vector.extract_strided_slice %143 {offsets = [0, 128], sizes = [56, 128], strides = [1, 1]} : vector<56x256xf32> to vector<56x128xf32>
    %c0_73 = arith.constant 0 : index
    %c256_74 = arith.constant 256 : index
    %146 = vector.load %arg3[%c0_73, %c256_74] : memref<128x512xbf16, #tpu.memory_space<vmem>>, vector<128x256xbf16>
    %cst_75 = arith.constant dense<0.000000e+00> : vector<56x256xf32>
    %147 = tpu.matmul %139, %146, %cst_75 {dimension_numbers = #tpu.dot_dimension_numbers<[1], [0], [0], [1], [0, 0, 1, 1], [], []>} : vector<56x128xbf16>, vector<128x256xbf16>, vector<56x256xf32> -> vector<56x256xf32>
    %c0_76 = arith.constant 0 : index
    %c256_77 = arith.constant 256 : index
    %148 = vector.load %arg10[%c0_76, %c256_77] : memref<56x512xf32, #tpu.memory_space<vmem>>, vector<56x256xf32>
    %149 = arith.addf %147, %148 : vector<56x256xf32>
    %150 = vector.extract_strided_slice %149 {offsets = [0, 0], sizes = [56, 128], strides = [1, 1]} : vector<56x256xf32> to vector<56x128xf32>
    %151 = vector.extract_strided_slice %149 {offsets = [0, 128], sizes = [56, 128], strides = [1, 1]} : vector<56x256xf32> to vector<56x128xf32>
    %152 = arith.negf %145 : vector<56x128xf32>
    %153 = math.exp %152 : vector<56x128xf32>
    %cst_78 = arith.constant 1.000000e+00 : f32
    %154 = vector.broadcast %cst_78 : f32 to vector<56x128xf32>
    %155 = arith.addf %154, %153 : vector<56x128xf32>
    %156 = arith.divf %154, %155 : vector<56x128xf32>
    %157 = arith.mulf %156, %88 : vector<56x128xf32>
    %158 = arith.negf %144 : vector<56x128xf32>
    %159 = math.exp %158 : vector<56x128xf32>
    %cst_79 = arith.constant 1.000000e+00 : f32
    %160 = vector.broadcast %cst_79 : f32 to vector<56x128xf32>
    %161 = arith.addf %160, %159 : vector<56x128xf32>
    %162 = arith.divf %160, %161 : vector<56x128xf32>
    %163 = math.tanh %150 : vector<56x128xf32>
    %164 = arith.mulf %162, %163 : vector<56x128xf32>
    %165 = arith.addf %157, %164 : vector<56x128xf32>
    %166 = arith.negf %151 : vector<56x128xf32>
    %167 = math.exp %166 : vector<56x128xf32>
    %cst_80 = arith.constant 1.000000e+00 : f32
    %168 = vector.broadcast %cst_80 : f32 to vector<56x128xf32>
    %169 = arith.addf %168, %167 : vector<56x128xf32>
    %170 = arith.divf %168, %169 : vector<56x128xf32>
    %171 = math.tanh %165 : vector<56x128xf32>
    %172 = arith.mulf %170, %171 : vector<56x128xf32>
    %173 = arith.truncf %172 : vector<56x128xf32> to vector<56x128xbf16>
    %c0_81 = arith.constant 0 : index
    %c0_82 = arith.constant 0 : index
    %174 = vector.load %arg11[%c0_81, %c0_82] : memref<56x256xbf16, #tpu.memory_space<vmem>>, vector<56x128xbf16>
    tpu.vector_store %arg11[%c0_81, %c0_82], %173 {strides = array<i32>} : memref<56x256xbf16, #tpu.memory_space<vmem>>, vector<56x128xbf16>,
    %175 = arith.truncf %135 : vector<56x128xf32> to vector<56x128xbf16>
    %c0_83 = arith.constant 0 : index
    %c128_84 = arith.constant 128 : index
    %176 = vector.load %arg11[%c0_83, %c128_84] : memref<56x256xbf16, #tpu.memory_space<vmem>>, vector<56x128xbf16>
    tpu.vector_store %arg11[%c0_83, %c128_84], %175 {strides = array<i32>} : memref<56x256xbf16, #tpu.memory_space<vmem>>, vector<56x128xbf16>,
    %c0_85 = arith.constant 0 : index
    %c0_86 = arith.constant 0 : index
    %177 = vector.load %arg11[%c0_85, %c0_86] : memref<56x256xbf16, #tpu.memory_space<vmem>>, vector<56x256xbf16>
    %c0_87 = arith.constant 0 : index
    %c0_88 = arith.constant 0 : index
    %178 = vector.load %arg5[%c0_87, %c0_88] : memref<256x512xbf16, #tpu.memory_space<vmem>>, vector<256x256xbf16>
    %cst_89 = arith.constant dense<0.000000e+00> : vector<56x256xf32>
    %179 = tpu.matmul %177, %178, %cst_89 {dimension_numbers = #tpu.dot_dimension_numbers<[1], [0], [0], [1], [0, 0, 1, 1], [], []>} : vector<56x256xbf16>, vector<256x256xbf16>, vector<56x256xf32> -> vector<56x256xf32>
    %c0_90 = arith.constant 0 : index
    %c0_91 = arith.constant 0 : index
    %180 = vector.load %arg6[%c0_90, %c0_91] : memref<1x512xf32, #tpu.memory_space<vmem>>, vector<1x256xf32>
    %181 = vector.broadcast %180 : vector<1x256xf32> to vector<56x256xf32>
    %182 = arith.addf %179, %181 : vector<56x256xf32>
    %183 = vector.extract_strided_slice %182 {offsets = [0, 0], sizes = [56, 128], strides = [1, 1]} : vector<56x256xf32> to vector<56x128xf32>
    %184 = vector.extract_strided_slice %182 {offsets = [0, 128], sizes = [56, 128], strides = [1, 1]} : vector<56x256xf32> to vector<56x128xf32>
    %c0_92 = arith.constant 0 : index
    %c256_93 = arith.constant 256 : index
    %185 = vector.load %arg5[%c0_92, %c256_93] : memref<256x512xbf16, #tpu.memory_space<vmem>>, vector<256x256xbf16>
    %cst_94 = arith.constant dense<0.000000e+00> : vector<56x256xf32>
    %186 = tpu.matmul %177, %185, %cst_94 {dimension_numbers = #tpu.dot_dimension_numbers<[1], [0], [0], [1], [0, 0, 1, 1], [], []>} : vector<56x256xbf16>, vector<256x256xbf16>, vector<56x256xf32> -> vector<56x256xf32>
    %c0_95 = arith.constant 0 : index
    %c256_96 = arith.constant 256 : index
    %187 = vector.load %arg6[%c0_95, %c256_96] : memref<1x512xf32, #tpu.memory_space<vmem>>, vector<1x256xf32>
    %188 = vector.broadcast %187 : vector<1x256xf32> to vector<56x256xf32>
    %189 = arith.addf %186, %188 : vector<56x256xf32>
    %190 = vector.extract_strided_slice %189 {offsets = [0, 0], sizes = [56, 128], strides = [1, 1]} : vector<56x256xf32> to vector<56x128xf32>
    %191 = vector.extract_strided_slice %189 {offsets = [0, 128], sizes = [56, 128], strides = [1, 1]} : vector<56x256xf32> to vector<56x128xf32>
    %192 = arith.negf %184 : vector<56x128xf32>
    %193 = math.exp %192 : vector<56x128xf32>
    %cst_97 = arith.constant 1.000000e+00 : f32
    %194 = vector.broadcast %cst_97 : f32 to vector<56x128xf32>
    %195 = arith.addf %194, %193 : vector<56x128xf32>
    %196 = arith.divf %194, %195 : vector<56x128xf32>
    %197 = arith.mulf %196, %128 : vector<56x128xf32>
    %198 = arith.negf %183 : vector<56x128xf32>
    %199 = math.exp %198 : vector<56x128xf32>
    %cst_98 = arith.constant 1.000000e+00 : f32
    %200 = vector.broadcast %cst_98 : f32 to vector<56x128xf32>
    %201 = arith.addf %200, %199 : vector<56x128xf32>
    %202 = arith.divf %200, %201 : vector<56x128xf32>
    %203 = math.tanh %190 : vector<56x128xf32>
    %204 = arith.mulf %202, %203 : vector<56x128xf32>
    %205 = arith.addf %197, %204 : vector<56x128xf32>
    %206 = arith.negf %191 : vector<56x128xf32>
    %207 = math.exp %206 : vector<56x128xf32>
    %cst_99 = arith.constant 1.000000e+00 : f32
    %208 = vector.broadcast %cst_99 : f32 to vector<56x128xf32>
    %209 = arith.addf %208, %207 : vector<56x128xf32>
    %210 = arith.divf %208, %209 : vector<56x128xf32>
    %211 = math.tanh %205 : vector<56x128xf32>
    %212 = arith.mulf %210, %211 : vector<56x128xf32>
    %c2 = arith.constant 2 : index
    %c0_100 = arith.constant 0 : index
    %c0_101 = arith.constant 0 : index
    %213 = vector.load %arg12[%c2, %c0_100, %c0_101] : memref<4x56x128xf32, #tpu.memory_space<vmem>>, vector<1x56x128xf32>
    %214 = vector.shape_cast %213 : vector<1x56x128xf32> to vector<56x128xf32>
    %215 = vector.shape_cast %212 : vector<56x128xf32> to vector<1x56x128xf32>
    tpu.vector_store %arg12[%c2, %c0_100, %c0_101], %215 {strides = array<i32>} : memref<4x56x128xf32, #tpu.memory_space<vmem>>, vector<1x56x128xf32>,
    %216 = arith.truncf %172 : vector<56x128xf32> to vector<56x128xbf16>
    %c0_102 = arith.constant 0 : index
    %c0_103 = arith.constant 0 : index
    %217 = vector.load %arg3[%c0_102, %c0_103] : memref<128x512xbf16, #tpu.memory_space<vmem>>, vector<128x256xbf16>
    %cst_104 = arith.constant dense<0.000000e+00> : vector<56x256xf32>
    %218 = tpu.matmul %216, %217, %cst_104 {dimension_numbers = #tpu.dot_dimension_numbers<[1], [0], [0], [1], [0, 0, 1, 1], [], []>} : vector<56x128xbf16>, vector<128x256xbf16>, vector<56x256xf32> -> vector<56x256xf32>
    %c0_105 = arith.constant 0 : index
    %c0_106 = arith.constant 0 : index
    %219 = vector.load %arg10[%c0_105, %c0_106] : memref<56x512xf32, #tpu.memory_space<vmem>>, vector<56x256xf32>
    %220 = arith.addf %218, %219 : vector<56x256xf32>
    %221 = vector.extract_strided_slice %220 {offsets = [0, 0], sizes = [56, 128], strides = [1, 1]} : vector<56x256xf32> to vector<56x128xf32>
    %222 = vector.extract_strided_slice %220 {offsets = [0, 128], sizes = [56, 128], strides = [1, 1]} : vector<56x256xf32> to vector<56x128xf32>
    %c0_107 = arith.constant 0 : index
    %c256_108 = arith.constant 256 : index
    %223 = vector.load %arg3[%c0_107, %c256_108] : memref<128x512xbf16, #tpu.memory_space<vmem>>, vector<128x256xbf16>
    %cst_109 = arith.constant dense<0.000000e+00> : vector<56x256xf32>
    %224 = tpu.matmul %216, %223, %cst_109 {dimension_numbers = #tpu.dot_dimension_numbers<[1], [0], [0], [1], [0, 0, 1, 1], [], []>} : vector<56x128xbf16>, vector<128x256xbf16>, vector<56x256xf32> -> vector<56x256xf32>
    %c0_110 = arith.constant 0 : index
    %c256_111 = arith.constant 256 : index
    %225 = vector.load %arg10[%c0_110, %c256_111] : memref<56x512xf32, #tpu.memory_space<vmem>>, vector<56x256xf32>
    %226 = arith.addf %224, %225 : vector<56x256xf32>
    %227 = vector.extract_strided_slice %226 {offsets = [0, 0], sizes = [56, 128], strides = [1, 1]} : vector<56x256xf32> to vector<56x128xf32>
    %228 = vector.extract_strided_slice %226 {offsets = [0, 128], sizes = [56, 128], strides = [1, 1]} : vector<56x256xf32> to vector<56x128xf32>
    %229 = arith.negf %222 : vector<56x128xf32>
    %230 = math.exp %229 : vector<56x128xf32>
    %cst_112 = arith.constant 1.000000e+00 : f32
    %231 = vector.broadcast %cst_112 : f32 to vector<56x128xf32>
    %232 = arith.addf %231, %230 : vector<56x128xf32>
    %233 = arith.divf %231, %232 : vector<56x128xf32>
    %234 = arith.mulf %233, %165 : vector<56x128xf32>
    %235 = arith.negf %221 : vector<56x128xf32>
    %236 = math.exp %235 : vector<56x128xf32>
    %cst_113 = arith.constant 1.000000e+00 : f32
    %237 = vector.broadcast %cst_113 : f32 to vector<56x128xf32>
    %238 = arith.addf %237, %236 : vector<56x128xf32>
    %239 = arith.divf %237, %238 : vector<56x128xf32>
    %240 = math.tanh %227 : vector<56x128xf32>
    %241 = arith.mulf %239, %240 : vector<56x128xf32>
    %242 = arith.addf %234, %241 : vector<56x128xf32>
    %243 = arith.negf %228 : vector<56x128xf32>
    %244 = math.exp %243 : vector<56x128xf32>
    %cst_114 = arith.constant 1.000000e+00 : f32
    %245 = vector.broadcast %cst_114 : f32 to vector<56x128xf32>
    %246 = arith.addf %245, %244 : vector<56x128xf32>
    %247 = arith.divf %245, %246 : vector<56x128xf32>
    %248 = math.tanh %242 : vector<56x128xf32>
    %249 = arith.mulf %247, %248 : vector<56x128xf32>
    %250 = arith.truncf %249 : vector<56x128xf32> to vector<56x128xbf16>
    %c0_115 = arith.constant 0 : index
    %c0_116 = arith.constant 0 : index
    %251 = vector.load %arg11[%c0_115, %c0_116] : memref<56x256xbf16, #tpu.memory_space<vmem>>, vector<56x128xbf16>
    tpu.vector_store %arg11[%c0_115, %c0_116], %250 {strides = array<i32>} : memref<56x256xbf16, #tpu.memory_space<vmem>>, vector<56x128xbf16>,
    %252 = arith.truncf %212 : vector<56x128xf32> to vector<56x128xbf16>
    %c0_117 = arith.constant 0 : index
    %c128_118 = arith.constant 128 : index
    %253 = vector.load %arg11[%c0_117, %c128_118] : memref<56x256xbf16, #tpu.memory_space<vmem>>, vector<56x128xbf16>
    tpu.vector_store %arg11[%c0_117, %c128_118], %252 {strides = array<i32>} : memref<56x256xbf16, #tpu.memory_space<vmem>>, vector<56x128xbf16>,
    %c0_119 = arith.constant 0 : index
    %c0_120 = arith.constant 0 : index
    %254 = vector.load %arg11[%c0_119, %c0_120] : memref<56x256xbf16, #tpu.memory_space<vmem>>, vector<56x256xbf16>
    %c0_121 = arith.constant 0 : index
    %c0_122 = arith.constant 0 : index
    %255 = vector.load %arg5[%c0_121, %c0_122] : memref<256x512xbf16, #tpu.memory_space<vmem>>, vector<256x256xbf16>
    %cst_123 = arith.constant dense<0.000000e+00> : vector<56x256xf32>
    %256 = tpu.matmul %254, %255, %cst_123 {dimension_numbers = #tpu.dot_dimension_numbers<[1], [0], [0], [1], [0, 0, 1, 1], [], []>} : vector<56x256xbf16>, vector<256x256xbf16>, vector<56x256xf32> -> vector<56x256xf32>
    %c0_124 = arith.constant 0 : index
    %c0_125 = arith.constant 0 : index
    %257 = vector.load %arg6[%c0_124, %c0_125] : memref<1x512xf32, #tpu.memory_space<vmem>>, vector<1x256xf32>
    %258 = vector.broadcast %257 : vector<1x256xf32> to vector<56x256xf32>
    %259 = arith.addf %256, %258 : vector<56x256xf32>
    %260 = vector.extract_strided_slice %259 {offsets = [0, 0], sizes = [56, 128], strides = [1, 1]} : vector<56x256xf32> to vector<56x128xf32>
    %261 = vector.extract_strided_slice %259 {offsets = [0, 128], sizes = [56, 128], strides = [1, 1]} : vector<56x256xf32> to vector<56x128xf32>
    %c0_126 = arith.constant 0 : index
    %c256_127 = arith.constant 256 : index
    %262 = vector.load %arg5[%c0_126, %c256_127] : memref<256x512xbf16, #tpu.memory_space<vmem>>, vector<256x256xbf16>
    %cst_128 = arith.constant dense<0.000000e+00> : vector<56x256xf32>
    %263 = tpu.matmul %254, %262, %cst_128 {dimension_numbers = #tpu.dot_dimension_numbers<[1], [0], [0], [1], [0, 0, 1, 1], [], []>} : vector<56x256xbf16>, vector<256x256xbf16>, vector<56x256xf32> -> vector<56x256xf32>
    %c0_129 = arith.constant 0 : index
    %c256_130 = arith.constant 256 : index
    %264 = vector.load %arg6[%c0_129, %c256_130] : memref<1x512xf32, #tpu.memory_space<vmem>>, vector<1x256xf32>
    %265 = vector.broadcast %264 : vector<1x256xf32> to vector<56x256xf32>
    %266 = arith.addf %263, %265 : vector<56x256xf32>
    %267 = vector.extract_strided_slice %266 {offsets = [0, 0], sizes = [56, 128], strides = [1, 1]} : vector<56x256xf32> to vector<56x128xf32>
    %268 = vector.extract_strided_slice %266 {offsets = [0, 128], sizes = [56, 128], strides = [1, 1]} : vector<56x256xf32> to vector<56x128xf32>
    %269 = arith.negf %261 : vector<56x128xf32>
    %270 = math.exp %269 : vector<56x128xf32>
    %cst_131 = arith.constant 1.000000e+00 : f32
    %271 = vector.broadcast %cst_131 : f32 to vector<56x128xf32>
    %272 = arith.addf %271, %270 : vector<56x128xf32>
    %273 = arith.divf %271, %272 : vector<56x128xf32>
    %274 = arith.mulf %273, %205 : vector<56x128xf32>
    %275 = arith.negf %260 : vector<56x128xf32>
    %276 = math.exp %275 : vector<56x128xf32>
    %cst_132 = arith.constant 1.000000e+00 : f32
    %277 = vector.broadcast %cst_132 : f32 to vector<56x128xf32>
    %278 = arith.addf %277, %276 : vector<56x128xf32>
    %279 = arith.divf %277, %278 : vector<56x128xf32>
    %280 = math.tanh %267 : vector<56x128xf32>
    %281 = arith.mulf %279, %280 : vector<56x128xf32>
    %282 = arith.addf %274, %281 : vector<56x128xf32>
    %283 = arith.negf %268 : vector<56x128xf32>
    %284 = math.exp %283 : vector<56x128xf32>
    %cst_133 = arith.constant 1.000000e+00 : f32
    %285 = vector.broadcast %cst_133 : f32 to vector<56x128xf32>
    %286 = arith.addf %285, %284 : vector<56x128xf32>
    %287 = arith.divf %285, %286 : vector<56x128xf32>
    %288 = math.tanh %282 : vector<56x128xf32>
    %289 = arith.mulf %287, %288 : vector<56x128xf32>
    %c3 = arith.constant 3 : index
    %c0_134 = arith.constant 0 : index
    %c0_135 = arith.constant 0 : index
    %290 = vector.load %arg12[%c3, %c0_134, %c0_135] : memref<4x56x128xf32, #tpu.memory_space<vmem>>, vector<1x56x128xf32>
    %291 = vector.shape_cast %290 : vector<1x56x128xf32> to vector<56x128xf32>
    %292 = vector.shape_cast %289 : vector<56x128xf32> to vector<1x56x128xf32>
    tpu.vector_store %arg12[%c3, %c0_134, %c0_135], %292 {strides = array<i32>} : memref<4x56x128xf32, #tpu.memory_space<vmem>>, vector<1x56x128xf32>,
    %c0_136 = arith.constant 0 : index
    %c0_137 = arith.constant 0 : index
    %c0_138 = arith.constant 0 : index
    %293 = vector.load %arg12[%c0_136, %c0_137, %c0_138] : memref<4x56x128xf32, #tpu.memory_space<vmem>>, vector<4x56x128xf32>
    %294 = vector.shape_cast %293 : vector<4x56x128xf32> to vector<224x128xf32>
    %295 = arith.truncf %294 : vector<224x128xf32> to vector<224x128xbf16>
    %c0_139 = arith.constant 0 : index
    %c0_140 = arith.constant 0 : index
    %296 = vector.load %arg7[%c0_139, %c0_140] : memref<128x10xbf16, #tpu.memory_space<vmem>>, vector<128x10xbf16>
    %cst_141 = arith.constant dense<0.000000e+00> : vector<224x10xf32>
    %297 = tpu.matmul %295, %296, %cst_141 {dimension_numbers = #tpu.dot_dimension_numbers<[1], [0], [0], [1], [0, 0, 1, 1], [], []>} : vector<224x128xbf16>, vector<128x10xbf16>, vector<224x10xf32> -> vector<224x10xf32>
    %c0_142 = arith.constant 0 : index
    %c0_143 = arith.constant 0 : index
    %298 = vector.load %arg8[%c0_142, %c0_143] : memref<1x10xf32, #tpu.memory_space<vmem>>, vector<1x10xf32>
    %299 = vector.broadcast %298 : vector<1x10xf32> to vector<224x10xf32>
    %300 = arith.addf %297, %299 : vector<224x10xf32>
    %cst_144 = arith.constant dense<0xFF800000> : vector<224xf32>
    %301 = vector.multi_reduction <maximumf>, %300, %cst_144 [1] : vector<224x10xf32> to vector<224xf32>
    %302 = vector.shape_cast %301 : vector<224xf32> to vector<224x1xf32>
    %303 = vector.broadcast %302 : vector<224x1xf32> to vector<224x10xf32>
    %304 = arith.subf %300, %303 : vector<224x10xf32>
    %305 = math.exp %304 : vector<224x10xf32>
    %cst_145 = arith.constant dense<0.000000e+00> : vector<224xf32>
    %306 = vector.multi_reduction <add>, %305, %cst_145 [1] : vector<224x10xf32> to vector<224xf32>
    %307 = vector.shape_cast %306 : vector<224xf32> to vector<224x1xf32>
    %cst_146 = arith.constant 1.000000e+00 : f32
    %308 = vector.broadcast %cst_146 : f32 to vector<224x1xf32>
    %309 = arith.divf %308, %307 : vector<224x1xf32>
    %310 = vector.broadcast %309 : vector<224x1xf32> to vector<224x10xf32>
    %311 = arith.mulf %305, %310 : vector<224x10xf32>
    %312 = vector.shape_cast %311 : vector<224x10xf32> to vector<4x56x10xf32>
    %c0_147 = arith.constant 0 : index
    %c0_148 = arith.constant 0 : index
    %c0_149 = arith.constant 0 : index
    %313 = vector.load %arg9[%c0_147, %c0_148, %c0_149] : memref<4x56x10xf32, #tpu.memory_space<vmem>>, vector<4x56x10xf32>
    tpu.vector_store %arg9[%c0_147, %c0_148, %c0_149], %312 {strides = array<i32>} : memref<4x56x10xf32, #tpu.memory_space<vmem>>, vector<4x56x10xf32>,
    return
  }
  func.func @transform_0(%arg0: i32) -> (i32, i32) {
    %c0_i32 = arith.constant 0 : i32
    %c0_i32_0 = arith.constant 0 : i32
    return %arg0, %c0_i32 : i32, i32
  }
  func.func @transform_1(%arg0: i32) -> (i32, i32) {
    %c0_i32 = arith.constant 0 : i32
    %c0_i32_0 = arith.constant 0 : i32
    %c0_i32_1 = arith.constant 0 : i32
    return %c0_i32, %c0_i32_0 : i32, i32
  }
  func.func @transform_2(%arg0: i32) -> (i32, i32) {
    %c0_i32 = arith.constant 0 : i32
    %c0_i32_0 = arith.constant 0 : i32
    %c0_i32_1 = arith.constant 0 : i32
    return %c0_i32, %c0_i32_0 : i32, i32
  }
  func.func @transform_3(%arg0: i32) -> (i32, i32) {
    %c0_i32 = arith.constant 0 : i32
    %c0_i32_0 = arith.constant 0 : i32
    %c0_i32_1 = arith.constant 0 : i32
    return %c0_i32, %c0_i32_0 : i32, i32
  }
  func.func @transform_4(%arg0: i32) -> (i32, i32) {
    %c0_i32 = arith.constant 0 : i32
    %c0_i32_0 = arith.constant 0 : i32
    %c0_i32_1 = arith.constant 0 : i32
    return %c0_i32, %c0_i32_0 : i32, i32
  }
  func.func @transform_5(%arg0: i32) -> (i32, i32) {
    %c0_i32 = arith.constant 0 : i32
    %c0_i32_0 = arith.constant 0 : i32
    %c0_i32_1 = arith.constant 0 : i32
    return %c0_i32, %c0_i32_0 : i32, i32
  }
  func.func @transform_6(%arg0: i32) -> (i32, i32) {
    %c0_i32 = arith.constant 0 : i32
    %c0_i32_0 = arith.constant 0 : i32
    %c0_i32_1 = arith.constant 0 : i32
    return %c0_i32, %c0_i32_0 : i32, i32
  }
  func.func @transform_7(%arg0: i32) -> (i32, i32) {
    %c0_i32 = arith.constant 0 : i32
    %c0_i32_0 = arith.constant 0 : i32
    %c0_i32_1 = arith.constant 0 : i32
    return %c0_i32, %c0_i32_0 : i32, i32
  }
  func.func @transform_8(%arg0: i32) -> (i32, i32, i32) {
    %c0_i32 = arith.constant 0 : i32
    %c0_i32_0 = arith.constant 0 : i32
    %c0_i32_1 = arith.constant 0 : i32
    return %c0_i32, %arg0, %c0_i32_0 : i32, i32, i32
  }
}

</mosaic_0001>

<bundles_post_ra>
// kernel: tpu_custom_call.1
= control target key start
LH: loop header
LB: loop body
LE: loop exit
PB: predicated region body
PF: predicated region fallthrough
CT: control target
= control target key end

     0   :  { %13 = vsyncpa [#allocation6], 0  ;;  %s10559_s0 = inlined_call_operand.hbm [shape: f32[112,128], index: 0, kind: input, shape index: {}]   ;;  %s10560_s1 = inlined_call_operand.hbm [shape: bf16[128,512], index: 1, kind: input, shape index: {}]   ;;  %s10561_s2 = inlined_call_operand.hbm [shape: bf16[128,512], index: 2, kind: input, shape index: {}]   ;;  %s10562_s3 = inlined_call_operand.vmem [shape: f32[1,512], index: 3, kind: input, shape index: {}]   ;;  %s10563_s4 = inlined_call_operand.hbm [shape: bf16[256,512], index: 4, kind: input, shape index: {}]   ;;  %s10564_s5 = inlined_call_operand.vmem [shape: f32[1,512], index: 5, kind: input, shape index: {}]   ;;  %s10565_s6 = inlined_call_operand.vmem [shape: bf16[128,10], index: 6, kind: input, shape index: {}]   ;;  %s10566_s7 = inlined_call_operand.vmem [shape: f32[1,10], index: 7, kind: input, shape index: {}]   ;;  %s10567_s8 = inlined_call_operand.vmem [shape: f32[4,112,10], index: 8, kind: output, shape index: {}]  }
   0x1   :  { %15 = vsyncpa [#allocation6 + $0x1], 0 }
   0x2   :  { %16 = vsyncpa [#allocation8], 0 }
   0x3   :  { %17 = vsyncpa [#allocation11], 0  ;;  %s8844_s27 = smov 0   ;;  %s8846_s28 = smov 0  }
   0x4   :  { %s8848_s29 = smov 0   ;;  %s8850_s30 = smov 0  }
   0x5 LB: > { %s8863_s9 = sadd.s32 4294967295, %s8788_s30   ;;  %p43_p0 = scmp.ne.s32.totalorder %s8780_s28, %s8776_s27  ;;  %s8788_s30 = sphi %s8850_s30, %s10785_s30   ;;  %s8784_s29 = sphi %s8848_s29, %s10784_s29   ;;  %s8780_s28 = sphi %s8846_s28, %s10783_s28   ;;  %s8776_s27 = sphi %s8844_s27, %s10782_s27  }
   0x6   : > { %p10568_p1 = scmp.eq.s32.totalorder %s8863_s9, 0  ;;  %p6347_p3 = scmp.ge.s32.totalorder %s8788_s30, 1 }
   0x7   : > { %p227_p4 = scmp.lt.s32.totalorder %s8788_s30, 3  ;;  %s8790_s12 = smov [#allocation7]  }
   0x8   : > { %p8872_p5 = por %p10568_p1, %p43_p0  ;;  %s239_s13 = sshll.u32 %s8790_s12, 4  ;;  %s240_s13 = int_to_ptr.vmem [resolvable:$true] %s239_s13 }
   0x9   : > { %p8876_p6 = pnand %p6347_p3, %p227_p4  ;;  %s8791_s15 = smov [#allocation9]  }
   0xa   : > { %s10642_s10 = scalar_select %p8872_p5, 1, 0 }
   0xb   : > { %s10643_s11 = scalar_select %p8876_p6, 1, 0 }
   0xc   : > { %p7068_p7 = pneg %p8876_p6  ;;  %s252_s16 = sshll.u32 %s8791_s15, 4  ;;  %s8888_s16 = int_to_ptr.vmem [resolvable:$true] %s252_s16 }
   0xd   : > { %s8632_s19 = scalar_lea.hbm %s10560_s1, 4096 }
   0xe   : > { %p8884_p8 = pnand %p7068_p7, %p10568_p1  ;;  %p8633_p9 = scmp.ne.s32.totalorder %s10560_s1, %s8632_s19 }
   0xf   : > { %p8639_p13 = scmp.lt.u32.totalorder %s8632_s19, %s10560_s1 }
  0x10   : > { %p8898_p10 = pneg %p8884_p8 }
  0x12   : > { %p8635_p11 = pnand %p8898_p10, %p8633_p9 }
  0x14   : > { %p8636_p12 = pneg %p8635_p11 }
  0x16   : > { %p8641_p0 = pnand %p8639_p13, %p8636_p12 }
  0x18   : > { %8644 = shalt.err (!%p8641_p0)
}
  0x19   : > { %s8645_s25 = scalar_lea.vmem %s240_s13, 4096  ;;  %p8653_p1 = scmp.lt.s32.totalorder %s240_s13, %s240_s13 }
  0x1a   : > { %p8646_p3 = scmp.ne.s32.totalorder %s240_s13, %s8645_s25  ;;  %p8654_p2 = scmp.lt.s32.totalorder %s8645_s25, %s8645_s25 }
  0x1c   : > { %p8648_p4 = pnand %p8646_p3, %p8898_p10  ;;  %p8655_p5 = por %p8654_p2, %p8653_p1 }
  0x1e   : > { %p8649_p7 = pneg %p8648_p4 }
  0x20   : > { %p8656_p6 = pnand %p8655_p5, %p8649_p7 }
  0x22   : > { %8659 = shalt.err (!%p8656_p6)
}
  0x23   : > { %s8792_s26 = smov 256   ;;  %s8793_s27 = smov 16  }
  0x24   : > { %7071 = dma.hbm_to_vmem [thread:$0]  (!%p8884_p8), %s10560_s1, 4096, %s240_s13, [#allocation8], %s8792_s26, %s8792_s26, %s8793_s27  }
  0x25   : > { %s8660_s19 = scalar_lea.hbm %s10561_s2, 4096 }
  0x26   : > { %p8661_p1 = scmp.ne.s32.totalorder %s10561_s2, %s8660_s19  ;;  %p8667_p6 = scmp.lt.u32.totalorder %s8660_s19, %s10561_s2 }
  0x28   : > { %p8663_p2 = pnand %p8661_p1, %p8898_p10 }
  0x2a   : > { %p8664_p5 = pneg %p8663_p2 }
  0x2c   : > { %p8669_p9 = pnand %p8667_p6, %p8664_p5 }
  0x2e   : > { %8672 = shalt.err (!%p8669_p9)
}
  0x2f   : > { %s8673_s13 = scalar_lea.vmem %s8888_s16, 4096  ;;  %p8681_p0 = scmp.lt.s32.totalorder %s8888_s16, %s8888_s16 }
  0x30   : > { %p8674_p11 = scmp.ne.s32.totalorder %s8888_s16, %s8673_s13  ;;  %p8682_p3 = scmp.lt.s32.totalorder %s8673_s13, %s8673_s13 }
  0x32   : > { %p8676_p12 = pnand %p8674_p11, %p8898_p10  ;;  %p8683_p4 = por %p8682_p3, %p8681_p0 }
  0x34   : > { %p8677_p13 = pneg %p8676_p12 }
  0x36   : > { %p8684_p7 = pnand %p8683_p4, %p8677_p13 }
  0x38   : > { %8687 = shalt.err (!%p8684_p7)
}
  0x39   : > { %7074 = dma.hbm_to_vmem [thread:$0]  (!%p8884_p8), %s10561_s2, 4096, %s8888_s16, [#allocation8], %s8792_s26, %s8792_s26, %s8793_s27  }
  0x3a   : > { %s8794_s15 = smov [#allocation10]   ;;  %s8688_s20 = scalar_lea.hbm %s10563_s4, 8192 }
  0x3b   : > { %s268_s17 = sshll.u32 %s8794_s15, 4  ;;  %p8689_p1 = scmp.ne.s32.totalorder %s10563_s4, %s8688_s20  ;;  %s269_s17 = int_to_ptr.vmem [resolvable:$true] %s268_s17 }
  0x3c   : > { %p8695_p6 = scmp.lt.u32.totalorder %s8688_s20, %s10563_s4 }
  0x3d   : > { %p8691_p2 = pnand %p8689_p1, %p8898_p10 }
  0x3f   : > { %p8692_p5 = pneg %p8691_p2 }
  0x41   : > { %p8697_p9 = pnand %p8695_p6, %p8692_p5 }
  0x43   : > { %8700 = shalt.err (!%p8697_p9)
}
  0x44   : > { %s8701_s16 = scalar_lea.vmem %s269_s17, 8192  ;;  %p8709_p0 = scmp.lt.s32.totalorder %s269_s17, %s269_s17 }
  0x45   : > { %p8702_p11 = scmp.ne.s32.totalorder %s269_s17, %s8701_s16  ;;  %p8710_p3 = scmp.lt.s32.totalorder %s8701_s16, %s8701_s16 }
  0x47   : > { %p8704_p12 = pnand %p8702_p11, %p8898_p10  ;;  %p8711_p4 = por %p8710_p3, %p8709_p0 }
  0x49   : > { %p8705_p13 = pneg %p8704_p12 }
  0x4b   : > { %p8712_p7 = pnand %p8711_p4, %p8705_p13 }
  0x4d   : > { %8715 = shalt.err (!%p8712_p7)
}
  0x4e   : > { %7077 = dma.hbm_to_vmem [thread:$0]  (!%p8884_p8), %s10563_s4, 8192, %s269_s17, [#allocation11], %s8792_s26, %s8792_s26, %s8793_s27  }
  0x4f   : > { %s8965_s22 = sadd.s32 1, %s8788_s30   ;;  %s30_s14 = sadd.s32 1, %s8784_s29 }
  0x50   : > { %s27_s15 = ssub.s32 %s8788_s30, %s8965_s22  ;;  %p37_p10 = scmp.ne.s32.totalorder %s8784_s29, %s8780_s28 }
  0x51   : > { %p28_p1 = scmp.eq.s32.totalorder %s27_s15, 0  ;;  %p38_p2 = scmp.eq.s32.totalorder %s8788_s30, 0 }
  0x52   : > { %p10646_p5 = scmp.eq.s32.totalorder %s8863_s9, 1  ;;  %p7085_p9 = scmp.lt.s32.totalorder %s8788_s30, 2 }
  0x53   : > { %s8981_s19 = scalar_select %p28_p1, %s8784_s29, %s30_s14  }
  0x54   : > { %p8975_p6 = por %p10646_p5, %p37_p10  ;;  %p39_p11 = por %p38_p2, %p37_p10 }
  0x55   : > { %s291_s20 = sand.u32 1, %s8784_s29   ;;  %s6941_s26 = smul.u32 896, %s8788_s30 }
  0x56   : > { %s7051_s21 = smul.u32 56, %s291_s20  ;;  %p8985_p8 = pnand %p7085_p9, %p39_p11 }
  0x57   : > { %s8992_s24 = scalar_lea.hbm %s10559_s0, %s6941_s26  ;;  %s8996_s30 = scalar_lea.sflag [#allocation6], %s291_s20 }
  0x58   : > { %s295_s13 = scalar_lea.vmem [#allocation5], %s7051_s21  ;;  %s8716_s25 = scalar_lea.hbm %s8992_s24, 896 }
  0x59   : > { %s302_s16 = sshll.u32 %s295_s13, 4  ;;  %p8717_p12 = scmp.ne.s32.totalorder %s8992_s24, %s8716_s25  ;;  %s8994_s16 = int_to_ptr.vmem [resolvable:$true] %s302_s16 }
  0x5a   : > { %p8718_p13 = pneg %p8985_p8  ;;  %s8721_s15 = scalar_lea.hbm %s10559_s0, 1792 }
  0x5b   : > { %p8722_p4 = scmp.lt.u32.totalorder %s8992_s24, %s10559_s0  ;;  %p8723_p7 = scmp.lt.u32.totalorder %s8721_s15, %s8716_s25 }
  0x5c   : > { %p8719_p0 = pnand %p8718_p13, %p8717_p12  ;;  %p8725_p1 = scmp.lt.u32.totalorder %s8716_s25, %s8992_s24 }
  0x5d   : > { %p8724_p10 = por %p8723_p7, %p8722_p4 }
  0x5e   : > { %p8720_p3 = pneg %p8719_p0 }
  0x5f   : > { %p8726_p2 = por %p8725_p1, %p8724_p10 }
  0x61   : > { %p8727_p5 = pnand %p8726_p2, %p8720_p3 }
  0x63   : > { %8730 = shalt.err (!%p8727_p5)
}
  0x64   : > { %s8731_s20 = scalar_lea.vmem %s8994_s16, 896  ;;  %s8795_s21 = smov [#allocation5]  }
  0x65   : > { %p8732_p9 = scmp.ne.s32.totalorder %s8994_s16, %s8731_s20  ;;  %s8736_s23 = sshll.u32 %s8795_s21, 4  ;;  %s8737_s23 = int_to_ptr.vmem [resolvable:$false] %s8736_s23 }
  0x66   : > { %s8738_s13 = scalar_lea.vmem %s8737_s23, 1792  ;;  %p8739_p0 = scmp.lt.s32.totalorder %s8994_s16, %s8737_s23 }
  0x67   : > { %p8734_p11 = pnand %p8732_p9, %p8718_p13  ;;  %p8740_p4 = scmp.lt.s32.totalorder %s8738_s13, %s8731_s20 }
  0x69   : > { %p8735_p12 = pneg %p8734_p11  ;;  %p8741_p7 = por %p8740_p4, %p8739_p0 }
  0x6b   : > { %p8742_p10 = pnand %p8741_p7, %p8735_p12 }
  0x6d   : > { %8745 = shalt.err (!%p8742_p10)
}
  0x6e   : > { %s8796_s25 = smov 128   ;;  %s8797_s12 = smov 8  }
  0x6f   : > { %7081 = dma.hbm_to_vmem [thread:$0]  (!%p8985_p8), %s8992_s24, 896, %s8994_s16, %s8996_s30, %s8796_s25, %s8796_s25, %s8797_s12  }
  0x70   : > { %p10649_p13 = scmp.ne.s32.totalorder %s10643_s11, 0 }
  0x72   : > { %314 = sbr.rel (%p10649_p13) target bundleno = 2296 (0x8f8), region = 52 }
  0x79   : > { %s9027_s14 = sand.u32 1, %s8780_s28   ;;  %p10650_p3 = scmp.ne.s32.totalorder %s10642_s10, 0 }
  0x7a   : > { %s7052_s15 = smul.u32 56, %s9027_s14  ;;  %s317_s26 = scalar_lea.sflag [#allocation6], %s9027_s14 }
  0x7c   : > { %s9031_s17 = scalar_lea.vmem [#allocation5], %s7052_s15 }
  0x7d   : > { %8763 = dma.done.wait (%p10650_p3), %s317_s26, 896  }
  0x7e   : > { %8765 = vsyncadd (%p10650_p3), %s317_s26, 4294966400  ;;  %p10651_p8 = scmp.eq.s32.totalorder %s8863_s9, 0 }
  0x80   : > { %8767 = dma.done.wait (%p10651_p8), [#allocation8], 8192   ;;  %p10652_p1 = pmov %p10651_p8 }
  0x82   : > { %8769 = vsyncadd (%p10652_p1), [#allocation8], 4294959104  ;;  %p10653_p2 = pmov %p10652_p1 }
  0x83   : > { %p10654_p5 = pmov %p10652_p1 }
  0x84   : > { %8771 = dma.done.wait (%p10653_p2), [#allocation11], 8192  }
  0x85   : > { %8773 = vsyncadd (%p10654_p5), [#allocation11], 4294959104  ;;  %v10571_v0 = vmov 0   ;;  %v7129_v1 = vld [vmem:[#allocation7 + $0x4] ss:$16 sps:$4 sm:$0xff]   ;;  %vm5740_vm0 = vcmask 80896  }
  0x86   : > { %518 = vmatprep.mubr.bf16.mxu1 %v10571_v0  ;;  %1036 = vmatprep.mubr.bf16.mxu0 %v10571_v0  ;;  %v7131_v2 = vld [vmem:[#allocation7] ss:$16 sps:$4 sm:$0xff]   ;;  %v7132_v3 = vld [vmem:[#allocation7 + $0x24] ss:$16 sps:$4 sm:$0xff]   ;;  %v7155_v19 = vld [vmem:[#allocation7 + $0xc] ss:$16 sps:$4 sm:$0xff]  }
  0x87   : > { %486 = vmatprep.subr.bf16.mxu1 %v7129_v1  ;;  %v7134_v4 = vld [vmem:[#allocation7 + $0x20] ss:$16 sps:$4 sm:$0xff]   ;;  %v7135_v5 = vld [vmem:[#allocation7 + $0x44] ss:$16 sps:$4 sm:$0xff]   ;;  %v7153_v20 = vld [vmem:[#allocation7 + $0x8] ss:$16 sps:$4 sm:$0xff]  }
  0x88   : > { %487 = vmatpush1.bf16.msra.mxu1 %v7131_v2  ;;  %v7137_v6 = vld [vmem:[#allocation7 + $0x40] ss:$16 sps:$4 sm:$0xff]   ;;  %v7138_v7 = vld [vmem:[#allocation7 + $0x64] ss:$16 sps:$4 sm:$0xff]   ;;  %v7158_v22 = vld [vmem:[#allocation7 + $0x2c] ss:$16 sps:$4 sm:$0xff]  }
  0x89   : > { %488 = vmatprep.subr.bf16.mxu1 %v7132_v3  ;;  %v7140_v8 = vld [vmem:[#allocation7 + $0x60] ss:$16 sps:$4 sm:$0xff]   ;;  %v7141_v9 = vld [vmem:[#allocation7 + $0x84] ss:$16 sps:$4 sm:$0xff]   ;;  %v7156_v23 = vld [vmem:[#allocation7 + $0x28] ss:$16 sps:$4 sm:$0xff]  }
  0x8a   : > { %v7143_v10 = vld [vmem:[#allocation7 + $0x80] ss:$16 sps:$4 sm:$0xff]   ;;  %v7144_v11 = vld [vmem:[#allocation7 + $0xa4] ss:$16 sps:$4 sm:$0xff]   ;;  %v7161_v26 = vld [vmem:[#allocation7 + $0x4c] ss:$16 sps:$4 sm:$0xff]  }
  0x8b   : > { %v7146_v12 = vld [vmem:[#allocation7 + $0xa0] ss:$16 sps:$4 sm:$0xff]   ;;  %v7147_v13 = vld [vmem:[#allocation7 + $0xc4] ss:$16 sps:$4 sm:$0xff]   ;;  %v7159_v27 = vld [vmem:[#allocation7 + $0x48] ss:$16 sps:$4 sm:$0xff]  }
  0x8c   : > { %489 = vmatpush1.bf16.msra.mxu1 %v7134_v4  ;;  %v7149_v14 = vld [vmem:[#allocation7 + $0xc0] ss:$16 sps:$4 sm:$0xff]   ;;  %v7150_v15 = vld [vmem:[#allocation7 + $0xe4] ss:$16 sps:$4 sm:$0xff]   ;;  %v7164_v29 = vld [vmem:[#allocation7 + $0x6c] ss:$16 sps:$4 sm:$0xff]  }
  0x8d   : > { %490 = vmatprep.subr.bf16.mxu1 %v7135_v5  ;;  %v7152_v16 = vld [vmem:[#allocation7 + $0xe0] ss:$16 sps:$4 sm:$0xff]   ;;  %v7162_v30 = vld [vmem:[#allocation7 + $0x68] ss:$16 sps:$4 sm:$0xff]   ;;  %v7167_v33 = vld [vmem:[#allocation7 + $0x8c] ss:$16 sps:$4 sm:$0xff]  }
  0x8e   : > { %v367_v17 = vld [vmem:[%s9031_s17] sm:$0xff]  ;;  %v368_v18 = vld [vmem:[%s9031_s17 + $0x8] sm:$0xff]  ;;  %v369_v24 = vld [vmem:[%s9031_s17 + $0x10] sm:$0xff]  ;;  %s7053_s23 = smul.u32 224, %s9027_s14 }
  0x8f   : > { %v374_v21 = vpack.c.bf16 %v368_v18, %v367_v17  ;;  %v370_v25 = vld [vmem:[%s9031_s17 + $0x18] sm:$0xff]  ;;  %v371_v31 = vld [vmem:[%s9031_s17 + $0x20] sm:$0xff]  ;;  %v372_v32 = vld [vmem:[%s9031_s17 + $0x28] sm:$0xff]  ;;  %s6984_s13 = smul.u32 (%p8975_p6), 56, %s8863_s9 }
  0x90   : > { %491 = vmatpush1.bf16.msra.mxu1 %v7137_v6  ;;  %v375_v28 = vpack.c.bf16 %v370_v25, %v369_v24  ;;  %v7165_v34 = vld [vmem:[#allocation7 + $0x88] ss:$16 sps:$4 sm:$0xff]   ;;  %v376_v35 = vpack.c.bf16 %v372_v32, %v371_v31  ;;  %v7170_v36 = vld [vmem:[#allocation7 + $0xac] ss:$16 sps:$4 sm:$0xff]   ;;  %v9062_v44 = vld [vmem:[#allocation10 + $0x4] ss:$16 sps:$4 sm:$0xff]  }
  0x91   : > { %492 = vmatprep.subr.bf16.mxu1 %v7138_v7  ;;  %v7168_v37 = vld [vmem:[#allocation7 + $0xa8] ss:$16 sps:$4 sm:$0xff]   ;;  %v7173_v39 = vld [vmem:[#allocation7 + $0xcc] ss:$16 sps:$4 sm:$0xff]   ;;  %v9068_v47 = vld [vmem:[#allocation10] ss:$16 sps:$4 sm:$0xff]   ;;  %1004 = vmatprep.subr.bf16.mxu0 %v9062_v44  ;;  %s10494_s12 = scalar_lea.vmem (%p8975_p6), %s10567_s8, %s6984_s13 }
  0x92   : > { %v373_v38 = vld [vmem:[%s9031_s17 + $0x30] sm:$0xff]  ;;  %1005 = vmatpush1.bf16.msra.mxu0 %v9068_v47  ;;  %s10397_s14 = scalar_lea.vmem [#allocation12], %s7053_s23 }
  0x93   : > { %v7171_v40 = vld [vmem:[#allocation7 + $0xc8] ss:$16 sps:$4 sm:$0xff]   ;;  %v377_v41 = vpack.c.bf16 %v373_v38, %v373_v38  ;;  %v7176_v42 = vld [vmem:[#allocation7 + $0xec] ss:$16 sps:$4 sm:$0xff]   ;;  %v9074_v48 = vld [vmem:[#allocation10 + $0x24] ss:$16 sps:$4 sm:$0xff]  }
  0x94   : > { %493 = vmatpush1.bf16.msra.mxu1 %v7140_v8  ;;  %v7174_v43 = vld [vmem:[#allocation7 + $0xe8] ss:$16 sps:$4 sm:$0xff]   ;;  %v9064_v45 = vld [vmem:[#allocation10 + $0xc] ss:$16 sps:$4 sm:$0xff]   ;;  %v9080_v51 = vld [vmem:[#allocation10 + $0x20] ss:$16 sps:$4 sm:$0xff]   ;;  %1006 = vmatprep.subr.bf16.mxu0 %v9074_v48 }
  0x95   : > { %494 = vmatprep.subr.bf16.mxu1 %v7141_v9  ;;  %v9066_v46 = vld [vmem:[#allocation10 + $0x8] ss:$16 sps:$4 sm:$0xff]   ;;  %v9076_v49 = vld [vmem:[#allocation10 + $0x2c] ss:$16 sps:$4 sm:$0xff]   ;;  %v9086_v52 = vld [vmem:[#allocation10 + $0x44] ss:$16 sps:$4 sm:$0xff]  }
  0x96   : > { %v9078_v50 = vld [vmem:[#allocation10 + $0x28] ss:$16 sps:$4 sm:$0xff]   ;;  %1007 = vmatpush1.bf16.msra.mxu0 %v9080_v51  ;;  %v9088_v53 = vld [vmem:[#allocation10 + $0x4c] ss:$16 sps:$4 sm:$0xff]   ;;  %v9092_v55 = vld [vmem:[#allocation10 + $0x40] ss:$16 sps:$4 sm:$0xff]  }
  0x97   : > { %v9090_v54 = vld [vmem:[#allocation10 + $0x48] ss:$16 sps:$4 sm:$0xff]   ;;  %1008 = vmatprep.subr.bf16.mxu0 %v9086_v52  ;;  %v7195_v56 = vld [vmem:[#allocation10 + $0x64] ss:$16 sps:$4 sm:$0xff]   ;;  %v7199_v57 = vld [vmem:[#allocation10 + $0x6c] ss:$16 sps:$4 sm:$0xff]  }
  0x98   : > { %495 = vmatpush1.bf16.msra.mxu1 %v7143_v10  ;;  %v7197_v58 = vld [vmem:[#allocation10 + $0x68] ss:$16 sps:$4 sm:$0xff]   ;;  %v7200_v59 = vld [vmem:[#allocation10 + $0x60] ss:$16 sps:$4 sm:$0xff]   ;;  %v7201_v60 = vld [vmem:[#allocation10 + $0x84] ss:$16 sps:$4 sm:$0xff]  }
  0x99   : > { %496 = vmatprep.subr.bf16.mxu1 %v7144_v11  ;;  %v7205_v61 = vld [vmem:[#allocation10 + $0x8c] ss:$16 sps:$4 sm:$0xff]   ;;  %v7203_v62 = vld [vmem:[#allocation10 + $0x88] ss:$16 sps:$4 sm:$0xff]   ;;  %v7206_v63 = vld [vmem:[#allocation10 + $0x80] ss:$16 sps:$4 sm:$0xff]  }
  0x9a   : > { %1009 = vmatpush1.bf16.msra.mxu0 %v9092_v55  ;;  %v7207_v1 = vld [vmem:[#allocation10 + $0xa4] ss:$16 sps:$4 sm:$0xff]   ;;  %v7211_v2 = vld [vmem:[#allocation10 + $0xac] ss:$16 sps:$4 sm:$0xff]   ;;  %v7209_v3 = vld [vmem:[#allocation10 + $0xa8] ss:$16 sps:$4 sm:$0xff]  }
  0x9b   : > { %1010 = vmatprep.subr.bf16.mxu0 %v7195_v56  ;;  %v7212_v4 = vld [vmem:[#allocation10 + $0xa0] ss:$16 sps:$4 sm:$0xff]   ;;  %v7213_v5 = vld [vmem:[#allocation10 + $0xc4] ss:$16 sps:$4 sm:$0xff]   ;;  %v7217_v6 = vld [vmem:[#allocation10 + $0xcc] ss:$16 sps:$4 sm:$0xff]  }
  0x9c   : > { %497 = vmatpush1.bf16.msra.mxu1 %v7146_v12  ;;  %v7215_v7 = vld [vmem:[#allocation10 + $0xc8] ss:$16 sps:$4 sm:$0xff]   ;;  %v7218_v8 = vld [vmem:[#allocation10 + $0xc0] ss:$16 sps:$4 sm:$0xff]   ;;  %v7219_v9 = vld [vmem:[#allocation10 + $0xe4] ss:$16 sps:$4 sm:$0xff]  }
  0x9d   : > { %498 = vmatprep.subr.bf16.mxu1 %v7147_v13  ;;  %v7223_v10 = vld [vmem:[#allocation10 + $0xec] ss:$16 sps:$4 sm:$0xff]   ;;  %v7221_v11 = vld [vmem:[#allocation10 + $0xe8] ss:$16 sps:$4 sm:$0xff]   ;;  %v7224_v12 = vld [vmem:[#allocation10 + $0xe0] ss:$16 sps:$4 sm:$0xff]  }
  0x9e   : > { %1011 = vmatpush1.bf16.msra.mxu0 %v7200_v59  ;;  %v7227_v13 = vld [vmem:[#allocation9 + $0x4] ss:$16 sps:$4 sm:$0xff]  }
  0x9f   : > { %1012 = vmatprep.subr.bf16.mxu0 %v7201_v60  ;;  %v587_v60 = vld [vmem:[%s10562_s3 + $0x2] sm:$0x3] }
  0xa0   : > { %499 = vmatpush1.bf16.msra.mxu1 %v7149_v14  ;;  %v7230_v14 = vld [vmem:[#allocation9 + $0xc] ss:$16 sps:$4 sm:$0xff]  }
  0xa1   : > { %500 = vmatprep.subr.bf16.mxu1 %v7150_v15  ;;  %v396_v15 = vlaneseq }
  0xa2   : > { %1013 = vmatpush1.bf16.msra.mxu0 %v7206_v63 }
  0xa3   : > { %1014 = vmatprep.subr.bf16.mxu0 %v7207_v1 }
  0xa4   : > { %501 = vmatpush1.bf16.msra.mxu1 %v7152_v16  ;;  %v397_v16 = vshrl.u32 %v396_v15, 7 }
  0xa5   : > { %679 = vmatprep.subr.bf16.mxu1 %v7155_v19 }
  0xa6   : > { %1015 = vmatpush1.bf16.msra.mxu0 %v7212_v4  ;;  %v9098_v18 = vsub.s32 0, %v397_v16  ;;  %v9145_v1 = vsub.s32 1, %v397_v16 }
  0xa7   : > { %519 = vmatmul.mubr.bf16.vlgmr.msra.gmra.mrb[0].mxu1 %v374_v21  ;;  %1016 = vmatprep.subr.bf16.mxu0 %v7213_v5 }
  0xa8   : > { %680 = vmatpush1.bf16.msra.mxu1 %v7153_v20  ;;  %528 = vmatprep.mubr.bf16.mxu1 %v10571_v0  ;;  %10655 = vst [vmem:[#allocation16_spill] sm:$0xff] %v9098_v18  ;;  %v9105_v20 = vld [vmem:[%s10562_s3] sm:$0x3]  ;;  %10659 = vst [vmem:[#allocation20_spill] sm:$0xff] %v9145_v1  ;;  %v9151_v5 = vrot.slane %v587_v60, %v9145_v1 }
  0xa9   : > { %681 = vmatprep.subr.bf16.mxu1 %v7158_v22 }
  0xaa   : > { %1017 = vmatpush1.bf16.msra.mxu0 %v7218_v8 }
  0xab   : > { %1018 = vmatprep.subr.bf16.mxu0 %v7219_v9 }
  0xac   : > { %682 = vmatpush1.bf16.msra.mxu1 %v7156_v23  ;;  %v399_v23 = vrot.slane %v9105_v20, %v9098_v18 }
  0xad   : > { %683 = vmatprep.subr.bf16.mxu1 %v7161_v26 }
  0xae   : > { %1019 = vmatpush1.bf16.msra.mxu0 %v7224_v12 }
  0xaf   : > { %529 = vmatmul.mubr.bf16.gmra.mrb[4].mxu1 %v375_v28  ;;  %1476 = vmatprep.subr.bf16.mxu0 %v7227_v13 }
  0xb0   : > { %684 = vmatpush1.bf16.msra.mxu1 %v7159_v27  ;;  %538 = vmatprep.mubr.bf16.mxu1 %v10571_v0 }
  0xb1   : > { %685 = vmatprep.subr.bf16.mxu1 %v7164_v29 }
  0xb4   : > { %686 = vmatpush1.bf16.msra.mxu1 %v7162_v30 }
  0xb5   : > { %687 = vmatprep.subr.bf16.mxu1 %v7167_v33 }
  0xb7   : > { %539 = vmatmul.mubr.bf16.gmra.mrb[8].mxu1 %v376_v35 }
  0xb8   : > { %688 = vmatpush1.bf16.msra.mxu1 %v7165_v34  ;;  %548 = vmatprep.mubr.bf16.mxu1 %v10571_v0 }
  0xb9   : > { %689 = vmatprep.subr.bf16.mxu1 %v7170_v36 }
  0xbc   : > { %690 = vmatpush1.bf16.msra.mxu1 %v7168_v37 }
  0xbd   : > { %691 = vmatprep.subr.bf16.mxu1 %v7173_v39 }
  0xbf   : > { %549 = vmatmul.mubr.bf16.gmra.mrb[12].mxu1 %v377_v41 }
  0xc0   : > { %692 = vmatpush1.bf16.msra.mxu1 %v7171_v40  ;;  %711 = vmatprep.mubr.bf16.mxu1 %v10571_v0 }
  0xc1   : > { %693 = vmatprep.subr.bf16.mxu1 %v7176_v42 }
  0xc4   : > { %694 = vmatpush1.bf16.msra.mxu1 %v7174_v43 }
  0xc5   : > { %1176 = vmatprep.subr.bf16.mxu1 %v9064_v45 }
  0xc7   : > { %712 = vmatmul.mubr.bf16.vlgmr.msra.gmra.mrb[16].mxu1 %v374_v21 }
  0xc8   : > { %721 = vmatprep.mubr.bf16.mxu1 %v10571_v0  ;;  %1177 = vmatpush1.bf16.msra.mxu1 %v9066_v46 }
  0xc9   : > { %1178 = vmatprep.subr.bf16.mxu1 %v9076_v49 }
  0xcc   : > { %1179 = vmatpush1.bf16.msra.mxu1 %v9078_v50 }
  0xcd   : > { %1180 = vmatprep.subr.bf16.mxu1 %v9088_v53 }
  0xcf   : > { %722 = vmatmul.mubr.bf16.gmra.mrb[20].mxu1 %v375_v28 }
  0xd0   : > { %731 = vmatprep.mubr.bf16.mxu1 %v10571_v0  ;;  %1181 = vmatpush1.bf16.msra.mxu1 %v9090_v54 }
  0xd1   : > { %1182 = vmatprep.subr.bf16.mxu1 %v7199_v57 }
  0xd4   : > { %1183 = vmatpush1.bf16.msra.mxu1 %v7197_v58 }
  0xd5   : > { %1184 = vmatprep.subr.bf16.mxu1 %v7205_v61 }
  0xd7   : > { %732 = vmatmul.mubr.bf16.gmra.mrb[24].mxu1 %v376_v35 }
  0xd8   : > { %741 = vmatprep.mubr.bf16.mxu1 %v10571_v0  ;;  %1185 = vmatpush1.bf16.msra.mxu1 %v7203_v62 }
  0xd9   : > { %1186 = vmatprep.subr.bf16.mxu1 %v7211_v2 }
  0xdc   : > { %1187 = vmatpush1.bf16.msra.mxu1 %v7209_v3  ;;  %v9148_v3 = vrot.slane %v587_v60, %v9098_v18 }
  0xdd   : > { %1188 = vmatprep.subr.bf16.mxu1 %v7217_v6 }
  0xdf   : > { %742 = vmatmul.mubr.bf16.gmra.mrb[28].mxu1 %v377_v41 }
  0xe0   : > { %1208 = vmatprep.mubr.bf16.mxu1 %v10571_v0  ;;  %1189 = vmatpush1.bf16.msra.mxu1 %v7215_v7 }
  0xe1   : > { %1190 = vmatprep.subr.bf16.mxu1 %v7223_v10 }
  0xe4   : > { %1191 = vmatpush1.bf16.msra.mxu1 %v7221_v11 }
  0xe5   : > { %1657 = vmatprep.subr.bf16.mxu1 %v7230_v14 }
 0x17a   : > { %v520_v17 = vpop.f32.mrb[0].mxu1 }
 0x17b   : > { %v9100_v19 = vpop.f32.mrb[1].mxu1  ;;  %v9111_v25 = vadd.f32 %v520_v17, %v399_v23 }
 0x17c   : > { %v524_v21 = vpop.f32.mrb[2].mxu1 }
 0x17d   : > { %v9107_v22 = vpop.f32.mrb[3].mxu1  ;;  %10656 = vst [vmem:[#allocation17_spill] sm:$0xff] %v9111_v25  ;;  %v9115_v28 = vadd.f32 %v524_v21, %v399_v23  ;;  %v6389_v30 = vmul.f32 -1.442695, %v9111_v25 }
 0x17f   : > { %10657 = vst [vmem:[#allocation18_spill] sm:$0xff] %v9115_v28  ;;  %v6390_v32 = vmul.f32 -1.442695, %v9115_v28  ;;  %7680 = vpow2.f32 %v6389_v30 }
 0x181   : > { %7682 = vpow2.f32 %v6390_v32 }
 0x182   : > { %v530_v24 = vpop.f32.mrb[4].mxu1 }
 0x183   : > { %v9113_v26 = vpop.f32.mrb[5].mxu1  ;;  %v9120_v31 = vadd.f32 %v530_v24, %v399_v23 }
 0x184   : > { %v534_v27 = vpop.f32.mrb[6].mxu1 }
 0x185   : > { %v9117_v29 = vpop.f32.mrb[7].mxu1  ;;  %10658 = vst [vmem:[#allocation19_spill] sm:$0xff] %v9120_v31  ;;  %v9123_v33 = vadd.f32 %v534_v27, %v399_v23  ;;  %v6391_v37 = vmul.f32 -1.442695, %v9120_v31 }
 0x187   : > { %v6392_v41 = vmul.f32 -1.442695, %v9123_v33  ;;  %7684 = vpow2.f32 %v6391_v37 }
 0x189   : > { %7686 = vpow2.f32 %v6392_v41  ;;  %v7681_v61 = vpop.eup %7680 }
 0x18a   : > { %v540_v34 = vpop.f32.mrb[8].mxu1  ;;  %v792_v4 = vadd.f32 1.0, %v7681_v61 }
 0x18b   : > { %v9125_v35 = vadd.f32 %v540_v34, %v399_v23  ;;  %v9127_v36 = vpop.f32.mrb[9].mxu1  ;;  %v7683_v2 = vpop.eup %7682 }
 0x18c   : > { %v544_v38 = vpop.f32.mrb[10].mxu1  ;;  %v793_v7 = vadd.f32 1.0, %v7683_v2 }
 0x18d   : > { %v9130_v39 = vadd.f32 %v544_v38, %v399_v23  ;;  %v9132_v40 = vpop.f32.mrb[11].mxu1  ;;  %v6393_v42 = vmul.f32 -1.442695, %v9125_v35 }
 0x18f   : > { %v6394_v43 = vmul.f32 -1.442695, %v9130_v39  ;;  %7688 = vpow2.f32 %v6393_v42 }
 0x191   : > { %7690 = vpow2.f32 %v6394_v43  ;;  %v7685_v6 = vpop.eup %7684 }
 0x192   : > { %v550_v56 = vpop.f32.mrb[12].mxu1  ;;  %v794_v15 = vadd.f32 1.0, %v7685_v6 }
 0x193   : > { %v9137_v57 = vadd.f32 %v550_v56, %v399_v23  ;;  %v9139_v58 = vpop.f32.mrb[13].mxu1  ;;  %v7687_v11 = vpop.eup %7686 }
 0x194   : > { %v554_v59 = vpop.f32.mrb[14].mxu1  ;;  %v795_v27 = vadd.f32 1.0, %v7687_v11 }
 0x195   : > { %v6395_v62 = vmul.f32 -1.442695, %v9137_v57  ;;  %v555_v63 = vpop.f32.mrb[15].mxu1 }
 0x197   : > { %7692 = vpow2.f32 %v6395_v62 }
 0x198   : > { %7694 = vrcp.f32 %v792_v4 }
 0x199   : > { %v7689_v14 = vpop.eup %7688 }
 0x19a   : > { %v713_v8 = vpop.f32.mrb[16].mxu1  ;;  %v796_v30 = vadd.f32 1.0, %v7689_v14 }
 0x19b   : > { %v9154_v9 = vadd.f32 %v713_v8, %v9148_v3  ;;  %v715_v10 = vpop.f32.mrb[17].mxu1  ;;  %v7691_v24 = vpop.eup %7690 }
 0x19c   : > { %v9157_v12 = vadd.f32 %v715_v10, %v9151_v5  ;;  %v717_v13 = vpop.f32.mrb[18].mxu1  ;;  %v797_v37 = vadd.f32 1.0, %v7691_v24 }
 0x19d   : > { %10660 = vst [vmem:[#allocation21_spill] sm:$0xff] %v9154_v9  ;;  %7696 = vtanh.f32 %v9154_v9  ;;  %v9161_v16 = vadd.f32 %v717_v13, %v9148_v3  ;;  %v719_v17 = vpop.f32.mrb[19].mxu1 }
 0x19e   : > { %10661 = vst [vmem:[#allocation22_spill] sm:$0xff] %v9157_v12  ;;  %7698 = vrcp.f32 %v793_v7  ;;  %v6396_v21 = vmul.f32 -1.442695, %v9157_v12  ;;  %v9165_v23 = vadd.f32 %v719_v17, %v9151_v5 }
 0x19f   : > { %10662 = vst [vmem:[#allocation23_spill] sm:$0xff] %v9161_v16  ;;  %7700 = vtanh.f32 %v9161_v16 }
 0x1a0   : > { %10663 = vst [vmem:[#allocation24_spill] sm:$0xff] %v9165_v23  ;;  %7702 = vpow2.f32 %v6396_v21  ;;  %v6397_v32 = vmul.f32 -1.442695, %v9165_v23 }
 0x1a1   : > { %7704 = vrcp.f32 %v794_v15  ;;  %v7693_v34 = vpop.eup %7692 }
 0x1a2   : > { %7706 = vpow2.f32 %v6397_v32  ;;  %v723_v38 = vpop.f32.mrb[20].mxu1  ;;  %v798_v59 = vadd.f32 1.0, %v7693_v34  ;;  %v7695_v62 = vpop.eup %7694 }
 0x1a3   : > { %7708 = vrcp.f32 %v795_v27  ;;  %v9170_v41 = vadd.f32 %v723_v38, %v9148_v3  ;;  %v725_v42 = vpop.f32.mrb[21].mxu1 }
 0x1a4   : > { %7710 = vrcp.f32 %v796_v30  ;;  %v9173_v43 = vadd.f32 %v725_v42, %v9151_v5  ;;  %v727_v56 = vpop.f32.mrb[22].mxu1 }
 0x1a5   : > { %7712 = vtanh.f32 %v9170_v41  ;;  %v9177_v60 = vadd.f32 %v727_v56, %v9148_v3  ;;  %v729_v61 = vpop.f32.mrb[23].mxu1 }
 0x1a6   : > { %7714 = vrcp.f32 %v797_v37  ;;  %v6398_v63 = vmul.f32 -1.442695, %v9173_v43  ;;  %v9181_v2 = vadd.f32 %v729_v61, %v9151_v5 }
 0x1a7   : > { %v7697_v4 = vpop.eup %7696  ;;  %7716 = vtanh.f32 %v9177_v60 }
 0x1a8   : > { %v7699_v6 = vpop.eup %7698  ;;  %v9184_v7 = vmul.f32 %v7697_v4, %v7695_v62  ;;  %7718 = vpow2.f32 %v6398_v63  ;;  %v6399_v8 = vmul.f32 -1.442695, %v9181_v2 }
 0x1a9   : > { %v7701_v10 = vpop.eup %7700  ;;  %7720 = vrcp.f32 %v798_v59 }
 0x1aa   : > { %v7703_v11 = vpop.eup %7702  ;;  %v9187_v13 = vmul.f32 %v7701_v10, %v7699_v6  ;;  %7722 = vpow2.f32 %v6399_v8  ;;  %v733_v14 = vpop.f32.mrb[24].mxu1 }
 0x1ab   : > { %v7705_v15 = vpop.eup %7704  ;;  %v862_v17 = vadd.f32 1.0, %v7703_v11  ;;  %v9190_v21 = vadd.f32 %v733_v14, %v9148_v3  ;;  %v735_v24 = vpop.f32.mrb[25].mxu1  ;;  %7724 = vtanh.f32 %v9184_v7 }
 0x1ac   : > { %v7707_v27 = vpop.eup %7706  ;;  %v9194_v30 = vadd.f32 %v735_v24, %v9151_v5  ;;  %v737_v32 = vpop.f32.mrb[26].mxu1  ;;  %7726 = vtanh.f32 %v9187_v13 }
 0x1ad   : > { %v7709_v34 = vpop.eup %7708  ;;  %7728 = vrcp.f32 %v862_v17  ;;  %v863_v37 = vadd.f32 1.0, %v7707_v27  ;;  %v9198_v38 = vadd.f32 %v737_v32, %v9148_v3  ;;  %v739_v42 = vpop.f32.mrb[27].mxu1 }
 0x1ae   : > { %v7711_v56 = vpop.eup %7710  ;;  %7730 = vtanh.f32 %v9190_v21  ;;  %v6400_v59 = vmul.f32 -1.442695, %v9194_v30  ;;  %v9203_v61 = vadd.f32 %v739_v42, %v9151_v5 }
 0x1af   : > { %10664 = vst [vmem:[#allocation25_spill] sm:$0xff] %v9198_v38  ;;  %v7713_v62 = vpop.eup %7712  ;;  %7732 = vrcp.f32 %v863_v37 }
 0x1b0   : > { %10665 = vst [vmem:[#allocation26_spill] sm:$0xff] %v9203_v61  ;;  %v7715_v63 = vpop.eup %7714  ;;  %v9205_v4 = vmul.f32 %v7713_v62, %v7705_v15  ;;  %7734 = vpow2.f32 %v6400_v59  ;;  %v6401_v6 = vmul.f32 -1.442695, %v9203_v61 }
 0x1b1   : > { %v7717_v8 = vpop.eup %7716  ;;  %7736 = vtanh.f32 %v9198_v38 }
 0x1b2   : > { %10666 = vst [vmem:[#allocation27_spill] sm:$0xff] %v9205_v4  ;;  %v7719_v10 = vpop.eup %7718  ;;  %v9209_v11 = vmul.f32 %v7717_v8, %v7709_v34  ;;  %7738 = vpow2.f32 %v6401_v6  ;;  %v743_v14 = vpop.f32.mrb[28].mxu1 }
 0x1b3   : > { %v7721_v17 = vpop.eup %7720  ;;  %v864_v24 = vadd.f32 1.0, %v7719_v10  ;;  %v9212_v27 = vadd.f32 %v743_v14, %v9148_v3  ;;  %v745_v32 = vpop.f32.mrb[29].mxu1  ;;  %7740 = vtanh.f32 %v9205_v4  ;;  %v7236_v4 = vld [vmem:[#allocation9 + $0x2c] ss:$16 sps:$4 sm:$0xff]  }
 0x1b4   : > { %10667 = vst [vmem:[#allocation28_spill] sm:$0xff] %v9209_v11  ;;  %v7723_v15 = vpop.eup %7722  ;;  %v9216_v37 = vadd.f32 %v745_v32, %v9151_v5  ;;  %v747_v42 = vpop.f32.mrb[30].mxu1  ;;  %7742 = vtanh.f32 %v9209_v11 }
 0x1b5   : > { %10668 = vst [vmem:[#allocation29_spill] sm:$0xff] %v9212_v27  ;;  %v7725_v59 = vpop.eup %7724  ;;  %7744 = vrcp.f32 %v864_v24  ;;  %v865_v34 = vadd.f32 1.0, %v7723_v15  ;;  %v748_v62 = vpop.f32.mrb[31].mxu1  ;;  %v7225_v24 = vld [vmem:[#allocation9] ss:$16 sps:$4 sm:$0xff]  }
 0x1b6   : > { %10669 = vst [vmem:[#allocation30_spill] sm:$0xff] %v9216_v37  ;;  %v7727_v6 = vpop.eup %7726  ;;  %7746 = vtanh.f32 %v9212_v27  ;;  %v6402_v3 = vmul.f32 -1.442695, %v9216_v37  ;;  %v7228_v15 = vld [vmem:[#allocation9 + $0x8] ss:$16 sps:$4 sm:$0xff]  }
 0x1b7   : > { %v7729_v8 = vpop.eup %7728  ;;  %7748 = vrcp.f32 %v865_v34  ;;  %v7233_v37 = vld [vmem:[#allocation9 + $0x24] ss:$16 sps:$4 sm:$0xff]  }
 0x1b8   : > { %v7731_v10 = vpop.eup %7730  ;;  %7750 = vpow2.f32 %v6402_v3  ;;  %v890_v32 = vmul.f32 %v7729_v8, %v7725_v59  ;;  %v7239_v8 = vld [vmem:[#allocation9 + $0x44] ss:$16 sps:$4 sm:$0xff]  }
 0x1b9   : > { %v7733_v14 = vpop.eup %7732  ;;  %v9221_v0 = vmul.f32 %v7731_v10, %v7711_v56  ;;  %v7242_v10 = vld [vmem:[#allocation9 + $0x4c] ss:$16 sps:$4 sm:$0xff]  }
 0x1ba   : > { %v7735_v5 = vpop.eup %7734  ;;  %v891_v42 = vmul.f32 %v7733_v14, %v7727_v6 }
 0x1bb   : > { %v7737_v11 = vpop.eup %7736  ;;  %v866_v61 = vadd.f32 1.0, %v7735_v5  ;;  %7752 = vtanh.f32 %v9221_v0  ;;  %v10672_v5 = vmov 0  }
 0x1bc   : > { %v7739_v62 = vpop.eup %7738  ;;  %v9223_v38 = vmul.f32 %v7737_v11, %v7715_v63  ;;  %v9225_v27 = vpack.c.bf16 %v891_v42, %v890_v32  ;;  %v7231_v63 = vld [vmem:[#allocation9 + $0x20] ss:$16 sps:$4 sm:$0xff]   ;;  %v7234_v11 = vld [vmem:[#allocation9 + $0x28] ss:$16 sps:$4 sm:$0xff]  }
 0x1bd   : > { %v7741_v34 = vpop.eup %7740  ;;  %7754 = vrcp.f32 %v866_v61  ;;  %v867_v56 = vadd.f32 1.0, %v7739_v62 }
 0x1be   : > { %10670 = vst [vmem:[#allocation31_spill] sm:$0xff] %v9223_v38  ;;  %v7743_v3 = vpop.eup %7742  ;;  %1037 = vmatmul.mubr.bf16.vlgmr.msra.gmra.mrb[0].mxu0 %v9225_v27  ;;  %1209 = vmatmul.mubr.bf16.vlgmr.msra.gmra.mrb[32].mxu1 %v9225_v27  ;;  %7756 = vtanh.f32 %v9223_v38 }
 0x1bf   : > { %v7745_v59 = vpop.eup %7744  ;;  %7758 = vrcp.f32 %v867_v56  ;;  %1477 = vmatpush1.bf16.msra.mxu0 %v7225_v24  ;;  %1658 = vmatpush1.bf16.msra.mxu1 %v7228_v15  ;;  %v7237_v24 = vld [vmem:[#allocation9 + $0x40] ss:$16 sps:$4 sm:$0xff]   ;;  %v7240_v15 = vld [vmem:[#allocation9 + $0x48] ss:$16 sps:$4 sm:$0xff]  }
 0x1c0   : > { %v7747_v6 = vpop.eup %7746  ;;  %1478 = vmatprep.subr.bf16.mxu0 %v7233_v37  ;;  %1659 = vmatprep.subr.bf16.mxu1 %v7236_v4  ;;  %v892_v42 = vmul.f32 %v7745_v59, %v7741_v34  ;;  %v7245_v4 = vld [vmem:[#allocation9 + $0x64] ss:$16 sps:$4 sm:$0xff]   ;;  %v7248_v37 = vld [vmem:[#allocation9 + $0x6c] ss:$16 sps:$4 sm:$0xff]   ;;  %v7246_v59 = vld [vmem:[#allocation9 + $0x68] ss:$16 sps:$4 sm:$0xff]  }
 0x1c1   : > { %v7749_v61 = vpop.eup %7748  ;;  %v9231_v14 = vmul.f32 %v7747_v6, %v7721_v17  ;;  %1044 = vmatprep.mubr.bf16.mxu0 %v10672_v5  ;;  %1218 = vmatprep.mubr.bf16.mxu1 %v10672_v5  ;;  %v7254_v6 = vld [vmem:[#allocation9 + $0x8c] ss:$16 sps:$4 sm:$0xff]  }
 0x1c2   : > { %v7751_v32 = vpop.eup %7750  ;;  %v893_v62 = vmul.f32 %v7749_v61, %v7743_v3  ;;  %v7243_v3 = vld [vmem:[#allocation9 + $0x60] ss:$16 sps:$4 sm:$0xff]  }
 0x1c3   : > { %10671 = vst [vmem:[#allocation32_spill] sm:$0xff] %v9231_v14  ;;  %v868_v56 = vadd.f32 1.0, %v7751_v32  ;;  %1479 = vmatpush1.bf16.msra.mxu0 %v7231_v63  ;;  %1660 = vmatpush1.bf16.msra.mxu1 %v7234_v11  ;;  %7760 = vtanh.f32 %v9231_v14  ;;  %v7251_v11 = vld [vmem:[#allocation9 + $0x84] ss:$16 sps:$4 sm:$0xff]   ;;  %v7249_v32 = vld [vmem:[#allocation9 + $0x80] ss:$16 sps:$4 sm:$0xff]  }
 0x1c4   : > { %v9235_v38 = vpack.c.bf16 %v893_v62, %v892_v42  ;;  %1480 = vmatprep.subr.bf16.mxu0 %v7239_v8  ;;  %1661 = vmatprep.subr.bf16.mxu1 %v7242_v10  ;;  %v7252_v42 = vld [vmem:[#allocation9 + $0x88] ss:$16 sps:$4 sm:$0xff]  }
 0x1c5   : > { %7762 = vrcp.f32 %v868_v56  ;;  %v7753_v17 = vpop.eup %7752  ;;  %v7257_v56 = vld [vmem:[#allocation9 + $0xa4] ss:$16 sps:$4 sm:$0xff]   ;;  %v7258_v14 = vld [vmem:[#allocation9 + $0xa8] ss:$16 sps:$4 sm:$0xff]  }
 0x1c6   : > { %1045 = vmatmul.mubr.bf16.gmra.mrb[4].mxu0 %v9235_v38  ;;  %1219 = vmatmul.mubr.bf16.gmra.mrb[36].mxu1 %v9235_v38 }
 0x1c7   : > { %v7755_v34 = vpop.eup %7754  ;;  %1481 = vmatpush1.bf16.msra.mxu0 %v7237_v24  ;;  %1662 = vmatpush1.bf16.msra.mxu1 %v7240_v15  ;;  %v7260_v24 = vld [vmem:[#allocation9 + $0xac] ss:$16 sps:$4 sm:$0xff]  }
 0x1c8   : > { %v7757_v63 = vpop.eup %7756  ;;  %1482 = vmatprep.subr.bf16.mxu0 %v7245_v4  ;;  %1663 = vmatprep.subr.bf16.mxu1 %v7248_v37  ;;  %v894_v10 = vmul.f32 %v7755_v34, %v7753_v17  ;;  %v7255_v37 = vld [vmem:[#allocation9 + $0xa0] ss:$16 sps:$4 sm:$0xff]   ;;  %v7263_v34 = vld [vmem:[#allocation9 + $0xc4] ss:$16 sps:$4 sm:$0xff]  }
 0x1c9   : > { %v7759_v8 = vpop.eup %7758  ;;  %1052 = vmatprep.mubr.bf16.mxu0 %v10672_v5  ;;  %1228 = vmatprep.mubr.bf16.mxu1 %v10672_v5 }
 0x1ca   : > { %v895_v61 = vmul.f32 %v7759_v8, %v7757_v63  ;;  %v7264_v63 = vld [vmem:[#allocation9 + $0xc8] ss:$16 sps:$4 sm:$0xff]   ;;  %v7272_v8 = vld [vmem:[#allocation9 + $0xec] ss:$16 sps:$4 sm:$0xff]  }
 0x1cb   : > { %1483 = vmatpush1.bf16.msra.mxu0 %v7243_v3  ;;  %1664 = vmatpush1.bf16.msra.mxu1 %v7246_v59  ;;  %v7266_v3 = vld [vmem:[#allocation9 + $0xcc] ss:$16 sps:$4 sm:$0xff]   ;;  %v7261_v59 = vld [vmem:[#allocation9 + $0xc0] ss:$16 sps:$4 sm:$0xff]  }
 0x1cc   : > { %v899_v62 = vpack.c.bf16 %v895_v61, %v894_v10  ;;  %1484 = vmatprep.subr.bf16.mxu0 %v7251_v11  ;;  %1665 = vmatprep.subr.bf16.mxu1 %v7254_v6  ;;  %v7269_v6 = vld [vmem:[#allocation9 + $0xe4] ss:$16 sps:$4 sm:$0xff]   ;;  %v7267_v10 = vld [vmem:[#allocation9 + $0xe0] ss:$16 sps:$4 sm:$0xff]   ;;  %v7270_v61 = vld [vmem:[#allocation9 + $0xe8] ss:$16 sps:$4 sm:$0xff]  }
 0x1cd   : > { %v7761_v15 = vpop.eup %7760 }
 0x1ce   : > { %1053 = vmatmul.mubr.bf16.gmra.mrb[8].mxu0 %v899_v62  ;;  %1229 = vmatmul.mubr.bf16.gmra.mrb[40].mxu1 %v899_v62 }
 0x1cf   : > { %v7763_v4 = vpop.eup %7762  ;;  %1485 = vmatpush1.bf16.msra.mxu0 %v7249_v32  ;;  %1666 = vmatpush1.bf16.msra.mxu1 %v7252_v42  ;;  %v7294_v32 = vld [vmem:[#allocation10 + $0xc8] ss:$16 sps:$4 sm:$0xff]   ;;  %v7299_v42 = vld [vmem:[#allocation10 + $0xe4] ss:$16 sps:$4 sm:$0xff]  }
 0x1d0   : > { %1486 = vmatprep.subr.bf16.mxu0 %v7257_v56  ;;  %1667 = vmatprep.subr.bf16.mxu1 %v7260_v24  ;;  %v896_v17 = vmul.f32 %v7763_v4, %v7761_v15  ;;  %v7297_v56 = vld [vmem:[#allocation10 + $0xe0] ss:$16 sps:$4 sm:$0xff]   ;;  %v7300_v24 = vld [vmem:[#allocation10 + $0xe8] ss:$16 sps:$4 sm:$0xff]   ;;  %v7305_v15 = vld [vmem:[#allocation10 + $0x104] ss:$16 sps:$4 sm:$0xff]  }
 0x1d1   : > { %1060 = vmatprep.mubr.bf16.mxu0 %v10672_v5  ;;  %1238 = vmatprep.mubr.bf16.mxu1 %v10672_v5  ;;  %v7308_v4 = vld [vmem:[#allocation10 + $0x10c] ss:$16 sps:$4 sm:$0xff]  }
 0x1d2   : > { %v900_v11 = vpack.c.bf16 %v896_v17, %v896_v17  ;;  %v7306_v17 = vld [vmem:[#allocation10 + $0x108] ss:$16 sps:$4 sm:$0xff]  }
 0x1d3   : > { %1487 = vmatpush1.bf16.msra.mxu0 %v7255_v37  ;;  %1668 = vmatpush1.bf16.msra.mxu1 %v7258_v14  ;;  %v7291_v14 = vld [vmem:[#allocation10 + $0xc0] ss:$16 sps:$4 sm:$0xff]  }
 0x1d4   : > { %1488 = vmatprep.subr.bf16.mxu0 %v7263_v34  ;;  %1669 = vmatprep.subr.bf16.mxu1 %v7266_v3  ;;  %v7303_v37 = vld [vmem:[#allocation10 + $0x100] ss:$16 sps:$4 sm:$0xff]   ;;  %v7311_v34 = vld [vmem:[#allocation10 + $0x124] ss:$16 sps:$4 sm:$0xff]   ;;  %v7314_v3 = vld [vmem:[#allocation10 + $0x12c] ss:$16 sps:$4 sm:$0xff]  }
 0x1d6   : > { %1061 = vmatmul.mubr.bf16.gmra.mrb[12].mxu0 %v900_v11  ;;  %1239 = vmatmul.mubr.bf16.gmra.mrb[44].mxu1 %v900_v11 }
 0x1d7   : > { %1489 = vmatpush1.bf16.msra.mxu0 %v7261_v59  ;;  %1670 = vmatpush1.bf16.msra.mxu1 %v7264_v63  ;;  %v7309_v59 = vld [vmem:[#allocation10 + $0x120] ss:$16 sps:$4 sm:$0xff]   ;;  %v7312_v63 = vld [vmem:[#allocation10 + $0x128] ss:$16 sps:$4 sm:$0xff]  }
 0x1d8   : > { %1490 = vmatprep.subr.bf16.mxu0 %v7269_v6  ;;  %1671 = vmatprep.subr.bf16.mxu1 %v7272_v8  ;;  %v7320_v6 = vld [vmem:[#allocation10 + $0x14c] ss:$16 sps:$4 sm:$0xff]   ;;  %v7315_v8 = vld [vmem:[#allocation10 + $0x140] ss:$16 sps:$4 sm:$0xff]  }
 0x1d9   : > { %1508 = vmatprep.mubr.bf16.mxu0 %v10672_v5  ;;  %1689 = vmatprep.mubr.bf16.mxu1 %v10672_v5 }
 0x1db   : > { %1491 = vmatpush1.bf16.msra.mxu0 %v7267_v10  ;;  %1672 = vmatpush1.bf16.msra.mxu1 %v7270_v61  ;;  %v7318_v10 = vld [vmem:[#allocation10 + $0x148] ss:$16 sps:$4 sm:$0xff]   ;;  %v7323_v61 = vld [vmem:[#allocation10 + $0x164] ss:$16 sps:$4 sm:$0xff]  }
 0x1dc   : > { %2216 = vmatprep.subr.bf16.mxu0 %v9062_v44  ;;  %2491 = vmatprep.subr.bf16.mxu1 %v9064_v45  ;;  %v7275_v44 = vld [vmem:[#allocation10 + $0x64] ss:$16 sps:$4 sm:$0xff]   ;;  %v7278_v45 = vld [vmem:[#allocation10 + $0x6c] ss:$16 sps:$4 sm:$0xff]  }
 0x1de   : > { %1509 = vmatmul.mubr.bf16.vlgmr.msra.gmra.mrb[16].mxu0 %v9225_v27  ;;  %1690 = vmatmul.mubr.bf16.vlgmr.msra.gmra.mrb[48].mxu1 %v9225_v27  ;;  %v7296_v27 = vld [vmem:[#allocation10 + $0xcc] ss:$16 sps:$4 sm:$0xff]  }
 0x1df   : > { %1518 = vmatprep.mubr.bf16.mxu0 %v10672_v5  ;;  %1699 = vmatprep.mubr.bf16.mxu1 %v10672_v5 }
 0x1e0   : > { %2217 = vmatpush1.bf16.msra.mxu0 %v9068_v47  ;;  %2492 = vmatpush1.bf16.msra.mxu1 %v9066_v46  ;;  %v7273_v46 = vld [vmem:[#allocation10 + $0x60] ss:$16 sps:$4 sm:$0xff]   ;;  %v7276_v47 = vld [vmem:[#allocation10 + $0x68] ss:$16 sps:$4 sm:$0xff]  }
 0x1e1   : > { %2218 = vmatprep.subr.bf16.mxu0 %v9074_v48  ;;  %2493 = vmatprep.subr.bf16.mxu1 %v9076_v49  ;;  %v7281_v48 = vld [vmem:[#allocation10 + $0x84] ss:$16 sps:$4 sm:$0xff]   ;;  %v7284_v49 = vld [vmem:[#allocation10 + $0x8c] ss:$16 sps:$4 sm:$0xff]  }
 0x1e4   : > { %2219 = vmatpush1.bf16.msra.mxu0 %v9080_v51  ;;  %2494 = vmatpush1.bf16.msra.mxu1 %v9078_v50  ;;  %v7279_v50 = vld [vmem:[#allocation10 + $0x80] ss:$16 sps:$4 sm:$0xff]   ;;  %v7282_v51 = vld [vmem:[#allocation10 + $0x88] ss:$16 sps:$4 sm:$0xff]  }
 0x1e5   : > { %2220 = vmatprep.subr.bf16.mxu0 %v9086_v52  ;;  %2495 = vmatprep.subr.bf16.mxu1 %v9088_v53  ;;  %v7287_v52 = vld [vmem:[#allocation10 + $0xa4] ss:$16 sps:$4 sm:$0xff]   ;;  %v7290_v53 = vld [vmem:[#allocation10 + $0xac] ss:$16 sps:$4 sm:$0xff]  }
 0x1e6   : > { %1519 = vmatmul.mubr.bf16.gmra.mrb[20].mxu0 %v9235_v38  ;;  %1700 = vmatmul.mubr.bf16.gmra.mrb[52].mxu1 %v9235_v38  ;;  %v7293_v38 = vld [vmem:[#allocation10 + $0xc4] ss:$16 sps:$4 sm:$0xff]  }
 0x1e7   : > { %1528 = vmatprep.mubr.bf16.mxu0 %v10672_v5  ;;  %1709 = vmatprep.mubr.bf16.mxu1 %v10672_v5 }
 0x1e8   : > { %2221 = vmatpush1.bf16.msra.mxu0 %v9092_v55  ;;  %2496 = vmatpush1.bf16.msra.mxu1 %v9090_v54  ;;  %v7285_v54 = vld [vmem:[#allocation10 + $0xa0] ss:$16 sps:$4 sm:$0xff]   ;;  %v7288_v55 = vld [vmem:[#allocation10 + $0xa8] ss:$16 sps:$4 sm:$0xff]  }
 0x1e9   : > { %2222 = vmatprep.subr.bf16.mxu0 %v7275_v44  ;;  %2497 = vmatprep.subr.bf16.mxu1 %v7278_v45  ;;  %v7326_v44 = vld [vmem:[#allocation10 + $0x16c] ss:$16 sps:$4 sm:$0xff]   ;;  %v7321_v45 = vld [vmem:[#allocation10 + $0x160] ss:$16 sps:$4 sm:$0xff]  }
 0x1ec   : > { %2223 = vmatpush1.bf16.msra.mxu0 %v7273_v46  ;;  %2498 = vmatpush1.bf16.msra.mxu1 %v7276_v47  ;;  %v7324_v46 = vld [vmem:[#allocation10 + $0x168] ss:$16 sps:$4 sm:$0xff]   ;;  %v7329_v47 = vld [vmem:[#allocation10 + $0x184] ss:$16 sps:$4 sm:$0xff]  }
 0x1ed   : > { %2224 = vmatprep.subr.bf16.mxu0 %v7281_v48  ;;  %2499 = vmatprep.subr.bf16.mxu1 %v7284_v49  ;;  %v7332_v48 = vld [vmem:[#allocation10 + $0x18c] ss:$16 sps:$4 sm:$0xff]   ;;  %v7327_v49 = vld [vmem:[#allocation10 + $0x180] ss:$16 sps:$4 sm:$0xff]  }
 0x1ee   : > { %1529 = vmatmul.mubr.bf16.gmra.mrb[24].mxu0 %v899_v62  ;;  %1710 = vmatmul.mubr.bf16.gmra.mrb[56].mxu1 %v899_v62  ;;  %v7302_v62 = vld [vmem:[#allocation10 + $0xec] ss:$16 sps:$4 sm:$0xff]  }
 0x1ef   : > { %1538 = vmatprep.mubr.bf16.mxu0 %v10672_v5  ;;  %1719 = vmatprep.mubr.bf16.mxu1 %v10672_v5 }
 0x1f0   : > { %2225 = vmatpush1.bf16.msra.mxu0 %v7279_v50  ;;  %2500 = vmatpush1.bf16.msra.mxu1 %v7282_v51  ;;  %v7330_v50 = vld [vmem:[#allocation10 + $0x188] ss:$16 sps:$4 sm:$0xff]   ;;  %v7335_v51 = vld [vmem:[#allocation10 + $0x1a4] ss:$16 sps:$4 sm:$0xff]  }
 0x1f1   : > { %2226 = vmatprep.subr.bf16.mxu0 %v7287_v52  ;;  %2501 = vmatprep.subr.bf16.mxu1 %v7290_v53  ;;  %v7338_v52 = vld [vmem:[#allocation10 + $0x1ac] ss:$16 sps:$4 sm:$0xff]   ;;  %v7333_v53 = vld [vmem:[#allocation10 + $0x1a0] ss:$16 sps:$4 sm:$0xff]  }
 0x1f4   : > { %2227 = vmatpush1.bf16.msra.mxu0 %v7285_v54  ;;  %2502 = vmatpush1.bf16.msra.mxu1 %v7288_v55  ;;  %v7336_v54 = vld [vmem:[#allocation10 + $0x1a8] ss:$16 sps:$4 sm:$0xff]   ;;  %v7341_v55 = vld [vmem:[#allocation10 + $0x1c4] ss:$16 sps:$4 sm:$0xff]  }
 0x1f5   : > { %2228 = vmatprep.subr.bf16.mxu0 %v7293_v38  ;;  %2503 = vmatprep.subr.bf16.mxu1 %v7296_v27  ;;  %v7344_v38 = vld [vmem:[#allocation10 + $0x1cc] ss:$16 sps:$4 sm:$0xff]   ;;  %v7339_v27 = vld [vmem:[#allocation10 + $0x1c0] ss:$16 sps:$4 sm:$0xff]  }
 0x1f6   : > { %1539 = vmatmul.mubr.bf16.gmra.mrb[28].mxu0 %v900_v11  ;;  %1720 = vmatmul.mubr.bf16.gmra.mrb[60].mxu1 %v900_v11  ;;  %v7317_v11 = vld [vmem:[#allocation10 + $0x144] ss:$16 sps:$4 sm:$0xff]  }
 0x1f8   : > { %2229 = vmatpush1.bf16.msra.mxu0 %v7291_v14  ;;  %2504 = vmatpush1.bf16.msra.mxu1 %v7294_v32  ;;  %v7342_v14 = vld [vmem:[#allocation10 + $0x1c8] ss:$16 sps:$4 sm:$0xff]   ;;  %v7347_v32 = vld [vmem:[#allocation10 + $0x1e4] ss:$16 sps:$4 sm:$0xff]  }
 0x1f9   : > { %2230 = vmatprep.subr.bf16.mxu0 %v7299_v42  ;;  %2505 = vmatprep.subr.bf16.mxu1 %v7302_v62  ;;  %v7350_v42 = vld [vmem:[#allocation10 + $0x1ec] ss:$16 sps:$4 sm:$0xff]   ;;  %v7345_v62 = vld [vmem:[#allocation10 + $0x1e0] ss:$16 sps:$4 sm:$0xff]  }
 0x1fc   : > { %2231 = vmatpush1.bf16.msra.mxu0 %v7297_v56  ;;  %2506 = vmatpush1.bf16.msra.mxu1 %v7300_v24  ;;  %v7348_v56 = vld [vmem:[#allocation10 + $0x1e8] ss:$16 sps:$4 sm:$0xff]  }
 0x1fd   : > { %2232 = vmatprep.subr.bf16.mxu0 %v7305_v15  ;;  %2507 = vmatprep.subr.bf16.mxu1 %v7308_v4  ;;  %v917_v24 = vld [vmem:[%s10564_s5] sm:$0x3]  ;;  %v1084_v15 = vld [vmem:[%s10564_s5 + $0x2] sm:$0x3]  ;;  %v7356_v4 = vld [vmem:[#allocation9 + $0x4] ss:$16 sps:$4 sm:$0xff]  }
 0x200   : > { %2233 = vmatpush1.bf16.msra.mxu0 %v7303_v37  ;;  %2508 = vmatpush1.bf16.msra.mxu1 %v7306_v17  ;;  %v7359_v37 = vld [vmem:[#allocation9 + $0xc] ss:$16 sps:$4 sm:$0xff]   ;;  %v9275_v17 = vrot.slane %v917_v24, %v9098_v18 }
 0x201   : > { %2234 = vmatprep.subr.bf16.mxu0 %v7311_v34  ;;  %2509 = vmatprep.subr.bf16.mxu1 %v7314_v3  ;;  %v9278_v34 = vrot.slane %v1084_v15, %v9145_v1 }
 0x204   : > { %2235 = vmatpush1.bf16.msra.mxu0 %v7309_v59  ;;  %2510 = vmatpush1.bf16.msra.mxu1 %v7312_v63 }
 0x205   : > { %2236 = vmatprep.subr.bf16.mxu0 %v7317_v11  ;;  %2511 = vmatprep.subr.bf16.mxu1 %v7320_v6 }
 0x208   : > { %2237 = vmatpush1.bf16.msra.mxu0 %v7315_v8  ;;  %2512 = vmatpush1.bf16.msra.mxu1 %v7318_v10 }
 0x209   : > { %2238 = vmatprep.subr.bf16.mxu0 %v7323_v61  ;;  %2513 = vmatprep.subr.bf16.mxu1 %v7326_v44 }
 0x20c   : > { %2239 = vmatpush1.bf16.msra.mxu0 %v7321_v45  ;;  %2514 = vmatpush1.bf16.msra.mxu1 %v7324_v46 }
 0x20d   : > { %2240 = vmatprep.subr.bf16.mxu0 %v7329_v47  ;;  %2515 = vmatprep.subr.bf16.mxu1 %v7332_v48  ;;  %v9284_v48 = vrot.slane %v1084_v15, %v9098_v18 }
 0x210   : > { %2241 = vmatpush1.bf16.msra.mxu0 %v7327_v49  ;;  %2516 = vmatpush1.bf16.msra.mxu1 %v7330_v50 }
 0x211   : > { %2242 = vmatprep.subr.bf16.mxu0 %v7335_v51  ;;  %2517 = vmatprep.subr.bf16.mxu1 %v7338_v52 }
 0x214   : > { %2243 = vmatpush1.bf16.msra.mxu0 %v7333_v53  ;;  %2518 = vmatpush1.bf16.msra.mxu1 %v7336_v54 }
 0x215   : > { %2244 = vmatprep.subr.bf16.mxu0 %v7341_v55  ;;  %2519 = vmatprep.subr.bf16.mxu1 %v7344_v38 }
 0x218   : > { %2245 = vmatpush1.bf16.msra.mxu0 %v7339_v27  ;;  %2520 = vmatpush1.bf16.msra.mxu1 %v7342_v14 }
 0x219   : > { %2246 = vmatprep.subr.bf16.mxu0 %v7347_v32  ;;  %2521 = vmatprep.subr.bf16.mxu1 %v7350_v42 }
 0x21c   : > { %2247 = vmatpush1.bf16.msra.mxu0 %v7345_v62  ;;  %2522 = vmatpush1.bf16.msra.mxu1 %v7348_v56 }
 0x21d   : > { %2848 = vmatprep.subr.bf16.mxu0 %v7356_v4  ;;  %3029 = vmatprep.subr.bf16.mxu1 %v7359_v37 }
 0x291   : > { %v1038_v3 = vpop.f32.mrb[0].mxu0  ;;  %v1210_v59 = vpop.f32.mrb[32].mxu1 }
 0x292   : > { %v1039_v63 = vadd.f32 %v1038_v3, %v9275_v17  ;;  %v1040_v11 = vpop.f32.mrb[1].mxu0  ;;  %v1212_v6 = vpop.f32.mrb[33].mxu1  ;;  %v1211_v53 = vadd.f32 %v1210_v59, %v9284_v48 }
 0x293   : > { %v1213_v8 = vadd.f32 %v1212_v6, %v9278_v34  ;;  %v1041_v10 = vpop.f32.mrb[2].mxu0  ;;  %v1214_v61 = vpop.f32.mrb[34].mxu1 }
 0x294   : > { %v6435_v44 = vmul.f32 -1.442695, %v1039_v63  ;;  %v1042_v45 = vadd.f32 %v1041_v10, %v9275_v17  ;;  %v1043_v46 = vpop.f32.mrb[3].mxu0  ;;  %v1216_v47 = vpop.f32.mrb[35].mxu1  ;;  %v1215_v37 = vadd.f32 %v1214_v61, %v9284_v48 }
 0x295   : > { %v6442_v49 = vmul.f32 -1.442695, %v1213_v8  ;;  %v1217_v50 = vadd.f32 %v1216_v47, %v9278_v34 }
 0x296   : > { %7764 = vpow2.f32 %v6435_v44  ;;  %v6436_v51 = vmul.f32 -1.442695, %v1042_v45 }
 0x297   : > { %7766 = vpow2.f32 %v6442_v49  ;;  %v6443_v52 = vmul.f32 -1.442695, %v1217_v50 }
 0x298   : > { %7768 = vpow2.f32 %v6436_v51 }
 0x299   : > { %v1046_v54 = vpop.f32.mrb[4].mxu0  ;;  %v1220_v55 = vpop.f32.mrb[36].mxu1  ;;  %7770 = vpow2.f32 %v6443_v52 }
 0x29a   : > { %v1047_v38 = vadd.f32 %v1046_v54, %v9275_v17  ;;  %v1048_v27 = vpop.f32.mrb[5].mxu0  ;;  %v1222_v14 = vpop.f32.mrb[37].mxu1  ;;  %7772 = vtanh.f32 %v1211_v53  ;;  %v1221_v63 = vadd.f32 %v1220_v55, %v9284_v48 }
 0x29b   : > { %v1223_v32 = vadd.f32 %v1222_v14, %v9278_v34  ;;  %v1049_v42 = vpop.f32.mrb[6].mxu0  ;;  %v1224_v62 = vpop.f32.mrb[38].mxu1 }
 0x29c   : > { %v6437_v56 = vmul.f32 -1.442695, %v1047_v38  ;;  %v1050_v24 = vadd.f32 %v1049_v42, %v9275_v17  ;;  %v1051_v15 = vpop.f32.mrb[7].mxu0  ;;  %v1226_v4 = vpop.f32.mrb[39].mxu1  ;;  %v1225_v53 = vadd.f32 %v1224_v62, %v9284_v48 }
 0x29d   : > { %v6444_v3 = vmul.f32 -1.442695, %v1223_v32  ;;  %v1227_v59 = vadd.f32 %v1226_v4, %v9278_v34 }
 0x29e   : > { %7774 = vpow2.f32 %v6437_v56  ;;  %v6438_v11 = vmul.f32 -1.442695, %v1050_v24 }
 0x29f   : > { %7776 = vpow2.f32 %v6444_v3  ;;  %v6445_v8 = vmul.f32 -1.442695, %v1227_v59 }
 0x2a0   : > { %v7765_v6 = vpop.eup %7764  ;;  %7778 = vpow2.f32 %v6438_v11 }
 0x2a1   : > { %v7767_v10 = vpop.eup %7766  ;;  %v1268_v44 = vadd.f32 1.0, %v7765_v6  ;;  %7780 = vtanh.f32 %v1215_v37  ;;  %v1054_v45 = vpop.f32.mrb[8].mxu0 }
 0x2a2   : > { %v1230_v46 = vpop.f32.mrb[40].mxu1  ;;  %v7769_v47 = vpop.eup %7768  ;;  %7782 = vtanh.f32 %v1221_v63  ;;  %v1055_v61 = vadd.f32 %v1054_v45, %v9275_v17  ;;  %v1324_v51 = vadd.f32 1.0, %v7767_v10 }
 0x2a3   : > { %v1056_v49 = vpop.f32.mrb[9].mxu0  ;;  %v1232_v50 = vpop.f32.mrb[41].mxu1  ;;  %7784 = vrcp.f32 %v1268_v44  ;;  %v1269_v52 = vadd.f32 1.0, %v7769_v47  ;;  %v1231_v10 = vadd.f32 %v1230_v46, %v9284_v48 }
 0x2a4   : > { %v1057_v54 = vpop.f32.mrb[10].mxu0  ;;  %v1234_v55 = vpop.f32.mrb[42].mxu1  ;;  %7786 = vpow2.f32 %v6445_v8  ;;  %v6439_v27 = vmul.f32 -1.442695, %v1055_v61  ;;  %v1233_v14 = vadd.f32 %v1232_v50, %v9278_v34 }
 0x2a5   : > { %v7771_v38 = vpop.eup %7770  ;;  %v1058_v32 = vadd.f32 %v1057_v54, %v9275_v17  ;;  %v1059_v42 = vpop.f32.mrb[11].mxu0  ;;  %7788 = vrcp.f32 %v1269_v52 }
 0x2a6   : > { %v1236_v56 = vpop.f32.mrb[43].mxu1  ;;  %v1325_v24 = vadd.f32 1.0, %v7771_v38  ;;  %7790 = vpow2.f32 %v6439_v27  ;;  %v7773_v4 = vpop.eup %7772  ;;  %v6446_v62 = vmul.f32 -1.442695, %v1233_v14 }
 0x2a7   : > { %v6440_v15 = vmul.f32 -1.442695, %v1058_v32  ;;  %7792 = vtanh.f32 %v1225_v53  ;;  %v1237_v63 = vadd.f32 %v1236_v56, %v9278_v34  ;;  %v9307_v56 = vrot.slane %v9105_v20, %v9145_v1 }
 0x2a8   : > { %v7775_v37 = vpop.eup %7774  ;;  %7794 = vrcp.f32 %v1324_v51 }
 0x2a9   : > { %v7777_v3 = vpop.eup %7776  ;;  %7796 = vrcp.f32 %v1325_v24  ;;  %v1270_v59 = vadd.f32 1.0, %v7775_v37  ;;  %v1062_v11 = vpop.f32.mrb[12].mxu0  ;;  %v6447_v14 = vmul.f32 -1.442695, %v1237_v63 }
 0x2aa   : > { %v9299_v6 = vpop.f32.mrb[44].mxu1  ;;  %v7779_v8 = vpop.eup %7778  ;;  %7798 = vpow2.f32 %v6440_v15  ;;  %v1326_v61 = vadd.f32 1.0, %v7777_v3  ;;  %v1063_v53 = vadd.f32 %v1062_v11, %v9275_v17  ;;  %v1235_v3 = vadd.f32 %v1234_v55, %v9284_v48 }
 0x2ab   : > { %v1064_v44 = vpop.f32.mrb[13].mxu0  ;;  %v1242_v45 = vpop.f32.mrb[45].mxu1  ;;  %7800 = vrcp.f32 %v1270_v59  ;;  %v1271_v49 = vadd.f32 1.0, %v7779_v8 }
 0x2ac   : > { %v7781_v47 = vpop.eup %7780  ;;  %v1065_v50 = vpop.f32.mrb[14].mxu0  ;;  %7802 = vpow2.f32 %v6446_v62  ;;  %v6441_v17 = vmul.f32 -1.442695, %v1063_v53 }
 0x2ad   : > { %v1244_v51 = vpop.f32.mrb[46].mxu1  ;;  %v7783_v52 = vpop.eup %7782  ;;  %7804 = vrcp.f32 %v1271_v49 }
 0x2ae   : > { %v1066_v54 = vpop.f32.mrb[15].mxu0  ;;  %v1245_v38 = vpop.f32.mrb[47].mxu1  ;;  %7806 = vtanh.f32 %v1231_v10 }
 0x2af   : > { %v7785_v27 = vpop.eup %7784  ;;  %7808 = vrcp.f32 %v1326_v61 }
 0x2b0   : > { %v7787_v32 = vpop.eup %7786  ;;  %v9303_v46 = vmul.f32 %v7785_v27, %v7773_v4  ;;  %v1243_v4 = vadd.f32 %v1242_v45, %v9278_v34 }
 0x2b1   : > { %v7789_v42 = vpop.eup %7788  ;;  %v1510_v59 = vpop.f32.mrb[16].mxu0  ;;  %v1327_v20 = vadd.f32 1.0, %v7787_v32 }
 0x2b2   : > { %v7791_v24 = vpop.eup %7790  ;;  %7810 = vtanh.f32 %v9303_v46  ;;  %v9310_v15 = vmul.f32 %v7789_v42, %v7781_v47  ;;  %v1691_v63 = vpop.f32.mrb[48].mxu1  ;;  %v9317_v47 = vadd.f32 %v9100_v19, %v9307_v56  ;;  %v1511_v61 = vadd.f32 %v1510_v59, %v9111_v25 }
 0x2b3   : > { %v7793_v37 = vpop.eup %7792  ;;  %v1272_v62 = vadd.f32 1.0, %v7791_v24  ;;  %7812 = vpow2.f32 %v6447_v14  ;;  %v1512_v8 = vpop.f32.mrb[17].mxu0  ;;  %v6448_v54 = vmul.f32 -1.442695, %v1243_v4 }
 0x2b4   : > { %v7795_v11 = vpop.eup %7794  ;;  %7814 = vtanh.f32 %v9310_v15  ;;  %v1693_v10 = vpop.f32.mrb[49].mxu1  ;;  %10673 = vst [vmem:[#allocation33_spill] sm:$0xff] %v9317_v47  ;;  %v1513_v38 = vadd.f32 %v1512_v8, %v9317_v47  ;;  %v6488_v32 = vmul.f32 -1.442695, %v1511_v61 }
 0x2b5   : > { %v7797_v44 = vpop.eup %7796  ;;  %7816 = vrcp.f32 %v1272_v62  ;;  %v1514_v55 = vpop.f32.mrb[18].mxu0 }
 0x2b6   : > { %v9320_v49 = vpop.f32.mrb[50].mxu1  ;;  %v7799_v34 = vpop.eup %7798  ;;  %7818 = vpow2.f32 %v6441_v17  ;;  %v1241_v17 = vadd.f32 %v9299_v6, %v9284_v48  ;;  %v1515_v8 = vadd.f32 %v1514_v55, %v9115_v28  ;;  %v1692_v6 = vadd.f32 %v1691_v63, %v9154_v9 }
 0x2b7   : > { %v1516_v45 = vpop.f32.mrb[19].mxu0  ;;  %v9322_v50 = vpop.f32.mrb[51].mxu1  ;;  %v1273_v53 = vadd.f32 1.0, %v7799_v34  ;;  %7820 = vtanh.f32 %v1235_v3  ;;  %v6481_v3 = vmul.f32 -1.442695, %v1513_v38 }
 0x2b8   : > { %v7801_v51 = vpop.eup %7800  ;;  %7822 = vrcp.f32 %v1327_v20 }
 0x2b9   : > { %v7803_v27 = vpop.eup %7802  ;;  %v9325_v19 = vmul.f32 %v7801_v51, %v7783_v52  ;;  %7824 = vrcp.f32 %v1273_v53  ;;  %v1520_v4 = vpop.f32.mrb[20].mxu0  ;;  %v9340_v51 = vadd.f32 %v9107_v22, %v9307_v56 }
 0x2ba   : > { %v7805_v14 = vpop.eup %7804  ;;  %v9332_v59 = vpop.f32.mrb[52].mxu1  ;;  %v1328_v20 = vadd.f32 1.0, %v7803_v27 }
 0x2bb   : > { %v7807_v42 = vpop.eup %7806  ;;  %7826 = vtanh.f32 %v9325_v19  ;;  %v9328_v24 = vmul.f32 %v7805_v14, %v7793_v37  ;;  %v1522_v61 = vpop.f32.mrb[21].mxu0  ;;  %10675 = vst [vmem:[#allocation35_spill] sm:$0xff] %v9340_v51 }
 0x2bc   : > { %v7809_v62 = vpop.eup %7808  ;;  %7828 = vpow2.f32 %v6448_v54  ;;  %v9336_v34 = vpop.f32.mrb[53].mxu1 }
 0x2bd   : > { %10674 = vst [vmem:[#allocation34_spill] sm:$0xff] %v9328_v24  ;;  %v7811_v52 = vpop.eup %7810  ;;  %7830 = vtanh.f32 %v9328_v24  ;;  %v9345_v53 = vpop.f32.mrb[22].mxu0 }
 0x2be   : > { %v7813_v37 = vpop.eup %7812  ;;  %v9342_v48 = vmul.f32 %v7811_v52, %v7795_v11  ;;  %7832 = vpow2.f32 %v6488_v32  ;;  %v9347_v54 = vpop.f32.mrb[54].mxu1  ;;  %v1517_v11 = vadd.f32 %v1516_v45, %v9340_v51  ;;  %v1694_v52 = vadd.f32 %v1693_v10, %v9157_v12 }
 0x2bf   : > { %v7815_v38 = vpop.eup %7814  ;;  %7834 = vtanh.f32 %v1241_v17  ;;  %v9349_v55 = vpop.f32.mrb[23].mxu0  ;;  %v6489_v17 = vmul.f32 -1.442695, %v1515_v8  ;;  %v1329_v24 = vadd.f32 1.0, %v7813_v37  ;;  %v1521_v10 = vadd.f32 %v1520_v4, %v9120_v31 }
 0x2c0   : > { %10676 = vst [vmem:[#allocation36_spill] sm:$0xff] %v9342_v48  ;;  %v9351_v27 = vpop.f32.mrb[55].mxu1  ;;  %v7817_v14 = vpop.eup %7816  ;;  %v6949_v22 = vpack.c.bf16 %v9342_v48, %v9342_v48  ;;  %v9355_v28 = vmul.f32 %v7815_v38, %v7797_v44  ;;  %7836 = vpow2.f32 %v6481_v3  ;;  %v6482_v3 = vmul.f32 -1.442695, %v1517_v11 }
 0x2c1   : > { %v7819_v63 = vpop.eup %7818  ;;  %v9358_v32 = vmul.f32 %v7817_v14, %v7807_v42  ;;  %7838 = vrcp.f32 %v1328_v20  ;;  %v9367_v20 = vpop.f32.mrb[24].mxu0  ;;  %v9373_v37 = vadd.f32 %v9113_v26, %v9307_v56  ;;  %v6495_v14 = vmul.f32 -1.442695, %v1694_v52 }
 0x2c2   : > { %10677 = vst [vmem:[#allocation37_spill] sm:$0xff] %v9355_v28  ;;  %v7821_v9 = vpop.eup %7820  ;;  %1961 = vst [vmem:[#allocation3 + $0x4] sm:$0xf] %v6949_v22  ;;  %v6950_v47 = vpack.c.bf16 %v9355_v28, %v9355_v28  ;;  %v1274_v25 = vadd.f32 1.0, %v7819_v63  ;;  %7840 = vtanh.f32 %v1692_v6  ;;  %v9369_v8 = vpop.f32.mrb[56].mxu1  ;;  %v1696_v4 = vadd.f32 %v9320_v49, %v9161_v16 }
 0x2c3   : > { %10678 = vst [vmem:[#allocation38_spill] sm:$0xff] %v9358_v32  ;;  %v7823_v44 = vpop.eup %7822  ;;  %7842 = vtanh.f32 %v9358_v32  ;;  %10679 = vst [vmem:[#allocation39_spill] sm:$0xff] %v9373_v37  ;;  %v9377_v22 = vpop.f32.mrb[25].mxu0  ;;  %v1523_v52 = vadd.f32 %v1522_v61, %v9373_v37 }
 0x2c4   : > { %v7825_v42 = vpop.eup %7824  ;;  %1962 = vst [vmem:[#allocation3 + $0xc] sm:$0xf] %v6950_v47  ;;  %7844 = vrcp.f32 %v1274_v25  ;;  %v9379_v47 = vpop.f32.mrb[57].mxu1 }
 0x2c5   : > { %v7827_v38 = vpop.eup %7826  ;;  %v9375_v6 = vmul.f32 %v7825_v42, %v7821_v9  ;;  %7846 = vpow2.f32 %v6489_v17  ;;  %v9385_v63 = vpop.f32.mrb[26].mxu0  ;;  %v1698_v9 = vadd.f32 %v9322_v50, %v9165_v23 }
 0x2c6   : > { %v7829_v25 = vpop.eup %7828  ;;  %v9381_v11 = vmul.f32 %v7827_v38, %v7809_v62  ;;  %7848 = vrcp.f32 %v1329_v24  ;;  %v9387_v45 = vpop.f32.mrb[58].mxu1  ;;  %v6490_v38 = vmul.f32 -1.442695, %v1521_v10 }
 0x2c7   : > { %10680 = vst [vmem:[#allocation40_spill] sm:$0xff] %v9375_v6  ;;  %v7831_v26 = vpop.eup %7830  ;;  %7850 = vtanh.f32 %v9375_v6  ;;  %v9393_v17 = vpop.f32.mrb[27].mxu0  ;;  %v1330_v61 = vadd.f32 1.0, %v7829_v25  ;;  %v6496_v32 = vmul.f32 -1.442695, %v1698_v9 }
 0x2c8   : > { %10681 = vst [vmem:[#allocation41_spill] sm:$0xff] %v9381_v11  ;;  %v9395_v62 = vpop.f32.mrb[59].mxu1  ;;  %v7833_v24 = vpop.eup %7832  ;;  %v6951_v49 = vpack.c.bf16 %v9381_v11, %v9381_v11  ;;  %v9399_v42 = vmul.f32 %v7831_v26, %v7823_v44  ;;  %7852 = vpow2.f32 %v6482_v3  ;;  %v1525_v44 = vadd.f32 %v9345_v53, %v9123_v33 }
 0x2c9   : > { %v7835_v48 = vpop.eup %7834  ;;  %v1798_v28 = vadd.f32 1.0, %v7833_v24  ;;  %7854 = vpow2.f32 %v6495_v14  ;;  %v6483_v3 = vmul.f32 -1.442695, %v1523_v52  ;;  %v9405_v10 = vpop.f32.mrb[28].mxu0 }
 0x2ca   : > { %10682 = vst [vmem:[#allocation42_spill] sm:$0xff] %v9399_v42  ;;  %v7837_v16 = vpop.eup %7836  ;;  %1963 = vst [vmem:[#allocation3 + $0x14] sm:$0xf] %v6951_v49  ;;  %v6952_v50 = vpack.c.bf16 %v9399_v42, %v9399_v42  ;;  %7856 = vtanh.f32 %v1696_v4  ;;  %v9407_v14 = vpop.f32.mrb[60].mxu1 }
 0x2cb   : > { %v7839_v6 = vpop.eup %7838  ;;  %7858 = vrcp.f32 %v1798_v28  ;;  %v1749_v37 = vadd.f32 1.0, %v7837_v16  ;;  %v9411_v4 = vpop.f32.mrb[29].mxu0  ;;  %v9415_v16 = vadd.f32 %v9117_v29, %v9307_v56 }
 0x2cc   : > { %v7841_v26 = vpop.eup %7840  ;;  %1964 = vst [vmem:[#allocation3 + $0x1c] sm:$0xf] %v6952_v50  ;;  %7860 = vpow2.f32 %v6490_v38  ;;  %v9419_v9 = vpop.f32.mrb[61].mxu1  ;;  %v6491_v50 = vmul.f32 -1.442695, %v1525_v44 }
 0x2cd   : > { %v7843_v25 = vpop.eup %7842  ;;  %7862 = vrcp.f32 %v1749_v37  ;;  %v1544_v52 = vpop.f32.mrb[30].mxu0  ;;  %v1704_v37 = vadd.f32 %v9336_v34, %v9173_v43  ;;  %v1702_v34 = vadd.f32 %v9332_v59, %v9170_v41 }
 0x2ce   : > { %v7845_v28 = vpop.eup %7844  ;;  %v9417_v53 = vmul.f32 %v7843_v25, %v7839_v6  ;;  %7864 = vrcp.f32 %v1330_v61  ;;  %v1725_v24 = vpop.f32.mrb[62].mxu1  ;;  %v1527_v61 = vadd.f32 %v9349_v55, %v9415_v16 }
 0x2cf   : > { %v7847_v49 = vpop.eup %7846  ;;  %v9421_v38 = vmul.f32 %v7845_v28, %v7835_v48  ;;  %7866 = vpow2.f32 %v6496_v32  ;;  %v1545_v11 = vpop.f32.mrb[31].mxu0  ;;  %v6497_v24 = vmul.f32 -1.442695, %v1704_v37 }
 0x2d0   : > { %10683 = vst [vmem:[#allocation43_spill] sm:$0xff] %v9417_v53  ;;  %v7849_v42 = vpop.eup %7848  ;;  %v6953_v29 = vpack.c.bf16 %v9417_v53, %v9417_v53  ;;  %v1799_v6 = vadd.f32 1.0, %v7847_v49  ;;  %7868 = vpow2.f32 %v6483_v3  ;;  %v1726_v25 = vpop.f32.mrb[63].mxu1  ;;  %v1531_v3 = vadd.f32 %v9367_v20, %v9125_v35 }
 0x2d1   : > { %v7851_v52 = vpop.eup %7850  ;;  %7870 = vtanh.f32 %v9421_v38  ;;  %v6484_v49 = vmul.f32 -1.442695, %v1527_v61 }
 0x2d2   : > { %v7853_v48 = vpop.eup %7852  ;;  %1965 = vst [vmem:[#allocation3 + $0x24] sm:$0xf] %v6953_v29  ;;  %v9430_v32 = vmul.f32 %v7851_v52, %v7849_v42  ;;  %7872 = vrcp.f32 %v1799_v6  ;;  %v9442_v6 = vadd.f32 %v9127_v36, %v9307_v56  ;;  %v1708_v36 = vadd.f32 %v9351_v27, %v9181_v2 }
 0x2d3   : > { %v7855_v11 = vpop.eup %7854  ;;  %v1750_v44 = vadd.f32 1.0, %v7853_v48  ;;  %7874 = vpow2.f32 %v6491_v50  ;;  %v6492_v48 = vmul.f32 -1.442695, %v1531_v3 }
 0x2d4   : > { %10684 = vst [vmem:[#allocation44_spill] sm:$0xff] %v9430_v32  ;;  %v7857_v28 = vpop.eup %7856  ;;  %v6954_v55 = vpack.c.bf16 %v9430_v32, %v9430_v32  ;;  %v1861_v25 = vadd.f32 1.0, %v7855_v11  ;;  %v1533_v50 = vadd.f32 %v9377_v22, %v9442_v6  ;;  %v6498_v27 = vmul.f32 -1.442695, %v1708_v36 }
 0x2d5   : > { %v7859_v29 = vpop.eup %7858  ;;  %7876 = vrcp.f32 %v1750_v44 }
 0x2d6   : > { %v7861_v59 = vpop.eup %7860  ;;  %1966 = vst [vmem:[#allocation3 + $0x2c] sm:$0xf] %v6954_v55  ;;  %v1826_v37 = vmul.f32 %v7859_v29, %v7841_v26  ;;  %7878 = vtanh.f32 %v1702_v34  ;;  %v1706_v34 = vadd.f32 %v9347_v54, %v9177_v60  ;;  %v6485_v22 = vmul.f32 -1.442695, %v1533_v50 }
 0x2d7   : > { %v7863_v20 = vpop.eup %7862  ;;  %v1800_v52 = vadd.f32 1.0, %v7861_v59  ;;  %7880 = vpow2.f32 %v6497_v24  ;;  %v9460_v59 = vadd.f32 %v9132_v40, %v9307_v56 }
 0x2d8   : > { %v7865_v61 = vpop.eup %7864  ;;  %v1770_v42 = vmul.f32 %v7863_v20, %v9184_v7  ;;  %7882 = vpow2.f32 %v6484_v49  ;;  %v1535_v7 = vadd.f32 %v9385_v63, %v9130_v39  ;;  %v1714_v20 = vadd.f32 %v9379_v47, %v9194_v30 }
 0x2d9   : > { %v7867_v44 = vpop.eup %7866  ;;  %7884 = vrcp.f32 %v1800_v52  ;;  %v1537_v40 = vadd.f32 %v9393_v17, %v9460_v59 }
 0x2da   : > { %v7869_v55 = vpop.eup %7868  ;;  %v9449_v26 = vadd.f32 %v1826_v37, %v1770_v42  ;;  %7886 = vrcp.f32 %v1861_v25  ;;  %v1862_v37 = vadd.f32 1.0, %v7867_v44  ;;  %v6493_v52 = vmul.f32 -1.442695, %v1535_v7 }
 0x2db   : > { %v7871_v11 = vpop.eup %7870  ;;  %v1751_v24 = vadd.f32 1.0, %v7869_v55  ;;  %7888 = vpow2.f32 %v6492_v48  ;;  %v1712_v44 = vadd.f32 %v9369_v8, %v9190_v21  ;;  %v6486_v17 = vmul.f32 -1.442695, %v1537_v40 }
 0x2dc   : > { %v7873_v3 = vpop.eup %7872  ;;  %v9455_v49 = vmul.f32 %v7871_v11, %v7865_v61  ;;  %7890 = vtanh.f32 %v9449_v26  ;;  %v9478_v8 = vadd.f32 %v9139_v58, %v9307_v56  ;;  %v10687_v56 = vld [vmem:[#allocation25_spill] sm:$0xff] }
 0x2dd   : > { %v1827_v29 = vmul.f32 %v7873_v3, %v7857_v28  ;;  %7892 = vrcp.f32 %v1751_v24  ;;  %v7875_v42 = vpop.eup %7874  ;;  %v1716_v40 = vadd.f32 %v9387_v45, %v10687_v56  ;;  %v10689_v45 = vld [vmem:[#allocation28_spill] sm:$0xff] }
 0x2de   : > { %10685 = vst [vmem:[#allocation45_spill] sm:$0xff] %v9455_v49  ;;  %v6955_v54 = vpack.c.bf16 %v9455_v49, %v9455_v49  ;;  %7894 = vtanh.f32 %v1706_v34  ;;  %v1801_v63 = vadd.f32 1.0, %v7875_v42  ;;  %v6499_v34 = vmul.f32 -1.442695, %v1714_v20 }
 0x2df   : > { %v7877_v25 = vpop.eup %7876  ;;  %7896 = vpow2.f32 %v6485_v22 }
 0x2e0   : > { %v7879_v48 = vpop.eup %7878  ;;  %1967 = vst [vmem:[#allocation3 + $0x34] sm:$0xf] %v6955_v54  ;;  %v1771_v28 = vmul.f32 %v7877_v25, %v9187_v13  ;;  %7898 = vpow2.f32 %v6498_v27  ;;  %v1541_v13 = vadd.f32 %v9405_v10, %v9137_v57 }
 0x2e1   : > { %v7881_v50 = vpop.eup %7880  ;;  %7900 = vrcp.f32 %v1801_v63 }
 0x2e2   : > { %v7883_v61 = vpop.eup %7882  ;;  %v9469_v36 = vadd.f32 %v1827_v29, %v1771_v28  ;;  %7902 = vrcp.f32 %v1862_v37  ;;  %v1863_v3 = vadd.f32 1.0, %v7881_v50  ;;  %v6494_v54 = vmul.f32 -1.442695, %v1541_v13  ;;  %v10686_v37 = vld [vmem:[#allocation27_spill] sm:$0xff] }
 0x2e3   : > { %v7885_v55 = vpop.eup %7884  ;;  %v1752_v47 = vadd.f32 1.0, %v7883_v61  ;;  %7904 = vpow2.f32 %v6493_v52  ;;  %v1543_v52 = vadd.f32 %v9411_v4, %v9478_v8  ;;  %v10688_v61 = vld [vmem:[#allocation26_spill] sm:$0xff] }
 0x2e4   : > { %v7887_v11 = vpop.eup %7886  ;;  %7906 = vtanh.f32 %v9469_v36  ;;  %v1828_v24 = vmul.f32 %v7885_v55, %v7879_v48 }
 0x2e5   : > { %v7889_v22 = vpop.eup %7888  ;;  %7908 = vrcp.f32 %v1752_v47  ;;  %v6487_v4 = vmul.f32 -1.442695, %v1543_v52 }
 0x2e6   : > { %v7891_v7 = vpop.eup %7890  ;;  %v1802_v27 = vadd.f32 1.0, %v7889_v22  ;;  %7910 = vtanh.f32 %v1712_v44  ;;  %v1718_v44 = vadd.f32 %v9395_v62, %v10688_v61 }
 0x2e7   : > { %v7893_v29 = vpop.eup %7892  ;;  %v1889_v42 = vmul.f32 %v7891_v7, %v7887_v11  ;;  %7912 = vpow2.f32 %v6499_v34 }
 0x2e8   : > { %v7895_v10 = vpop.eup %7894  ;;  %v1772_v25 = vmul.f32 %v7893_v29, %v10686_v37  ;;  %7914 = vrcp.f32 %v1802_v27  ;;  %v6500_v7 = vmul.f32 -1.442695, %v1718_v44 }
 0x2e9   : > { %v7897_v63 = vpop.eup %7896  ;;  %v6942_v20 = vpack.c.bf16 %v1889_v42, %v1889_v42  ;;  %7916 = vpow2.f32 %v6486_v17 }
 0x2ea   : > { %v7899_v48 = vpop.eup %7898  ;;  %v9483_v28 = vadd.f32 %v1828_v24, %v1772_v25  ;;  %7918 = vrcp.f32 %v1863_v3  ;;  %v1753_v50 = vadd.f32 1.0, %v7897_v63 }
 0x2eb   : > { %v7901_v58 = vpop.eup %7900  ;;  %1925 = vst [vmem:[#allocation3] sm:$0xf] %v6942_v20  ;;  %7920 = vpow2.f32 %v6494_v54  ;;  %v1864_v11 = vadd.f32 1.0, %v7899_v48  ;;  %v10690_v20 = vld [vmem:[#allocation29_spill] sm:$0xff]  ;;  %v10691_v48 = vld [vmem:[#allocation30_spill] sm:$0xff] }
 0x2ec   : > { %v7903_v55 = vpop.eup %7902  ;;  %7922 = vtanh.f32 %v9483_v28  ;;  %v1829_v47 = vmul.f32 %v7901_v58, %v7895_v10  ;;  %v1722_v52 = vadd.f32 %v9407_v14, %v10690_v20  ;;  %v10712_v20 = vld [vmem:[#allocation40_spill] sm:$0xff] }
 0x2ed   : > { %v7905_v34 = vpop.eup %7904  ;;  %7924 = vrcp.f32 %v1753_v50  ;;  %v1724_v50 = vadd.f32 %v9419_v9, %v10691_v48  ;;  %v7357_v9 = vld [vmem:[#allocation9 + $0x8] ss:$16 sps:$4 sm:$0xff]  }
 0x2ee   : > { %v7907_v13 = vpop.eup %7906  ;;  %v1803_v24 = vadd.f32 1.0, %v7905_v34  ;;  %7926 = vtanh.f32 %v1716_v40 }
 0x2ef   : > { %v7909_v22 = vpop.eup %7908  ;;  %v1890_v17 = vmul.f32 %v7907_v13, %v7903_v55  ;;  %v6501_v13 = vmul.f32 -1.442695, %v1724_v50  ;;  %v7360_v50 = vld [vmem:[#allocation9 + $0x20] ss:$16 sps:$4 sm:$0xff]  }
 0x2f0   : > { %v7911_v3 = vpop.eup %7910  ;;  %v1773_v27 = vmul.f32 %v7909_v22, %v10689_v45  ;;  %7928 = vrcp.f32 %v1803_v24  ;;  %v7354_v22 = vld [vmem:[#allocation9] ss:$16 sps:$4 sm:$0xff]  }
 0x2f1   : > { %v7913_v62 = vpop.eup %7912  ;;  %v6943_v29 = vpack.c.bf16 %v1890_v17, %v1890_v17  ;;  %7930 = vpow2.f32 %v6487_v4  ;;  %v9491_v54 = vpack.c.bf16 %v1890_v17, %v1889_v42 }
 0x2f2   : > { %v7915_v10 = vpop.eup %7914  ;;  %v9493_v37 = vadd.f32 %v1829_v47, %v1773_v27  ;;  %7932 = vrcp.f32 %v1864_v11  ;;  %v1865_v55 = vadd.f32 1.0, %v7913_v62 }
 0x2f3   : > { %v7917_v25 = vpop.eup %7916  ;;  %1926 = vst [vmem:[#allocation3 + $0x8] sm:$0xf] %v6943_v29  ;;  %v1830_v63 = vmul.f32 %v7915_v10, %v7911_v3  ;;  %7934 = vpow2.f32 %v6500_v7  ;;  %v7351_v3 = vld [vmem:[#allocation3 + $0x4] ss:$8 sps:$4 sm:$0xff]  }
 0x2f4   : > { %v7919_v58 = vpop.eup %7918  ;;  %7936 = vtanh.f32 %v9493_v37  ;;  %v1754_v40 = vadd.f32 1.0, %v7917_v25  ;;  %v7362_v29 = vld [vmem:[#allocation9 + $0x24] ss:$16 sps:$4 sm:$0xff]   ;;  %v7365_v10 = vld [vmem:[#allocation9 + $0x2c] ss:$16 sps:$4 sm:$0xff]   ;;  %2248 = vmatprep.mubr.bf16.mxu0 %v7351_v3  ;;  %2523 = vmatprep.mubr.bf16.mxu1 %v7351_v3 }
 0x2f5   : > { %v7921_v42 = vpop.eup %7920 }
 0x2f6   : > { %v7923_v44 = vpop.eup %7922  ;;  %7938 = vrcp.f32 %v1754_v40  ;;  %v1804_v47 = vadd.f32 1.0, %v7921_v42  ;;  %v7371_v42 = vld [vmem:[#allocation9 + $0x44] ss:$16 sps:$4 sm:$0xff]  }
 0x2f7   : > { %v7925_v34 = vpop.eup %7924  ;;  %v1891_v4 = vmul.f32 %v7923_v44, %v7919_v58  ;;  %7940 = vtanh.f32 %v1722_v52  ;;  %v7363_v58 = vld [vmem:[#allocation9 + $0x28] ss:$16 sps:$4 sm:$0xff]   ;;  %v7374_v44 = vld [vmem:[#allocation9 + $0x4c] ss:$16 sps:$4 sm:$0xff]  }
 0x2f8   : > { %v1774_v11 = vmul.f32 %v7925_v34, %v9221_v0  ;;  %7942 = vrcp.f32 %v1804_v47  ;;  %v7927_v14 = vpop.eup %7926 }
 0x2f9   : > { %v6944_v24 = vpack.c.bf16 %v1891_v4, %v1891_v4  ;;  %7944 = vrcp.f32 %v1865_v55 }
 0x2fa   : > { %v7929_v17 = vpop.eup %7928  ;;  %v9501_v7 = vadd.f32 %v1830_v63, %v1774_v11  ;;  %v7353_v45 = vld [vmem:[#allocation3] ss:$8 sps:$4 sm:$0xff]   ;;  %7946 = vpow2.f32 %v6501_v13 }
 0x2fb   : > { %v7931_v27 = vpop.eup %7930  ;;  %1927 = vst [vmem:[#allocation3 + $0x10] sm:$0xf] %v6944_v24  ;;  %v1831_v62 = vmul.f32 %v7929_v17, %v7927_v14  ;;  %2249 = vmatmul.mubr.bf16.vlgmr.msra.gmra.mrb[32].mxu0 %v7353_v45  ;;  %2524 = vmatmul.mubr.bf16.vlgmr.msra.gmra.mrb[64].mxu1 %v7353_v45  ;;  %v10693_v11 = vld [vmem:[#allocation31_spill] sm:$0xff] }
 0x2fc   : > { %10692 = vst [vmem:[#allocation27_spill] sm:$0xff] %v9501_v7  ;;  %v7933_v25 = vpop.eup %7932  ;;  %7948 = vtanh.f32 %v9501_v7  ;;  %v1755_v0 = vadd.f32 1.0, %v7931_v27  ;;  %2849 = vmatpush1.bf16.msra.mxu0 %v7354_v22  ;;  %3030 = vmatpush1.bf16.msra.mxu1 %v7357_v9  ;;  %v7369_v22 = vld [vmem:[#allocation9 + $0x40] ss:$16 sps:$4 sm:$0xff]   ;;  %v7372_v9 = vld [vmem:[#allocation9 + $0x48] ss:$16 sps:$4 sm:$0xff]  }
 0x2fd   : > { %v7935_v52 = vpop.eup %7934  ;;  %2850 = vmatprep.subr.bf16.mxu0 %v7362_v29  ;;  %3031 = vmatprep.subr.bf16.mxu1 %v7365_v10  ;;  %v7377_v27 = vld [vmem:[#allocation9 + $0x64] ss:$16 sps:$4 sm:$0xff]   ;;  %v7380_v29 = vld [vmem:[#allocation9 + $0x6c] ss:$16 sps:$4 sm:$0xff]  }
 0x2fe   : > { %v7937_v63 = vpop.eup %7936  ;;  %7950 = vrcp.f32 %v1755_v0  ;;  %v1866_v47 = vadd.f32 1.0, %v7935_v52  ;;  %v7375_v0 = vld [vmem:[#allocation9 + $0x60] ss:$16 sps:$4 sm:$0xff]   ;;  %v7378_v52 = vld [vmem:[#allocation9 + $0x68] ss:$16 sps:$4 sm:$0xff]  }
 0x2ff   : > { %v1892_v40 = vmul.f32 %v7937_v63, %v7933_v25 }
 0x300   : > { %v7939_v55 = vpop.eup %7938  ;;  %2851 = vmatpush1.bf16.msra.mxu0 %v7360_v50  ;;  %3032 = vmatpush1.bf16.msra.mxu1 %v7363_v58  ;;  %7952 = vrcp.f32 %v1866_v47  ;;  %v7389_v50 = vld [vmem:[#allocation9 + $0x8c] ss:$16 sps:$4 sm:$0xff]   ;;  %v7387_v47 = vld [vmem:[#allocation9 + $0x88] ss:$16 sps:$4 sm:$0xff]  }
 0x301   : > { %v7941_v34 = vpop.eup %7940  ;;  %v6945_v13 = vpack.c.bf16 %v1892_v40, %v1892_v40  ;;  %v1775_v14 = vmul.f32 %v7939_v55, %v10693_v11  ;;  %v9505_v24 = vpack.c.bf16 %v1892_v40, %v1891_v4  ;;  %2852 = vmatprep.subr.bf16.mxu0 %v7371_v42  ;;  %3033 = vmatprep.subr.bf16.mxu1 %v7374_v44  ;;  %v10695_v44 = vld [vmem:[#allocation32_spill] sm:$0xff] }
 0x302   : > { %v7943_v17 = vpop.eup %7942 }
 0x303   : > { %1928 = vst [vmem:[#allocation3 + $0x18] sm:$0xf] %v6945_v13  ;;  %v9507_v3 = vadd.f32 %v1831_v62, %v1775_v14  ;;  %v1832_v45 = vmul.f32 %v7943_v17, %v7941_v34  ;;  %v7945_v10 = vpop.eup %7944  ;;  %v7386_v62 = vld [vmem:[#allocation9 + $0x84] ss:$16 sps:$4 sm:$0xff]   ;;  %v7384_v34 = vld [vmem:[#allocation9 + $0x80] ss:$16 sps:$4 sm:$0xff]  }
 0x304   : > { %v7947_v25 = vpop.eup %7946  ;;  %2853 = vmatpush1.bf16.msra.mxu0 %v7369_v22  ;;  %3034 = vmatpush1.bf16.msra.mxu1 %v7372_v9  ;;  %v7366_v13 = vld [vmem:[#allocation3 + $0x14] ss:$8 sps:$4 sm:$0xff]  }
 0x305   : > { %10694 = vst [vmem:[#allocation25_spill] sm:$0xff] %v9507_v3  ;;  %7954 = vtanh.f32 %v9507_v3  ;;  %2854 = vmatprep.subr.bf16.mxu0 %v7377_v27  ;;  %3035 = vmatprep.subr.bf16.mxu1 %v7380_v29  ;;  %v1867_v40 = vadd.f32 1.0, %v7947_v25  ;;  %v7392_v17 = vld [vmem:[#allocation9 + $0xa4] ss:$16 sps:$4 sm:$0xff]   ;;  %v7395_v22 = vld [vmem:[#allocation9 + $0xac] ss:$16 sps:$4 sm:$0xff]  }
 0x306   : > { %v7949_v4 = vpop.eup %7948  ;;  %2258 = vmatprep.mubr.bf16.mxu0 %v7366_v13  ;;  %2533 = vmatprep.mubr.bf16.mxu1 %v7366_v13  ;;  %v7390_v27 = vld [vmem:[#allocation9 + $0xa0] ss:$16 sps:$4 sm:$0xff]   ;;  %v7393_v29 = vld [vmem:[#allocation9 + $0xa8] ss:$16 sps:$4 sm:$0xff]   ;;  %v7403_v25 = vld [vmem:[#allocation9 + $0xcc] ss:$16 sps:$4 sm:$0xff]  }
 0x307   : > { %v1893_v63 = vmul.f32 %v7949_v4, %v7945_v10  ;;  %7956 = vrcp.f32 %v1867_v40  ;;  %v7409_v40 = vld [vmem:[#allocation9 + $0xec] ss:$16 sps:$4 sm:$0xff]  }
 0x308   : > { %v7951_v58 = vpop.eup %7950  ;;  %2855 = vmatpush1.bf16.msra.mxu0 %v7375_v0  ;;  %3036 = vmatpush1.bf16.msra.mxu1 %v7378_v52  ;;  %v7398_v52 = vld [vmem:[#allocation9 + $0xc0] ss:$16 sps:$4 sm:$0xff]  }
 0x309   : > { %v6946_v42 = vpack.c.bf16 %v1893_v63, %v1893_v63  ;;  %v1776_v55 = vmul.f32 %v7951_v58, %v10695_v44  ;;  %2856 = vmatprep.subr.bf16.mxu0 %v7386_v62  ;;  %3037 = vmatprep.subr.bf16.mxu1 %v7389_v50  ;;  %v7401_v62 = vld [vmem:[#allocation9 + $0xc8] ss:$16 sps:$4 sm:$0xff]   ;;  %v7406_v58 = vld [vmem:[#allocation9 + $0xe4] ss:$16 sps:$4 sm:$0xff]   ;;  %v7404_v44 = vld [vmem:[#allocation9 + $0xe0] ss:$16 sps:$4 sm:$0xff]  }
 0x30a   : > { %v7368_v11 = vld [vmem:[#allocation3 + $0x10] ss:$8 sps:$4 sm:$0xff]   ;;  %v7953_v9 = vpop.eup %7952 }
 0x30b   : > { %1929 = vst [vmem:[#allocation3 + $0x20] sm:$0xf] %v6946_v42  ;;  %v9511_v14 = vadd.f32 %v1832_v45, %v1776_v55  ;;  %2259 = vmatmul.mubr.bf16.gmra.mrb[36].mxu0 %v7368_v11  ;;  %2534 = vmatmul.mubr.bf16.gmra.mrb[68].mxu1 %v7368_v11  ;;  %v7400_v45 = vld [vmem:[#allocation9 + $0xc4] ss:$16 sps:$4 sm:$0xff]   ;;  %v7407_v55 = vld [vmem:[#allocation9 + $0xe8] ss:$16 sps:$4 sm:$0xff]  }
 0x30c   : > { %2857 = vmatpush1.bf16.msra.mxu0 %v7384_v34  ;;  %3038 = vmatpush1.bf16.msra.mxu1 %v7387_v47  ;;  %v7381_v11 = vld [vmem:[#allocation3 + $0x24] ss:$8 sps:$4 sm:$0xff]  }
 0x30d   : > { %10696 = vst [vmem:[#allocation26_spill] sm:$0xff] %v9511_v14  ;;  %7958 = vtanh.f32 %v9511_v14  ;;  %2858 = vmatprep.subr.bf16.mxu0 %v7392_v17  ;;  %3039 = vmatprep.subr.bf16.mxu1 %v7395_v22  ;;  %v10707_v14 = vld [vmem:[#allocation21_spill] sm:$0xff] }
 0x30e   : > { %2268 = vmatprep.mubr.bf16.mxu0 %v7381_v11  ;;  %2543 = vmatprep.mubr.bf16.mxu1 %v7381_v11  ;;  %v7442_v11 = vld [vmem:[#allocation10 + $0xa4] ss:$16 sps:$4 sm:$0xff]  }
 0x30f   : > { %v7955_v10 = vpop.eup %7954 }
 0x310   : > { %v1894_v4 = vmul.f32 %v7955_v10, %v7953_v9  ;;  %2859 = vmatpush1.bf16.msra.mxu0 %v7390_v27  ;;  %3040 = vmatpush1.bf16.msra.mxu1 %v7393_v29  ;;  %v7415_v27 = vld [vmem:[#allocation10 + $0xc] ss:$16 sps:$4 sm:$0xff]   ;;  %v7410_v29 = vld [vmem:[#allocation10] ss:$16 sps:$4 sm:$0xff]   ;;  %v7413_v10 = vld [vmem:[#allocation10 + $0x8] ss:$16 sps:$4 sm:$0xff]  }
 0x311   : > { %2860 = vmatprep.subr.bf16.mxu0 %v7400_v45  ;;  %3041 = vmatprep.subr.bf16.mxu1 %v7403_v25  ;;  %v7957_v42 = vpop.eup %7956  ;;  %v7421_v45 = vld [vmem:[#allocation10 + $0x2c] ss:$16 sps:$4 sm:$0xff]   ;;  %v7416_v25 = vld [vmem:[#allocation10 + $0x20] ss:$16 sps:$4 sm:$0xff]  }
 0x312   : > { %v6947_v0 = vpack.c.bf16 %v1894_v4, %v1894_v4  ;;  %v1898_v50 = vpack.c.bf16 %v1894_v4, %v1893_v63  ;;  %v7419_v4 = vld [vmem:[#allocation10 + $0x28] ss:$16 sps:$4 sm:$0xff]  }
 0x314   : > { %1930 = vst [vmem:[#allocation3 + $0x28] sm:$0xf] %v6947_v0  ;;  %2861 = vmatpush1.bf16.msra.mxu0 %v7398_v52  ;;  %3042 = vmatpush1.bf16.msra.mxu1 %v7401_v62  ;;  %v7424_v0 = vld [vmem:[#allocation10 + $0x44] ss:$16 sps:$4 sm:$0xff]   ;;  %v7427_v52 = vld [vmem:[#allocation10 + $0x4c] ss:$16 sps:$4 sm:$0xff]  }
 0x315   : > { %2862 = vmatprep.subr.bf16.mxu0 %v7406_v58  ;;  %3043 = vmatprep.subr.bf16.mxu1 %v7409_v40  ;;  %v7422_v62 = vld [vmem:[#allocation10 + $0x40] ss:$16 sps:$4 sm:$0xff]   ;;  %v7430_v58 = vld [vmem:[#allocation10 + $0x64] ss:$16 sps:$4 sm:$0xff]   ;;  %v7433_v40 = vld [vmem:[#allocation10 + $0x6c] ss:$16 sps:$4 sm:$0xff]  }
 0x317   : > { %v7959_v34 = vpop.eup %7958 }
 0x318   : > { %v1895_v47 = vmul.f32 %v7959_v34, %v7957_v42  ;;  %2863 = vmatpush1.bf16.msra.mxu0 %v7404_v44  ;;  %3044 = vmatpush1.bf16.msra.mxu1 %v7407_v55  ;;  %v7428_v42 = vld [vmem:[#allocation10 + $0x60] ss:$16 sps:$4 sm:$0xff]   ;;  %v7431_v44 = vld [vmem:[#allocation10 + $0x68] ss:$16 sps:$4 sm:$0xff]   ;;  %v7436_v55 = vld [vmem:[#allocation10 + $0x84] ss:$16 sps:$4 sm:$0xff]  }
 0x319   : > { %3863 = vmatprep.subr.bf16.mxu1 %v7415_v27  ;;  %v7439_v34 = vld [vmem:[#allocation10 + $0x8c] ss:$16 sps:$4 sm:$0xff]   ;;  %v7446_v27 = vld [vmem:[#allocation10 + $0xc0] ss:$16 sps:$4 sm:$0xff]  }
 0x31a   : > { %v1899_v13 = vpack.c.bf16 %v1895_v47, %v1895_v47  ;;  %v7434_v47 = vld [vmem:[#allocation10 + $0x80] ss:$16 sps:$4 sm:$0xff]  }
 0x31b   : > { %v7383_v17 = vld [vmem:[#allocation3 + $0x20] ss:$8 sps:$4 sm:$0xff]  }
 0x31c   : > { %1931 = vst [vmem:[#allocation3 + $0x30] sm:$0xf] %v1899_v13  ;;  %2269 = vmatmul.mubr.bf16.gmra.mrb[40].mxu0 %v7383_v17  ;;  %2544 = vmatmul.mubr.bf16.gmra.mrb[72].mxu1 %v7383_v17  ;;  %v7445_v17 = vld [vmem:[#allocation10 + $0xac] ss:$16 sps:$4 sm:$0xff]  }
 0x323   : > { %v1974_v63 = vld [vmem:[#allocation3 + $0x30] sm:$0xff] }
 0x324   : > { %v6523_v22 = vcombine.high %v1974_v63, %v1974_v63  ;;  %v6522_v9 = vcombine.low %v1974_v63, %v1974_v63  ;;  %v7440_v63 = vld [vmem:[#allocation10 + $0xa0] ss:$16 sps:$4 sm:$0xff]  }
 0x326   : > { %2278 = vmatprep.mubr.bf16.mxu0 %v6523_v22  ;;  %2553 = vmatprep.mubr.bf16.mxu1 %v6523_v22  ;;  %v7443_v22 = vld [vmem:[#allocation10 + $0xa8] ss:$16 sps:$4 sm:$0xff]  }
 0x327   : > { %2279 = vmatmul.mubr.bf16.gmra.mrb[44].mxu0 %v6522_v9  ;;  %2554 = vmatmul.mubr.bf16.gmra.mrb[76].mxu1 %v6522_v9  ;;  %v7448_v9 = vld [vmem:[#allocation10 + $0xc4] ss:$16 sps:$4 sm:$0xff]  }
 0x328   : > { %2880 = vmatprep.mubr.bf16.mxu0 %v10672_v5  ;;  %3061 = vmatprep.mubr.bf16.mxu1 %v10672_v5 }
 0x32f   : > { %2881 = vmatmul.mubr.bf16.vlgmr.msra.gmra.mrb[48].mxu0 %v9491_v54  ;;  %3062 = vmatmul.mubr.bf16.vlgmr.msra.gmra.mrb[80].mxu1 %v9491_v54  ;;  %v7412_v54 = vld [vmem:[#allocation10 + $0x4] ss:$16 sps:$4 sm:$0xff]  }
 0x330   : > { %2890 = vmatprep.mubr.bf16.mxu0 %v10672_v5  ;;  %3071 = vmatprep.mubr.bf16.mxu1 %v10672_v5 }
 0x331   : > { %3588 = vmatprep.subr.bf16.mxu0 %v7412_v54  ;;  %3864 = vmatpush1.bf16.msra.mxu1 %v7413_v10  ;;  %v7451_v54 = vld [vmem:[#allocation10 + $0xcc] ss:$16 sps:$4 sm:$0xff]   ;;  %v7454_v10 = vld [vmem:[#allocation10 + $0xe4] ss:$16 sps:$4 sm:$0xff]  }
 0x332   : > { %3589 = vmatpush1.bf16.msra.mxu0 %v7410_v29  ;;  %3865 = vmatprep.subr.bf16.mxu1 %v7421_v45  ;;  %v7449_v29 = vld [vmem:[#allocation10 + $0xc8] ss:$16 sps:$4 sm:$0xff]   ;;  %v7452_v45 = vld [vmem:[#allocation10 + $0xe0] ss:$16 sps:$4 sm:$0xff]  }
 0x335   : > { %3866 = vmatpush1.bf16.msra.mxu1 %v7419_v4  ;;  %v7460_v4 = vld [vmem:[#allocation10 + $0x104] ss:$16 sps:$4 sm:$0xff]  }
 0x336   : > { %3867 = vmatprep.subr.bf16.mxu1 %v7427_v52  ;;  %v7458_v52 = vld [vmem:[#allocation10 + $0x100] ss:$16 sps:$4 sm:$0xff]  }
 0x337   : > { %2891 = vmatmul.mubr.bf16.gmra.mrb[52].mxu0 %v9505_v24  ;;  %3072 = vmatmul.mubr.bf16.gmra.mrb[84].mxu1 %v9505_v24  ;;  %v7418_v24 = vld [vmem:[#allocation10 + $0x24] ss:$16 sps:$4 sm:$0xff]  }
 0x338   : > { %2900 = vmatprep.mubr.bf16.mxu0 %v10672_v5  ;;  %3081 = vmatprep.mubr.bf16.mxu1 %v10672_v5 }
 0x339   : > { %3590 = vmatprep.subr.bf16.mxu0 %v7418_v24  ;;  %v7457_v24 = vld [vmem:[#allocation10 + $0xec] ss:$16 sps:$4 sm:$0xff]  }
 0x33a   : > { %3591 = vmatpush1.bf16.msra.mxu0 %v7416_v25  ;;  %v7455_v25 = vld [vmem:[#allocation10 + $0xe8] ss:$16 sps:$4 sm:$0xff]  }
 0x33b   : > { %3592 = vmatprep.subr.bf16.mxu0 %v7424_v0  ;;  %v7463_v0 = vld [vmem:[#allocation10 + $0x10c] ss:$16 sps:$4 sm:$0xff]  }
 0x33e   : > { %3593 = vmatpush1.bf16.msra.mxu0 %v7422_v62  ;;  %v7461_v62 = vld [vmem:[#allocation10 + $0x108] ss:$16 sps:$4 sm:$0xff]  }
 0x33f   : > { %2901 = vmatmul.mubr.bf16.gmra.mrb[56].mxu0 %v1898_v50  ;;  %3082 = vmatmul.mubr.bf16.gmra.mrb[88].mxu1 %v1898_v50  ;;  %v7425_v50 = vld [vmem:[#allocation10 + $0x48] ss:$16 sps:$4 sm:$0xff]  }
 0x340   : > { %2910 = vmatprep.mubr.bf16.mxu0 %v10672_v5  ;;  %3091 = vmatprep.mubr.bf16.mxu1 %v10672_v5 }
 0x341   : > { %3868 = vmatpush1.bf16.msra.mxu1 %v7425_v50  ;;  %3594 = vmatprep.subr.bf16.mxu0 %v7430_v58  ;;  %v7466_v50 = vld [vmem:[#allocation10 + $0x124] ss:$16 sps:$4 sm:$0xff]   ;;  %v7469_v58 = vld [vmem:[#allocation10 + $0x12c] ss:$16 sps:$4 sm:$0xff]  }
 0x342   : > { %3869 = vmatprep.subr.bf16.mxu1 %v7433_v40  ;;  %3595 = vmatpush1.bf16.msra.mxu0 %v7428_v42  ;;  %v7464_v40 = vld [vmem:[#allocation10 + $0x120] ss:$16 sps:$4 sm:$0xff]   ;;  %v7467_v42 = vld [vmem:[#allocation10 + $0x128] ss:$16 sps:$4 sm:$0xff]  }
 0x343   : > { %3596 = vmatprep.subr.bf16.mxu0 %v7436_v55  ;;  %v7475_v55 = vld [vmem:[#allocation10 + $0x14c] ss:$16 sps:$4 sm:$0xff]  }
 0x345   : > { %3870 = vmatpush1.bf16.msra.mxu1 %v7431_v44  ;;  %v7472_v44 = vld [vmem:[#allocation10 + $0x144] ss:$16 sps:$4 sm:$0xff]  }
 0x346   : > { %3871 = vmatprep.subr.bf16.mxu1 %v7439_v34  ;;  %3597 = vmatpush1.bf16.msra.mxu0 %v7434_v47  ;;  %v7470_v34 = vld [vmem:[#allocation10 + $0x140] ss:$16 sps:$4 sm:$0xff]   ;;  %v7473_v47 = vld [vmem:[#allocation10 + $0x148] ss:$16 sps:$4 sm:$0xff]  }
 0x347   : > { %2911 = vmatmul.mubr.bf16.gmra.mrb[60].mxu0 %v1899_v13  ;;  %3092 = vmatmul.mubr.bf16.gmra.mrb[92].mxu1 %v1899_v13  ;;  %v7437_v13 = vld [vmem:[#allocation10 + $0x88] ss:$16 sps:$4 sm:$0xff]  }
 0x348   : > { %3598 = vmatprep.subr.bf16.mxu0 %v7442_v11  ;;  %v7478_v11 = vld [vmem:[#allocation10 + $0x164] ss:$16 sps:$4 sm:$0xff]  }
 0x349   : > { %3872 = vmatpush1.bf16.msra.mxu1 %v7437_v13  ;;  %v2007_v13 = vld [vmem:[%s10564_s5] sm:$0x3] }
 0x34a   : > { %3873 = vmatprep.subr.bf16.mxu1 %v7445_v17  ;;  %3599 = vmatpush1.bf16.msra.mxu0 %v7440_v63  ;;  %v7481_v17 = vld [vmem:[#allocation10 + $0x16c] ss:$16 sps:$4 sm:$0xff]   ;;  %v9530_v63 = vrot.slane %v2007_v13, %v9098_v18 }
 0x34b   : > { %3600 = vmatprep.subr.bf16.mxu0 %v7448_v9  ;;  %v7479_v9 = vld [vmem:[#allocation10 + $0x168] ss:$16 sps:$4 sm:$0xff]  }
 0x34d   : > { %3874 = vmatpush1.bf16.msra.mxu1 %v7443_v22  ;;  %v7476_v22 = vld [vmem:[#allocation10 + $0x160] ss:$16 sps:$4 sm:$0xff]  }
 0x34e   : > { %3875 = vmatprep.subr.bf16.mxu1 %v7451_v54  ;;  %3601 = vmatpush1.bf16.msra.mxu0 %v7446_v27  ;;  %v9533_v54 = vrot.slane %v2007_v13, %v9145_v1  ;;  %v2319_v27 = vld [vmem:[%s10564_s5 + $0x2] sm:$0x3] }
 0x34f   : > { %3602 = vmatprep.subr.bf16.mxu0 %v7454_v10 }
 0x351   : > { %3876 = vmatpush1.bf16.msra.mxu1 %v7449_v29 }
 0x352   : > { %3877 = vmatprep.subr.bf16.mxu1 %v7457_v24  ;;  %3603 = vmatpush1.bf16.msra.mxu0 %v7452_v45  ;;  %v7484_v24 = vld [vmem:[#allocation10 + $0x184] ss:$16 sps:$4 sm:$0xff]   ;;  %v7487_v45 = vld [vmem:[#allocation10 + $0x18c] ss:$16 sps:$4 sm:$0xff]  }
 0x353   : > { %3604 = vmatprep.subr.bf16.mxu0 %v7460_v4 }
 0x355   : > { %3878 = vmatpush1.bf16.msra.mxu1 %v7455_v25 }
 0x356   : > { %3879 = vmatprep.subr.bf16.mxu1 %v7463_v0  ;;  %3605 = vmatpush1.bf16.msra.mxu0 %v7458_v52  ;;  %v7482_v52 = vld [vmem:[#allocation10 + $0x180] ss:$16 sps:$4 sm:$0xff]  }
 0x357   : > { %3606 = vmatprep.subr.bf16.mxu0 %v7466_v50 }
 0x359   : > { %3880 = vmatpush1.bf16.msra.mxu1 %v7461_v62  ;;  %v7485_v62 = vld [vmem:[#allocation10 + $0x188] ss:$16 sps:$4 sm:$0xff]  }
 0x35a   : > { %3881 = vmatprep.subr.bf16.mxu1 %v7469_v58  ;;  %3607 = vmatpush1.bf16.msra.mxu0 %v7464_v40  ;;  %v9541_v58 = vrot.slane %v2319_v27, %v9145_v1 }
 0x35b   : > { %3608 = vmatprep.subr.bf16.mxu0 %v7472_v44 }
 0x35d   : > { %3882 = vmatpush1.bf16.msra.mxu1 %v7467_v42 }
 0x35e   : > { %3883 = vmatprep.subr.bf16.mxu1 %v7475_v55  ;;  %3609 = vmatpush1.bf16.msra.mxu0 %v7470_v34 }
 0x35f   : > { %3610 = vmatprep.subr.bf16.mxu0 %v7478_v11 }
 0x361   : > { %3884 = vmatpush1.bf16.msra.mxu1 %v7473_v47 }
 0x362   : > { %3885 = vmatprep.subr.bf16.mxu1 %v7481_v17  ;;  %3611 = vmatpush1.bf16.msra.mxu0 %v7476_v22  ;;  %v7490_v17 = vld [vmem:[#allocation10 + $0x1a4] ss:$16 sps:$4 sm:$0xff]  }
 0x363   : > { %3612 = vmatprep.subr.bf16.mxu0 %v7484_v24 }
 0x365   : > { %3886 = vmatpush1.bf16.msra.mxu1 %v7479_v9  ;;  %v7488_v9 = vld [vmem:[#allocation10 + $0x1a0] ss:$16 sps:$4 sm:$0xff]  }
 0x366   : > { %3887 = vmatprep.subr.bf16.mxu1 %v7487_v45  ;;  %3613 = vmatpush1.bf16.msra.mxu0 %v7482_v52  ;;  %v7493_v45 = vld [vmem:[#allocation10 + $0x1ac] ss:$16 sps:$4 sm:$0xff]   ;;  %v7496_v52 = vld [vmem:[#allocation10 + $0x1c4] ss:$16 sps:$4 sm:$0xff]  }
 0x367   : > { %3614 = vmatprep.subr.bf16.mxu0 %v7490_v17  ;;  %v7503_v17 = vld [vmem:[#allocation10 + $0x1e8] ss:$16 sps:$4 sm:$0xff]  }
 0x369   : > { %3888 = vmatpush1.bf16.msra.mxu1 %v7485_v62  ;;  %v7499_v62 = vld [vmem:[#allocation10 + $0x1cc] ss:$16 sps:$4 sm:$0xff]  }
 0x36a   : > { %3615 = vmatpush1.bf16.msra.mxu0 %v7488_v9  ;;  %3889 = vmatprep.subr.bf16.mxu1 %v7493_v45  ;;  %v7511_v45 = vld [vmem:[#allocation9 + $0x4] ss:$16 sps:$4 sm:$0xff]  }
 0x36b   : > { %3616 = vmatprep.subr.bf16.mxu0 %v7496_v52 }
 0x3ce   : > { %v2250_v29 = vpop.f32.mrb[32].mxu0  ;;  %v2525_v10 = vpop.f32.mrb[64].mxu1 }
 0x3cf   : > { %v2251_v25 = vadd.f32 %v2250_v29, %v9530_v63  ;;  %v2252_v4 = vpop.f32.mrb[33].mxu0  ;;  %v2527_v0 = vpop.f32.mrb[65].mxu1  ;;  %v7491_v29 = vld [vmem:[#allocation10 + $0x1a8] ss:$16 sps:$4 sm:$0xff]  }
 0x3d0   : > { %v2253_v50 = vadd.f32 %v2252_v4, %v9533_v54  ;;  %v2254_v40 = vpop.f32.mrb[34].mxu0  ;;  %v2529_v42 = vpop.f32.mrb[66].mxu1  ;;  %v2528_v4 = vadd.f32 %v2527_v0, %v9541_v58  ;;  %3890 = vmatpush1.bf16.msra.mxu1 %v7491_v29 }
 0x3d1   : > { %v6595_v44 = vmul.f32 -1.442695, %v2251_v25  ;;  %v2255_v55 = vadd.f32 %v2254_v40, %v9530_v63  ;;  %v2256_v34 = vpop.f32.mrb[35].mxu0  ;;  %v2531_v47 = vpop.f32.mrb[67].mxu1  ;;  %v9547_v25 = vrot.slane %v2319_v27, %v9098_v18  ;;  %v7497_v40 = vld [vmem:[#allocation10 + $0x1c8] ss:$16 sps:$4 sm:$0xff]   ;;  %3891 = vmatprep.subr.bf16.mxu1 %v7499_v62 }
 0x3d2   : > { %v6588_v13 = vmul.f32 -1.442695, %v2253_v50  ;;  %v2257_v11 = vadd.f32 %v2256_v34, %v9533_v54  ;;  %v7494_v50 = vld [vmem:[#allocation10 + $0x1c0] ss:$16 sps:$4 sm:$0xff]   ;;  %v2532_v0 = vadd.f32 %v2531_v47, %v9541_v58  ;;  %v7502_v34 = vld [vmem:[#allocation10 + $0x1e4] ss:$16 sps:$4 sm:$0xff]  }
 0x3d3   : > { %7960 = vpow2.f32 %v6595_v44  ;;  %v6596_v22 = vmul.f32 -1.442695, %v2255_v55  ;;  %v6602_v44 = vmul.f32 -1.442695, %v2528_v4  ;;  %3617 = vmatpush1.bf16.msra.mxu0 %v7494_v50  ;;  %v2526_v55 = vadd.f32 %v2525_v10, %v9547_v25 }
 0x3d4   : > { %7962 = vpow2.f32 %v6588_v13  ;;  %v6589_v24 = vmul.f32 -1.442695, %v2257_v11  ;;  %v7505_v13 = vld [vmem:[#allocation10 + $0x1ec] ss:$16 sps:$4 sm:$0xff]   ;;  %v2530_v27 = vadd.f32 %v2529_v42, %v9547_v25  ;;  %3892 = vmatpush1.bf16.msra.mxu1 %v7497_v40  ;;  %v7500_v11 = vld [vmem:[#allocation10 + $0x1e0] ss:$16 sps:$4 sm:$0xff]   ;;  %3618 = vmatprep.subr.bf16.mxu0 %v7502_v34 }
 0x3d5   : > { %7964 = vpow2.f32 %v6596_v22  ;;  %3893 = vmatprep.subr.bf16.mxu1 %v7505_v13  ;;  %v6603_v9 = vmul.f32 -1.442695, %v2532_v0 }
 0x3d6   : > { %7966 = vpow2.f32 %v6589_v24 }
 0x3d7   : > { %7968 = vpow2.f32 %v6602_v44  ;;  %3619 = vmatpush1.bf16.msra.mxu0 %v7500_v11 }
 0x3d8   : > { %7970 = vtanh.f32 %v2526_v55  ;;  %3894 = vmatpush1.bf16.msra.mxu1 %v7503_v17  ;;  %4220 = vmatprep.subr.bf16.mxu0 %v7511_v45 }
 0x3d9   : > { %7972 = vtanh.f32 %v2530_v27 }
 0x3dd   : > { %v7961_v22 = vpop.eup %7960 }
 0x3de   : > { %v7963_v29 = vpop.eup %7962  ;;  %v2632_v4 = vadd.f32 1.0, %v7961_v22  ;;  %v2260_v47 = vpop.f32.mrb[36].mxu0 }
 0x3df   : > { %v2535_v24 = vpop.f32.mrb[68].mxu1  ;;  %v2583_v10 = vadd.f32 1.0, %v7963_v29  ;;  %v2261_v52 = vadd.f32 %v2260_v47, %v9530_v63  ;;  %v2262_v42 = vpop.f32.mrb[37].mxu0  ;;  %v7514_v29 = vld [vmem:[#allocation9 + $0xc] ss:$16 sps:$4 sm:$0xff]  }
 0x3e0   : > { %v2537_v62 = vpop.f32.mrb[69].mxu1  ;;  %v7965_v50 = vpop.eup %7964  ;;  %7974 = vrcp.f32 %v2632_v4  ;;  %v2263_v40 = vadd.f32 %v2262_v42, %v9533_v54  ;;  %4401 = vmatprep.subr.bf16.mxu1 %v7514_v29 }
 0x3e1   : > { %v2264_v44 = vpop.f32.mrb[38].mxu0  ;;  %v2539_v0 = vpop.f32.mrb[70].mxu1  ;;  %7976 = vrcp.f32 %v2583_v10  ;;  %v2633_v34 = vadd.f32 1.0, %v7965_v50  ;;  %v6597_v55 = vmul.f32 -1.442695, %v2261_v52  ;;  %v2538_v17 = vadd.f32 %v2537_v62, %v9541_v58 }
 0x3e2   : > { %v2266_v13 = vpop.f32.mrb[39].mxu0  ;;  %v2541_v11 = vpop.f32.mrb[71].mxu1  ;;  %7978 = vpow2.f32 %v6603_v9  ;;  %v2265_v27 = vadd.f32 %v2264_v44, %v9530_v63  ;;  %v6590_v4 = vmul.f32 -1.442695, %v2263_v40 }
 0x3e3   : > { %v7967_v22 = vpop.eup %7966  ;;  %7980 = vrcp.f32 %v2633_v34  ;;  %v2267_v42 = vadd.f32 %v2266_v13, %v9533_v54  ;;  %v6604_v52 = vmul.f32 -1.442695, %v2538_v17  ;;  %v2542_v50 = vadd.f32 %v2541_v11, %v9541_v58 }
 0x3e4   : > { %v2584_v47 = vadd.f32 1.0, %v7967_v22  ;;  %7982 = vpow2.f32 %v6597_v55  ;;  %v7969_v45 = vpop.eup %7968  ;;  %v6598_v10 = vmul.f32 -1.442695, %v2265_v27  ;;  %v2536_v22 = vadd.f32 %v2535_v24, %v9547_v25 }
 0x3e5   : > { %v7971_v49 = vpop.eup %7970  ;;  %v6591_v9 = vmul.f32 -1.442695, %v2267_v42  ;;  %v2695_v53 = vadd.f32 1.0, %v7969_v45  ;;  %v6605_v55 = vmul.f32 -1.442695, %v2542_v50 }
 0x3e6   : > { %7984 = vrcp.f32 %v2584_v47  ;;  %v7973_v44 = vpop.eup %7972 }
 0x3e7   : > { %7986 = vpow2.f32 %v6590_v4 }
 0x3e8   : > { %7988 = vpow2.f32 %v6598_v10 }
 0x3e9   : > { %7990 = vpow2.f32 %v6604_v52 }
 0x3ea   : > { %v7975_v34 = vpop.eup %7974  ;;  %7992 = vpow2.f32 %v6591_v9 }
 0x3eb   : > { %v7977_v62 = vpop.eup %7976  ;;  %v2660_v40 = vmul.f32 %v7975_v34, %v7971_v49  ;;  %7994 = vrcp.f32 %v2695_v53 }
 0x3ec   : > { %v7979_v13 = vpop.eup %7978  ;;  %v2604_v29 = vmul.f32 %v7977_v62, %v9303_v46  ;;  %7996 = vtanh.f32 %v2536_v22  ;;  %v2540_v22 = vadd.f32 %v2539_v0, %v9547_v25 }
 0x3ed   : > { %v7981_v27 = vpop.eup %7980  ;;  %v2696_v42 = vadd.f32 1.0, %v7979_v13  ;;  %7998 = vpow2.f32 %v6605_v55 }
 0x3ee   : > { %v7983_v11 = vpop.eup %7982  ;;  %v9560_v47 = vadd.f32 %v2660_v40, %v2604_v29  ;;  %v2661_v17 = vmul.f32 %v7981_v27, %v7973_v44 }
 0x3ef   : > { %v2634_v45 = vadd.f32 1.0, %v7983_v11  ;;  %v2270_v24 = vpop.f32.mrb[40].mxu0  ;;  %v2545_v10 = vpop.f32.mrb[72].mxu1 }
 0x3f0   : > { %10697 = vst [vmem:[#allocation28_spill] sm:$0xff] %v9560_v47  ;;  %v7985_v4 = vpop.eup %7984  ;;  %8000 = vtanh.f32 %v9560_v47  ;;  %v2271_v46 = vadd.f32 %v2270_v24, %v9530_v63  ;;  %v2272_v52 = vpop.f32.mrb[41].mxu0 }
 0x3f1   : > { %v2605_v49 = vmul.f32 %v7985_v4, %v9310_v15  ;;  %v2547_v50 = vpop.f32.mrb[73].mxu1  ;;  %8002 = vrcp.f32 %v2634_v45  ;;  %v2274_v53 = vpop.f32.mrb[42].mxu0  ;;  %v2273_v13 = vadd.f32 %v2272_v52, %v9533_v54 }
 0x3f2   : > { %v9565_v9 = vpop.f32.mrb[74].mxu1  ;;  %v7987_v44 = vpop.eup %7986  ;;  %8004 = vrcp.f32 %v2696_v42  ;;  %v6599_v29 = vmul.f32 -1.442695, %v2271_v46  ;;  %v2275_v4 = vadd.f32 %v2274_v53, %v9530_v63  ;;  %v2548_v0 = vadd.f32 %v2547_v50, %v9541_v58 }
 0x3f3   : > { %v9567_v34 = vadd.f32 %v2661_v17, %v2605_v49  ;;  %v2276_v62 = vpop.f32.mrb[43].mxu0  ;;  %v2551_v40 = vpop.f32.mrb[75].mxu1  ;;  %v2585_v55 = vadd.f32 1.0, %v7987_v44  ;;  %v2546_v17 = vadd.f32 %v2545_v10, %v9547_v25  ;;  %v6592_v49 = vmul.f32 -1.442695, %v2273_v13 }
 0x3f4   : > { %v7989_v15 = vpop.eup %7988  ;;  %v2277_v52 = vadd.f32 %v2276_v62, %v9533_v54  ;;  %v6600_v53 = vmul.f32 -1.442695, %v2275_v4  ;;  %v2552_v13 = vadd.f32 %v2551_v40, %v9541_v58 }
 0x3f5   : > { %10698 = vst [vmem:[#allocation31_spill] sm:$0xff] %v9567_v34  ;;  %8006 = vtanh.f32 %v9567_v34  ;;  %v7991_v27 = vpop.eup %7990  ;;  %v2635_v11 = vadd.f32 1.0, %v7989_v15 }
 0x3f6   : > { %8008 = vrcp.f32 %v2585_v55  ;;  %v7993_v45 = vpop.eup %7992  ;;  %v2697_v32 = vadd.f32 1.0, %v7991_v27 }
 0x3f7   : > { %8010 = vtanh.f32 %v2540_v22  ;;  %v7995_v24 = vpop.eup %7994  ;;  %v2586_v42 = vadd.f32 1.0, %v7993_v45 }
 0x3f8   : > { %8012 = vrcp.f32 %v2635_v11  ;;  %v7997_v44 = vpop.eup %7996  ;;  %v6606_v11 = vmul.f32 -1.442695, %v2548_v0 }
 0x3f9   : > { %8014 = vpow2.f32 %v6599_v29  ;;  %v7999_v15 = vpop.eup %7998  ;;  %v6593_v29 = vmul.f32 -1.442695, %v2277_v52 }
 0x3fa   : > { %v2280_v46 = vpop.f32.mrb[44].mxu0  ;;  %v9576_v55 = vpop.f32.mrb[76].mxu1  ;;  %8016 = vrcp.f32 %v2586_v42 }
 0x3fb   : > { %v2281_v22 = vadd.f32 %v2280_v46, %v9530_v63  ;;  %v2282_v10 = vpop.f32.mrb[45].mxu0  ;;  %v2557_v34 = vpop.f32.mrb[77].mxu1  ;;  %8018 = vtanh.f32 %v2546_v17  ;;  %v2698_v63 = vadd.f32 1.0, %v7999_v15 }
 0x3fc   : > { %v8001_v50 = vpop.eup %8000  ;;  %v2284_v45 = vpop.f32.mrb[46].mxu0  ;;  %8020 = vpow2.f32 %v6592_v49  ;;  %v2283_v1 = vadd.f32 %v2282_v10, %v9533_v54  ;;  %v10701_v10 = vld [vmem:[#allocation17_spill] sm:$0xff] }
 0x3fd   : > { %v2559_v62 = vpop.f32.mrb[78].mxu1  ;;  %v8003_v47 = vpop.eup %8002  ;;  %v9580_v27 = vmul.f32 %v8001_v50, %v7995_v24  ;;  %8022 = vrcp.f32 %v2697_v32  ;;  %v6601_v40 = vmul.f32 -1.442695, %v2281_v22  ;;  %v6607_v45 = vmul.f32 -1.442695, %v2552_v13 }
 0x3fe   : > { %v2285_v42 = vpop.f32.mrb[47].mxu0  ;;  %v2560_v4 = vpop.f32.mrb[79].mxu1  ;;  %v2662_v18 = vmul.f32 %v8003_v47, %v7997_v44  ;;  %8024 = vpow2.f32 %v6600_v53  ;;  %v6594_v54 = vmul.f32 -1.442695, %v2283_v1  ;;  %v2550_v22 = vadd.f32 %v9565_v9, %v9547_v25 }
 0x3ff   : > { %10699 = vst [vmem:[#allocation32_spill] sm:$0xff] %v9580_v27  ;;  %v8005_v46 = vpop.eup %8004  ;;  %v6963_v17 = vpack.c.bf16 %v9580_v27, %v9580_v27  ;;  %8026 = vpow2.f32 %v6606_v11 }
 0x400   : > { %v8007_v0 = vpop.eup %8006  ;;  %8028 = vpow2.f32 %v6593_v29  ;;  %v2558_v29 = vadd.f32 %v2557_v34, %v9541_v58 }
 0x401   : > { %v8009_v24 = vpop.eup %8008  ;;  %3333 = vst [vmem:[#allocation3 + $0x4] sm:$0xf] %v6963_v17  ;;  %v9585_v49 = vmul.f32 %v8007_v0, %v8005_v46  ;;  %8030 = vrcp.f32 %v2698_v63 }
 0x402   : > { %v8011_v52 = vpop.eup %8010  ;;  %v2606_v47 = vmul.f32 %v8009_v24, %v9325_v19  ;;  %v2882_v32 = vpop.f32.mrb[48].mxu0  ;;  %8032 = vpow2.f32 %v6601_v40  ;;  %v10703_v24 = vld [vmem:[#allocation34_spill] sm:$0xff]  ;;  %v6608_v34 = vmul.f32 -1.442695, %v2558_v29 }
 0x403   : > { %10700 = vst [vmem:[#allocation46_spill] sm:$0xff] %v9585_v49  ;;  %v9588_v44 = vpop.f32.mrb[80].mxu1  ;;  %v8013_v15 = vpop.eup %8012  ;;  %v6964_v53 = vpack.c.bf16 %v9585_v49, %v9585_v49  ;;  %v2883_v50 = vadd.f32 %v2882_v32, %v10701_v10  ;;  %8034 = vpow2.f32 %v6607_v45 }
 0x404   : > { %v2884_v11 = vpop.f32.mrb[49].mxu0  ;;  %v3065_v13 = vpop.f32.mrb[81].mxu1  ;;  %v9595_v62 = vadd.f32 %v2662_v18, %v2606_v47  ;;  %v2663_v19 = vmul.f32 %v8013_v15, %v8011_v52  ;;  %8036 = vpow2.f32 %v6594_v54 }
 0x405   : > { %v8015_v1 = vpop.eup %8014  ;;  %v2886_v42 = vpop.f32.mrb[50].mxu0  ;;  %3334 = vst [vmem:[#allocation3 + $0xc] sm:$0xf] %v6964_v53  ;;  %v6648_v9 = vmul.f32 -1.442695, %v2883_v50 }
 0x406   : > { %10702 = vst [vmem:[#allocation47_spill] sm:$0xff] %v9595_v62  ;;  %v9598_v4 = vpop.f32.mrb[82].mxu1  ;;  %v8017_v63 = vpop.eup %8016  ;;  %v2636_v46 = vadd.f32 1.0, %v8015_v1  ;;  %8038 = vtanh.f32 %v9595_v62 }
 0x407   : > { %v2888_v17 = vpop.f32.mrb[51].mxu0  ;;  %v3069_v40 = vpop.f32.mrb[83].mxu1  ;;  %v2607_v18 = vmul.f32 %v8017_v63, %v10703_v24  ;;  %v2556_v63 = vadd.f32 %v9576_v55, %v9547_v25 }
 0x408   : > { %v8019_v0 = vpop.eup %8018  ;;  %8040 = vrcp.f32 %v2636_v46  ;;  %v10705_v46 = vld [vmem:[#allocation33_spill] sm:$0xff]  ;;  %v2889_v3 = vadd.f32 %v2888_v17, %v9340_v51 }
 0x409   : > { %v8021_v47 = vpop.eup %8020  ;;  %v9602_v52 = vadd.f32 %v2663_v19, %v2607_v18  ;;  %8042 = vtanh.f32 %v2550_v22  ;;  %v2885_v19 = vadd.f32 %v2884_v11, %v10705_v46 }
 0x40a   : > { %v8023_v45 = vpop.eup %8022  ;;  %v2587_v58 = vadd.f32 1.0, %v8021_v47  ;;  %8044 = vpow2.f32 %v6648_v9  ;;  %v2892_v53 = vpop.f32.mrb[52].mxu0 }
 0x40b   : > { %10704 = vst [vmem:[#allocation34_spill] sm:$0xff] %v9602_v52  ;;  %v8025_v32 = vpop.eup %8024  ;;  %8046 = vtanh.f32 %v9602_v52  ;;  %v9605_v50 = vpop.f32.mrb[84].mxu1 }
 0x40c   : > { %v8027_v15 = vpop.eup %8026  ;;  %v2637_v54 = vadd.f32 1.0, %v8025_v32  ;;  %8048 = vrcp.f32 %v2587_v58  ;;  %v2894_v24 = vpop.f32.mrb[53].mxu0  ;;  %v3066_v58 = vadd.f32 %v3065_v13, %v9157_v12 }
 0x40d   : > { %v8029_v1 = vpop.eup %8028  ;;  %v9610_v18 = vpop.f32.mrb[85].mxu1  ;;  %8050 = vpow2.f32 %v6608_v34  ;;  %v2699_v27 = vadd.f32 1.0, %v8027_v15  ;;  %v10706_v34 = vld [vmem:[#allocation18_spill] sm:$0xff]  ;;  %v3064_v15 = vadd.f32 %v9588_v44, %v10707_v14 }
 0x40e   : > { %v8031_v22 = vpop.eup %8030  ;;  %v2588_v29 = vadd.f32 1.0, %v8029_v1  ;;  %v9612_v9 = vpop.f32.mrb[54].mxu0  ;;  %8052 = vrcp.f32 %v2637_v54  ;;  %v6641_v1 = vmul.f32 -1.442695, %v2885_v19  ;;  %v2887_v10 = vadd.f32 %v2886_v42, %v10706_v34  ;;  %v10711_v34 = vld [vmem:[#allocation39_spill] sm:$0xff] }
 0x40f   : > { %v9614_v47 = vpop.f32.mrb[86].mxu1  ;;  %v8033_v32 = vpop.eup %8032  ;;  %v6655_v12 = vmul.f32 -1.442695, %v3066_v58 }
 0x410   : > { %v9617_v52 = vpop.f32.mrb[55].mxu0  ;;  %v9619_v25 = vpop.f32.mrb[87].mxu1  ;;  %8054 = vrcp.f32 %v2588_v29  ;;  %v2638_v11 = vadd.f32 1.0, %v8033_v32  ;;  %v6649_v44 = vmul.f32 -1.442695, %v2887_v10 }
 0x411   : > { %v8035_v55 = vpop.eup %8034  ;;  %8056 = vtanh.f32 %v2556_v63  ;;  %v6642_v10 = vmul.f32 -1.442695, %v2889_v3 }
 0x412   : > { %v8037_v46 = vpop.eup %8036  ;;  %8058 = vrcp.f32 %v2638_v11  ;;  %v9627_v63 = vpop.f32.mrb[56].mxu0  ;;  %v2700_v58 = vadd.f32 1.0, %v8035_v55  ;;  %v10710_v55 = vld [vmem:[#allocation38_spill] sm:$0xff] }
 0x413   : > { %v8039_v62 = vpop.eup %8038  ;;  %v2589_v5 = vadd.f32 1.0, %v8037_v46  ;;  %8060 = vrcp.f32 %v2699_v27  ;;  %v9629_v19 = vpop.f32.mrb[88].mxu1 }
 0x414   : > { %v8041_v54 = vpop.eup %8040  ;;  %v9624_v13 = vmul.f32 %v8039_v62, %v8023_v45  ;;  %v3070_v62 = vadd.f32 %v3069_v40, %v9165_v23  ;;  %v9634_v45 = vpop.f32.mrb[57].mxu0 }
 0x415   : > { %v8043_v29 = vpop.eup %8042  ;;  %v2664_v32 = vmul.f32 %v8041_v54, %v8019_v0  ;;  %8062 = vrcp.f32 %v2589_v5  ;;  %v9636_v27 = vpop.f32.mrb[89].mxu1  ;;  %v2893_v5 = vadd.f32 %v2892_v53, %v9120_v31 }
 0x416   : > { %10708 = vst [vmem:[#allocation48_spill] sm:$0xff] %v9624_v13  ;;  %v8045_v42 = vpop.eup %8044  ;;  %v6965_v46 = vpack.c.bf16 %v9624_v13, %v9624_v13  ;;  %8064 = vpow2.f32 %v6641_v1  ;;  %v9639_v11 = vpop.f32.mrb[58].mxu0  ;;  %v6656_v31 = vmul.f32 -1.442695, %v3070_v62 }
 0x417   : > { %v8047_v17 = vpop.eup %8046  ;;  %v3170_v0 = vadd.f32 1.0, %v8045_v42  ;;  %8066 = vtanh.f32 %v3064_v15  ;;  %v9641_v54 = vpop.f32.mrb[90].mxu1  ;;  %v6650_v3 = vmul.f32 -1.442695, %v2893_v5 }
 0x418   : > { %v8049_v51 = vpop.eup %8048  ;;  %3335 = vst [vmem:[#allocation3 + $0x14] sm:$0xf] %v6965_v46  ;;  %v9643_v1 = vmul.f32 %v8047_v17, %v8031_v22  ;;  %8068 = vpow2.f32 %v6655_v12  ;;  %v9645_v40 = vpop.f32.mrb[59].mxu0  ;;  %v2895_v46 = vadd.f32 %v2894_v24, %v10711_v34 }
 0x419   : > { %v9647_v23 = vpop.f32.mrb[91].mxu1  ;;  %v8051_v14 = vpop.eup %8050  ;;  %v2608_v42 = vmul.f32 %v8049_v51, %v10710_v55  ;;  %8070 = vrcp.f32 %v3170_v0 }
 0x41a   : > { %10709 = vst [vmem:[#allocation49_spill] sm:$0xff] %v9643_v1  ;;  %v8053_v15 = vpop.eup %8052  ;;  %v6966_v53 = vpack.c.bf16 %v9643_v1, %v9643_v1  ;;  %8072 = vpow2.f32 %v6649_v44  ;;  %v2701_v0 = vadd.f32 1.0, %v8051_v14  ;;  %v3076_v44 = vadd.f32 %v9610_v18, %v9173_v43  ;;  %v9659_v62 = vpop.f32.mrb[60].mxu0 }
 0x41b   : > { %v8055_v22 = vpop.eup %8054  ;;  %v9653_v17 = vadd.f32 %v2664_v32, %v2608_v42  ;;  %v2665_v12 = vmul.f32 %v8053_v15, %v8043_v29  ;;  %8074 = vrcp.f32 %v2700_v58  ;;  %v9661_v24 = vpop.f32.mrb[92].mxu1 }
 0x41c   : > { %v8057_v7 = vpop.eup %8056  ;;  %3336 = vst [vmem:[#allocation3 + $0x1c] sm:$0xf] %v6966_v53  ;;  %v2609_v48 = vmul.f32 %v8055_v22, %v10712_v20  ;;  %8076 = vpow2.f32 %v6642_v10  ;;  %v6643_v20 = vmul.f32 -1.442695, %v2895_v46  ;;  %v9667_v10 = vpop.f32.mrb[61].mxu0 }
 0x41d   : > { %v8059_v51 = vpop.eup %8058  ;;  %8078 = vtanh.f32 %v9653_v17  ;;  %v9669_v55 = vpop.f32.mrb[93].mxu1 }
 0x41e   : > { %v8061_v32 = vpop.eup %8060  ;;  %v9665_v58 = vadd.f32 %v2665_v12, %v2609_v48  ;;  %v2666_v5 = vmul.f32 %v8059_v51, %v8057_v7  ;;  %8080 = vpow2.f32 %v6656_v31  ;;  %v2916_v18 = vpop.f32.mrb[62].mxu0  ;;  %v2897_v48 = vadd.f32 %v9612_v9, %v9123_v33  ;;  %v10713_v12 = vld [vmem:[#allocation23_spill] sm:$0xff] }
 0x41f   : > { %v8063_v14 = vpop.eup %8062  ;;  %8082 = vpow2.f32 %v6650_v3  ;;  %v3097_v42 = vpop.f32.mrb[94].mxu1  ;;  %v3068_v51 = vadd.f32 %v9598_v4, %v10713_v12  ;;  %v6657_v18 = vmul.f32 -1.442695, %v3076_v44  ;;  %v3074_v4 = vadd.f32 %v9605_v50, %v9170_v41 }
 0x420   : > { %v8065_v15 = vpop.eup %8064  ;;  %8084 = vtanh.f32 %v9665_v58  ;;  %v2610_v53 = vmul.f32 %v8063_v14, %v9421_v38  ;;  %v2917_v22 = vpop.f32.mrb[63].mxu0  ;;  %v6651_v9 = vmul.f32 -1.442695, %v2897_v48 }
 0x421   : > { %v3098_v7 = vpop.f32.mrb[95].mxu1  ;;  %v8067_v31 = vpop.eup %8066  ;;  %8086 = vrcp.f32 %v2701_v0  ;;  %v3121_v46 = vadd.f32 1.0, %v8065_v15  ;;  %v2899_v0 = vadd.f32 %v9617_v52, %v9415_v16  ;;  %v3078_v52 = vadd.f32 %v9614_v47, %v9177_v60 }
 0x422   : > { %v8069_v29 = vpop.eup %8068  ;;  %v9677_v3 = vadd.f32 %v2666_v5, %v2610_v53  ;;  %8088 = vpow2.f32 %v6643_v20 }
 0x423   : > { %v8071_v42 = vpop.eup %8070  ;;  %8090 = vrcp.f32 %v3121_v46  ;;  %v3233_v44 = vadd.f32 1.0, %v8069_v29 }
 0x424   : > { %v8073_v49 = vpop.eup %8072  ;;  %8092 = vtanh.f32 %v9677_v3  ;;  %v3198_v38 = vmul.f32 %v8071_v42, %v8067_v31  ;;  %v6644_v31 = vmul.f32 -1.442695, %v2899_v0 }
 0x425   : > { %v8075_v14 = vpop.eup %8074  ;;  %v3171_v22 = vadd.f32 1.0, %v8073_v49  ;;  %8094 = vtanh.f32 %v3068_v51  ;;  %v2903_v49 = vadd.f32 %v9627_v63, %v9125_v35  ;;  %v3080_v63 = vadd.f32 %v9619_v25, %v9181_v2 }
 0x426   : > { %v8077_v15 = vpop.eup %8076  ;;  %8096 = vpow2.f32 %v6657_v18 }
 0x427   : > { %v8079_v5 = vpop.eup %8078  ;;  %8098 = vrcp.f32 %v3171_v22  ;;  %v3122_v20 = vadd.f32 1.0, %v8077_v15  ;;  %v6652_v47 = vmul.f32 -1.442695, %v2903_v49 }
 0x428   : > { %v8081_v53 = vpop.eup %8080  ;;  %v9684_v7 = vmul.f32 %v8079_v5, %v8061_v32  ;;  %8100 = vpow2.f32 %v6651_v9  ;;  %v2905_v9 = vadd.f32 %v9634_v45, %v9442_v6  ;;  %v2907_v45 = vadd.f32 %v9639_v11, %v9130_v39 }
 0x429   : > { %v8083_v48 = vpop.eup %8082  ;;  %8102 = vrcp.f32 %v3122_v20  ;;  %v3234_v15 = vadd.f32 1.0, %v8081_v53  ;;  %v6658_v20 = vmul.f32 -1.442695, %v3080_v63  ;;  %v3084_v11 = vadd.f32 %v9629_v19, %v9190_v21 }
 0x42a   : > { %10714 = vst [vmem:[#allocation38_spill] sm:$0xff] %v9684_v7  ;;  %v8085_v46 = vpop.eup %8084  ;;  %v6967_v50 = vpack.c.bf16 %v9684_v7, %v9684_v7  ;;  %v3172_v29 = vadd.f32 1.0, %v8083_v48  ;;  %8104 = vtanh.f32 %v3074_v4  ;;  %v6645_v53 = vmul.f32 -1.442695, %v2905_v9 }
 0x42b   : > { %v8087_v51 = vpop.eup %8086  ;;  %v9694_v18 = vmul.f32 %v8085_v46, %v8075_v14  ;;  %8106 = vrcp.f32 %v3233_v44  ;;  %v6653_v63 = vmul.f32 -1.442695, %v2907_v45  ;;  %v2909_v9 = vadd.f32 %v9645_v40, %v9460_v59 }
 0x42c   : > { %v8089_v42 = vpop.eup %8088  ;;  %3337 = vst [vmem:[#allocation3 + $0x24] sm:$0xf] %v6967_v50  ;;  %8108 = vrcp.f32 %v3172_v29 }
 0x42d   : > { %10715 = vst [vmem:[#allocation39_spill] sm:$0xff] %v9694_v18  ;;  %v8091_v22 = vpop.eup %8090  ;;  %v6968_v0 = vpack.c.bf16 %v9694_v18, %v9694_v18  ;;  %v3123_v4 = vadd.f32 1.0, %v8089_v42  ;;  %8110 = vpow2.f32 %v6644_v31 }
 0x42e   : > { %v8093_v14 = vpop.eup %8092  ;;  %v3142_v5 = vmul.f32 %v8091_v22, %v9449_v26  ;;  %8112 = vtanh.f32 %v3078_v52 }
 0x42f   : > { %v8095_v44 = vpop.eup %8094  ;;  %3338 = vst [vmem:[#allocation3 + $0x2c] sm:$0xf] %v6968_v0  ;;  %v9703_v25 = vmul.f32 %v8093_v14, %v8087_v51  ;;  %8114 = vrcp.f32 %v3123_v4  ;;  %v3086_v51 = vadd.f32 %v9636_v27, %v9194_v30 }
 0x430   : > { %v8097_v49 = vpop.eup %8096  ;;  %v9707_v48 = vadd.f32 %v3198_v38, %v3142_v5  ;;  %8116 = vpow2.f32 %v6652_v47 }
 0x431   : > { %10716 = vst [vmem:[#allocation40_spill] sm:$0xff] %v9703_v25  ;;  %v8099_v46 = vpop.eup %8098  ;;  %v6969_v31 = vpack.c.bf16 %v9703_v25, %v9703_v25  ;;  %8118 = vrcp.f32 %v3234_v15  ;;  %v3235_v0 = vadd.f32 1.0, %v8097_v49  ;;  %v6659_v5 = vmul.f32 -1.442695, %v3086_v51 }
 0x432   : > { %v8101_v52 = vpop.eup %8100  ;;  %8120 = vtanh.f32 %v9707_v48  ;;  %v3199_v50 = vmul.f32 %v8099_v46, %v8095_v44 }
 0x433   : > { %v8103_v29 = vpop.eup %8102  ;;  %3339 = vst [vmem:[#allocation3 + $0x34] sm:$0xf] %v6969_v31  ;;  %v3173_v38 = vadd.f32 1.0, %v8101_v52  ;;  %8122 = vpow2.f32 %v6658_v20  ;;  %v2913_v20 = vadd.f32 %v9659_v62, %v9137_v57  ;;  %v2915_v62 = vadd.f32 %v9667_v10, %v9478_v8 }
 0x434   : > { %v8105_v42 = vpop.eup %8104  ;;  %v3143_v47 = vmul.f32 %v8103_v29, %v9469_v36  ;;  %8124 = vpow2.f32 %v6645_v53  ;;  %v6646_v36 = vmul.f32 -1.442695, %v2909_v9 }
 0x435   : > { %v8107_v22 = vpop.eup %8106  ;;  %8126 = vrcp.f32 %v3173_v38 }
 0x436   : > { %v8109_v15 = vpop.eup %8108  ;;  %v9721_v19 = vadd.f32 %v3199_v50, %v3143_v47  ;;  %8128 = vtanh.f32 %v3084_v11  ;;  %v6654_v50 = vmul.f32 -1.442695, %v2913_v20  ;;  %v3090_v47 = vadd.f32 %v9647_v23, %v10688_v61 }
 0x437   : > { %v8111_v4 = vpop.eup %8110  ;;  %v3200_v14 = vmul.f32 %v8109_v15, %v8105_v42  ;;  %8130 = vpow2.f32 %v6653_v63  ;;  %v3088_v42 = vadd.f32 %v9641_v54, %v10687_v56  ;;  %v6647_v15 = vmul.f32 -1.442695, %v2915_v62 }
 0x438   : > { %v8113_v27 = vpop.eup %8112  ;;  %8132 = vtanh.f32 %v9721_v19  ;;  %v3124_v44 = vadd.f32 1.0, %v8111_v4 }
 0x439   : > { %v8115_v40 = vpop.eup %8114  ;;  %8134 = vrcp.f32 %v3235_v0 }
 0x43a   : > { %v8117_v45 = vpop.eup %8116  ;;  %v3144_v49 = vmul.f32 %v8115_v40, %v9483_v28  ;;  %8136 = vrcp.f32 %v3124_v44  ;;  %v6660_v44 = vmul.f32 -1.442695, %v3090_v47 }
 0x43b   : > { %v8119_v53 = vpop.eup %8118  ;;  %v3174_v46 = vadd.f32 1.0, %v8117_v45  ;;  %8138 = vpow2.f32 %v6659_v5 }
 0x43c   : > { %v8121_v31 = vpop.eup %8120  ;;  %v9727_v52 = vadd.f32 %v3200_v14, %v3144_v49  ;;  %8140 = vpow2.f32 %v6646_v36 }
 0x43d   : > { %v8123_v11 = vpop.eup %8122  ;;  %v3261_v29 = vmul.f32 %v8121_v31, %v8107_v22  ;;  %8142 = vrcp.f32 %v3174_v46 }
 0x43e   : > { %v8125_v38 = vpop.eup %8124  ;;  %8144 = vtanh.f32 %v9727_v52  ;;  %v3236_v20 = vadd.f32 1.0, %v8123_v11 }
 0x43f   : > { %v8127_v51 = vpop.eup %8126  ;;  %v6956_v28 = vpack.c.bf16 %v3261_v29, %v3261_v29  ;;  %v3125_v63 = vadd.f32 1.0, %v8125_v38  ;;  %8146 = vpow2.f32 %v6654_v50  ;;  %v10718_v38 = vld [vmem:[#allocation29_spill] sm:$0xff] }
 0x440   : > { %v8129_v9 = vpop.eup %8128  ;;  %v3201_v0 = vmul.f32 %v8127_v51, %v8113_v27  ;;  %v3094_v51 = vadd.f32 %v9661_v24, %v10718_v38 }
 0x441   : > { %v8131_v22 = vpop.eup %8130  ;;  %3297 = vst [vmem:[#allocation3] sm:$0xf] %v6956_v28  ;;  %8148 = vrcp.f32 %v3125_v63 }
 0x442   : > { %v8133_v10 = vpop.eup %8132  ;;  %v3175_v4 = vadd.f32 1.0, %v8131_v22  ;;  %8150 = vtanh.f32 %v3088_v42  ;;  %v10719_v22 = vld [vmem:[#allocation27_spill] sm:$0xff] }
 0x443   : > { %v8135_v14 = vpop.eup %8134  ;;  %v3262_v5 = vmul.f32 %v8133_v10, %v8119_v53  ;;  %v10717_v53 = vld [vmem:[#allocation30_spill] sm:$0xff]  ;;  %v7512_v10 = vld [vmem:[#allocation9 + $0x8] ss:$16 sps:$4 sm:$0xff]  }
 0x444   : > { %v8137_v36 = vpop.eup %8136  ;;  %8152 = vrcp.f32 %v3175_v4  ;;  %v3096_v50 = vadd.f32 %v9669_v55, %v10717_v53 }
 0x445   : > { %v8139_v54 = vpop.eup %8138  ;;  %v6957_v40 = vpack.c.bf16 %v3262_v5, %v3262_v5  ;;  %v3145_v23 = vmul.f32 %v8137_v36, %v9493_v37  ;;  %8154 = vpow2.f32 %v6647_v15  ;;  %v9737_v27 = vpack.c.bf16 %v3262_v5, %v3261_v29 }
 0x446   : > { %v8141_v45 = vpop.eup %8140  ;;  %8156 = vpow2.f32 %v6660_v44  ;;  %v3237_v28 = vadd.f32 1.0, %v8139_v54  ;;  %v7520_v54 = vld [vmem:[#allocation9 + $0x2c] ss:$16 sps:$4 sm:$0xff]  }
 0x447   : > { %v8143_v49 = vpop.eup %8142  ;;  %3298 = vst [vmem:[#allocation3 + $0x8] sm:$0xf] %v6957_v40  ;;  %v9739_v46 = vadd.f32 %v3201_v0, %v3145_v23  ;;  %v3126_v31 = vadd.f32 1.0, %v8141_v45  ;;  %8158 = vrcp.f32 %v3236_v20  ;;  %v6661_v0 = vmul.f32 -1.442695, %v3096_v50 }
 0x448   : > { %v8145_v62 = vpop.eup %8144  ;;  %v3202_v11 = vmul.f32 %v8143_v49, %v8129_v9  ;;  %v7509_v9 = vld [vmem:[#allocation9] ss:$16 sps:$4 sm:$0xff]   ;;  %v7517_v20 = vld [vmem:[#allocation9 + $0x24] ss:$16 sps:$4 sm:$0xff]  }
 0x449   : > { %v3263_v37 = vmul.f32 %v8145_v62, %v8135_v14  ;;  %8160 = vtanh.f32 %v9739_v46  ;;  %v8147_v29 = vpop.eup %8146  ;;  %v7506_v14 = vld [vmem:[#allocation3 + $0x4] ss:$8 sps:$4 sm:$0xff]   ;;  %v7515_v49 = vld [vmem:[#allocation9 + $0x20] ss:$16 sps:$4 sm:$0xff]  }
 0x44a   : > { %8162 = vrcp.f32 %v3126_v31  ;;  %v3176_v47 = vadd.f32 1.0, %v8147_v29  ;;  %3620 = vmatprep.mubr.bf16.mxu0 %v7506_v14  ;;  %3895 = vmatprep.mubr.bf16.mxu1 %v7506_v14  ;;  %v7518_v31 = vld [vmem:[#allocation9 + $0x28] ss:$16 sps:$4 sm:$0xff]   ;;  %v7526_v62 = vld [vmem:[#allocation9 + $0x44] ss:$16 sps:$4 sm:$0xff]  }
 0x44b   : > { %v8149_v63 = vpop.eup %8148  ;;  %v6958_v42 = vpack.c.bf16 %v3263_v37, %v3263_v37  ;;  %8164 = vtanh.f32 %v3094_v51  ;;  %v7535_v14 = vld [vmem:[#allocation9 + $0x6c] ss:$16 sps:$4 sm:$0xff]  }
 0x44c   : > { %v3146_v15 = vmul.f32 %v8149_v63, %v10719_v22  ;;  %v8151_v55 = vpop.eup %8150  ;;  %8166 = vrcp.f32 %v3176_v47  ;;  %v10721_v63 = vld [vmem:[#allocation25_spill] sm:$0xff]  ;;  %v7524_v22 = vld [vmem:[#allocation9 + $0x40] ss:$16 sps:$4 sm:$0xff]  }
 0x44d   : > { %3299 = vst [vmem:[#allocation3 + $0x10] sm:$0xf] %v6958_v42  ;;  %8168 = vrcp.f32 %v3237_v28 }
 0x44e   : > { %v8153_v4 = vpop.eup %8152  ;;  %v9747_v24 = vadd.f32 %v3202_v11, %v3146_v15  ;;  %v7508_v5 = vld [vmem:[#allocation3] ss:$8 sps:$4 sm:$0xff]   ;;  %8170 = vpow2.f32 %v6661_v0  ;;  %v7529_v11 = vld [vmem:[#allocation9 + $0x4c] ss:$16 sps:$4 sm:$0xff]  }
 0x44f   : > { %v8155_v44 = vpop.eup %8154  ;;  %v3203_v36 = vmul.f32 %v8153_v4, %v8151_v55  ;;  %3621 = vmatmul.mubr.bf16.vlgmr.msra.gmra.mrb[64].mxu0 %v7508_v5  ;;  %3896 = vmatmul.mubr.bf16.vlgmr.msra.gmra.mrb[96].mxu1 %v7508_v5  ;;  %v7527_v15 = vld [vmem:[#allocation9 + $0x48] ss:$16 sps:$4 sm:$0xff]   ;;  %v7532_v4 = vld [vmem:[#allocation9 + $0x64] ss:$16 sps:$4 sm:$0xff]  }
 0x450   : > { %10720 = vst [vmem:[#allocation23_spill] sm:$0xff] %v9747_v24  ;;  %8172 = vtanh.f32 %v9747_v24  ;;  %v3127_v40 = vadd.f32 1.0, %v8155_v44  ;;  %v8157_v23 = vpop.eup %8156  ;;  %4221 = vmatpush1.bf16.msra.mxu0 %v7509_v9  ;;  %4402 = vmatpush1.bf16.msra.mxu1 %v7512_v10 }
 0x451   : > { %v8159_v45 = vpop.eup %8158  ;;  %4222 = vmatprep.subr.bf16.mxu0 %v7517_v20  ;;  %4403 = vmatprep.subr.bf16.mxu1 %v7520_v54  ;;  %v3238_v28 = vadd.f32 1.0, %v8157_v23 }
 0x452   : > { %8174 = vrcp.f32 %v3127_v40  ;;  %v7530_v40 = vld [vmem:[#allocation9 + $0x60] ss:$16 sps:$4 sm:$0xff]  }
 0x453   : > { %v8161_v50 = vpop.eup %8160  ;;  %8176 = vrcp.f32 %v3238_v28 }
 0x454   : > { %v8163_v51 = vpop.eup %8162  ;;  %v3264_v29 = vmul.f32 %v8161_v50, %v8159_v45  ;;  %4223 = vmatpush1.bf16.msra.mxu0 %v7515_v49  ;;  %4404 = vmatpush1.bf16.msra.mxu1 %v7518_v31  ;;  %v7544_v45 = vld [vmem:[#allocation9 + $0x8c] ss:$16 sps:$4 sm:$0xff]  }
 0x455   : > { %v3147_v42 = vmul.f32 %v8163_v51, %v10721_v63  ;;  %v8165_v47 = vpop.eup %8164  ;;  %4224 = vmatprep.subr.bf16.mxu0 %v7526_v62  ;;  %4405 = vmatprep.subr.bf16.mxu1 %v7529_v11  ;;  %v10723_v62 = vld [vmem:[#allocation26_spill] sm:$0xff] }
 0x456   : > { %v6959_v0 = vpack.c.bf16 %v3264_v29, %v3264_v29  ;;  %v9751_v55 = vpack.c.bf16 %v3264_v29, %v3263_v37  ;;  %v8167_v9 = vpop.eup %8166  ;;  %v7533_v37 = vld [vmem:[#allocation9 + $0x68] ss:$16 sps:$4 sm:$0xff]   ;;  %v7539_v51 = vld [vmem:[#allocation9 + $0x80] ss:$16 sps:$4 sm:$0xff]   ;;  %v7521_v63 = vld [vmem:[#allocation3 + $0x14] ss:$8 sps:$4 sm:$0xff]  }
 0x457   : > { %v9753_v10 = vadd.f32 %v3203_v36, %v3147_v42  ;;  %v8169_v5 = vpop.eup %8168  ;;  %v3204_v44 = vmul.f32 %v8167_v9, %v8165_v47  ;;  %v7541_v36 = vld [vmem:[#allocation9 + $0x84] ss:$16 sps:$4 sm:$0xff]   ;;  %v7542_v29 = vld [vmem:[#allocation9 + $0x88] ss:$16 sps:$4 sm:$0xff]   ;;  %3630 = vmatprep.mubr.bf16.mxu0 %v7521_v63  ;;  %3905 = vmatprep.mubr.bf16.mxu1 %v7521_v63  ;;  %v7545_v9 = vld [vmem:[#allocation9 + $0xa0] ss:$16 sps:$4 sm:$0xff]  }
 0x458   : > { %3300 = vst [vmem:[#allocation3 + $0x18] sm:$0xf] %v6959_v0  ;;  %v8171_v20 = vpop.eup %8170  ;;  %4225 = vmatpush1.bf16.msra.mxu0 %v7524_v22  ;;  %4406 = vmatpush1.bf16.msra.mxu1 %v7527_v15  ;;  %v7547_v47 = vld [vmem:[#allocation9 + $0xa4] ss:$16 sps:$4 sm:$0xff]   ;;  %v7550_v0 = vld [vmem:[#allocation9 + $0xac] ss:$16 sps:$4 sm:$0xff]  }
 0x459   : > { %10722 = vst [vmem:[#allocation27_spill] sm:$0xff] %v9753_v10  ;;  %8178 = vtanh.f32 %v9753_v10  ;;  %4226 = vmatprep.subr.bf16.mxu0 %v7532_v4  ;;  %4407 = vmatprep.subr.bf16.mxu1 %v7535_v14  ;;  %v3239_v31 = vadd.f32 1.0, %v8171_v20  ;;  %v7548_v4 = vld [vmem:[#allocation9 + $0xa8] ss:$16 sps:$4 sm:$0xff]  }
 0x45a   : > { %v8173_v54 = vpop.eup %8172  ;;  %v10743_v10 = vld [vmem:[#allocation21_spill] sm:$0xff] }
 0x45b   : > { %v3265_v23 = vmul.f32 %v8173_v54, %v8169_v5  ;;  %8180 = vrcp.f32 %v3239_v31  ;;  %v7555_v5 = vld [vmem:[#allocation9 + $0xc4] ss:$16 sps:$4 sm:$0xff]  }
 0x45c   : > { %v8175_v49 = vpop.eup %8174  ;;  %4227 = vmatpush1.bf16.msra.mxu0 %v7530_v40  ;;  %4408 = vmatpush1.bf16.msra.mxu1 %v7533_v37  ;;  %v7553_v40 = vld [vmem:[#allocation9 + $0xc0] ss:$16 sps:$4 sm:$0xff]   ;;  %v7556_v37 = vld [vmem:[#allocation9 + $0xc8] ss:$16 sps:$4 sm:$0xff]  }
 0x45d   : > { %v6960_v50 = vpack.c.bf16 %v3265_v23, %v3265_v23  ;;  %v3148_v11 = vmul.f32 %v8175_v49, %v10723_v62  ;;  %4228 = vmatprep.subr.bf16.mxu0 %v7541_v36  ;;  %4409 = vmatprep.subr.bf16.mxu1 %v7544_v45  ;;  %v8177_v22 = vpop.eup %8176  ;;  %v7561_v36 = vld [vmem:[#allocation9 + $0xe4] ss:$16 sps:$4 sm:$0xff]   ;;  %v7564_v45 = vld [vmem:[#allocation9 + $0xec] ss:$16 sps:$4 sm:$0xff]   ;;  %v7562_v62 = vld [vmem:[#allocation9 + $0xe8] ss:$16 sps:$4 sm:$0xff]  }
 0x45f   : > { %3301 = vst [vmem:[#allocation3 + $0x20] sm:$0xf] %v6960_v50  ;;  %v9757_v28 = vadd.f32 %v3204_v44, %v3148_v11  ;;  %v7523_v42 = vld [vmem:[#allocation3 + $0x10] ss:$8 sps:$4 sm:$0xff]   ;;  %v7558_v44 = vld [vmem:[#allocation9 + $0xcc] ss:$16 sps:$4 sm:$0xff]  }
 0x460   : > { %3631 = vmatmul.mubr.bf16.gmra.mrb[68].mxu0 %v7523_v42  ;;  %3906 = vmatmul.mubr.bf16.gmra.mrb[100].mxu1 %v7523_v42  ;;  %v7559_v50 = vld [vmem:[#allocation9 + $0xe0] ss:$16 sps:$4 sm:$0xff]  }
 0x461   : > { %10724 = vst [vmem:[#allocation25_spill] sm:$0xff] %v9757_v28  ;;  %8182 = vtanh.f32 %v9757_v28  ;;  %4229 = vmatpush1.bf16.msra.mxu0 %v7539_v51  ;;  %4410 = vmatpush1.bf16.msra.mxu1 %v7542_v29 }
 0x462   : > { %4230 = vmatprep.subr.bf16.mxu0 %v7547_v47  ;;  %4411 = vmatprep.subr.bf16.mxu1 %v7550_v0  ;;  %v10725_v0 = vmov 0  }
 0x463   : > { %v8179_v15 = vpop.eup %8178 }
 0x464   : > { %v3266_v14 = vmul.f32 %v8179_v15, %v8177_v22  ;;  %v7570_v22 = vld [vmem:[#allocation10 + $0xc] ss:$16 sps:$4 sm:$0xff]   ;;  %v7565_v15 = vld [vmem:[#allocation10] ss:$16 sps:$4 sm:$0xff]  }
 0x465   : > { %4231 = vmatpush1.bf16.msra.mxu0 %v7545_v9  ;;  %4412 = vmatpush1.bf16.msra.mxu1 %v7548_v4  ;;  %v8181_v49 = vpop.eup %8180  ;;  %v7568_v9 = vld [vmem:[#allocation10 + $0x8] ss:$16 sps:$4 sm:$0xff]   ;;  %v7576_v4 = vld [vmem:[#allocation10 + $0x2c] ss:$16 sps:$4 sm:$0xff]  }
 0x466   : > { %v6961_v20 = vpack.c.bf16 %v3266_v14, %v3266_v14  ;;  %v3270_v54 = vpack.c.bf16 %v3266_v14, %v3265_v23  ;;  %4232 = vmatprep.subr.bf16.mxu0 %v7555_v5  ;;  %4413 = vmatprep.subr.bf16.mxu1 %v7558_v44  ;;  %v7536_v23 = vld [vmem:[#allocation3 + $0x24] ss:$8 sps:$4 sm:$0xff]   ;;  %v7571_v14 = vld [vmem:[#allocation10 + $0x20] ss:$16 sps:$4 sm:$0xff]   ;;  %v7574_v5 = vld [vmem:[#allocation10 + $0x28] ss:$16 sps:$4 sm:$0xff]  }
 0x467   : > { %3640 = vmatprep.mubr.bf16.mxu0 %v7536_v23  ;;  %3915 = vmatprep.mubr.bf16.mxu1 %v7536_v23  ;;  %v7579_v44 = vld [vmem:[#allocation10 + $0x44] ss:$16 sps:$4 sm:$0xff]   ;;  %v7600_v23 = vld [vmem:[#allocation10 + $0xac] ss:$16 sps:$4 sm:$0xff]  }
 0x468   : > { %3302 = vst [vmem:[#allocation3 + $0x28] sm:$0xf] %v6961_v20  ;;  %v7582_v20 = vld [vmem:[#allocation10 + $0x4c] ss:$16 sps:$4 sm:$0xff]  }
 0x469   : > { %4233 = vmatpush1.bf16.msra.mxu0 %v7553_v40  ;;  %4414 = vmatpush1.bf16.msra.mxu1 %v7556_v37  ;;  %v7580_v40 = vld [vmem:[#allocation10 + $0x48] ss:$16 sps:$4 sm:$0xff]   ;;  %v7585_v37 = vld [vmem:[#allocation10 + $0x64] ss:$16 sps:$4 sm:$0xff]  }
 0x46a   : > { %4234 = vmatprep.subr.bf16.mxu0 %v7561_v36  ;;  %4415 = vmatprep.subr.bf16.mxu1 %v7564_v45  ;;  %v7588_v36 = vld [vmem:[#allocation10 + $0x6c] ss:$16 sps:$4 sm:$0xff]   ;;  %v7583_v45 = vld [vmem:[#allocation10 + $0x60] ss:$16 sps:$4 sm:$0xff]  }
 0x46b   : > { %v8183_v31 = vpop.eup %8182 }
 0x46c   : > { %v3267_v11 = vmul.f32 %v8183_v31, %v8181_v49  ;;  %v7586_v49 = vld [vmem:[#allocation10 + $0x68] ss:$16 sps:$4 sm:$0xff]   ;;  %v7591_v31 = vld [vmem:[#allocation10 + $0x84] ss:$16 sps:$4 sm:$0xff]  }
 0x46d   : > { %4235 = vmatpush1.bf16.msra.mxu0 %v7559_v50  ;;  %4416 = vmatpush1.bf16.msra.mxu1 %v7562_v62  ;;  %v7594_v50 = vld [vmem:[#allocation10 + $0x8c] ss:$16 sps:$4 sm:$0xff]   ;;  %v7589_v62 = vld [vmem:[#allocation10 + $0x80] ss:$16 sps:$4 sm:$0xff]  }
 0x46e   : > { %v3271_v51 = vpack.c.bf16 %v3267_v11, %v3267_v11  ;;  %5235 = vmatprep.subr.bf16.mxu1 %v7570_v22  ;;  %v7592_v11 = vld [vmem:[#allocation10 + $0x88] ss:$16 sps:$4 sm:$0xff]   ;;  %v7609_v22 = vld [vmem:[#allocation10 + $0xe4] ss:$16 sps:$4 sm:$0xff]  }
 0x46f   : > { %v7538_v29 = vld [vmem:[#allocation3 + $0x20] ss:$8 sps:$4 sm:$0xff]  }
 0x470   : > { %3303 = vst [vmem:[#allocation3 + $0x30] sm:$0xf] %v3271_v51  ;;  %3641 = vmatmul.mubr.bf16.gmra.mrb[72].mxu0 %v7538_v29  ;;  %3916 = vmatmul.mubr.bf16.gmra.mrb[104].mxu1 %v7538_v29  ;;  %v7595_v29 = vld [vmem:[#allocation10 + $0xa0] ss:$16 sps:$4 sm:$0xff]  }
 0x477   : > { %v3346_v63 = vld [vmem:[#allocation3 + $0x30] sm:$0xff] }
 0x478   : > { %v6683_v42 = vcombine.high %v3346_v63, %v3346_v63  ;;  %v6682_v47 = vcombine.low %v3346_v63, %v3346_v63  ;;  %v7598_v63 = vld [vmem:[#allocation10 + $0xa8] ss:$16 sps:$4 sm:$0xff]  }
 0x47a   : > { %3650 = vmatprep.mubr.bf16.mxu0 %v6683_v42  ;;  %3925 = vmatprep.mubr.bf16.mxu1 %v6683_v42  ;;  %v7603_v42 = vld [vmem:[#allocation10 + $0xc4] ss:$16 sps:$4 sm:$0xff]  }
 0x47b   : > { %3651 = vmatmul.mubr.bf16.gmra.mrb[76].mxu0 %v6682_v47  ;;  %3926 = vmatmul.mubr.bf16.gmra.mrb[108].mxu1 %v6682_v47  ;;  %v7606_v47 = vld [vmem:[#allocation10 + $0xcc] ss:$16 sps:$4 sm:$0xff]  }
 0x47c   : > { %4252 = vmatprep.mubr.bf16.mxu0 %v10725_v0  ;;  %4433 = vmatprep.mubr.bf16.mxu1 %v10725_v0 }
 0x483   : > { %4253 = vmatmul.mubr.bf16.vlgmr.msra.gmra.mrb[80].mxu0 %v9737_v27  ;;  %4434 = vmatmul.mubr.bf16.vlgmr.msra.gmra.mrb[112].mxu1 %v9737_v27  ;;  %v7567_v27 = vld [vmem:[#allocation10 + $0x4] ss:$16 sps:$4 sm:$0xff]  }
 0x484   : > { %4262 = vmatprep.mubr.bf16.mxu0 %v10725_v0  ;;  %4443 = vmatprep.mubr.bf16.mxu1 %v10725_v0 }
 0x485   : > { %4960 = vmatprep.subr.bf16.mxu0 %v7567_v27  ;;  %5236 = vmatpush1.bf16.msra.mxu1 %v7568_v9  ;;  %v7604_v27 = vld [vmem:[#allocation10 + $0xc8] ss:$16 sps:$4 sm:$0xff]   ;;  %v7607_v9 = vld [vmem:[#allocation10 + $0xe0] ss:$16 sps:$4 sm:$0xff]  }
 0x486   : > { %4961 = vmatpush1.bf16.msra.mxu0 %v7565_v15  ;;  %5237 = vmatprep.subr.bf16.mxu1 %v7576_v4  ;;  %v7612_v15 = vld [vmem:[#allocation10 + $0xec] ss:$16 sps:$4 sm:$0xff]   ;;  %v7615_v4 = vld [vmem:[#allocation10 + $0x104] ss:$16 sps:$4 sm:$0xff]  }
 0x489   : > { %5238 = vmatpush1.bf16.msra.mxu1 %v7574_v5  ;;  %v7613_v5 = vld [vmem:[#allocation10 + $0x100] ss:$16 sps:$4 sm:$0xff]  }
 0x48a   : > { %5239 = vmatprep.subr.bf16.mxu1 %v7582_v20  ;;  %v7621_v20 = vld [vmem:[#allocation10 + $0x124] ss:$16 sps:$4 sm:$0xff]  }
 0x48b   : > { %4263 = vmatmul.mubr.bf16.gmra.mrb[84].mxu0 %v9751_v55  ;;  %4444 = vmatmul.mubr.bf16.gmra.mrb[116].mxu1 %v9751_v55  ;;  %v7573_v55 = vld [vmem:[#allocation10 + $0x24] ss:$16 sps:$4 sm:$0xff]  }
 0x48c   : > { %4272 = vmatprep.mubr.bf16.mxu0 %v10725_v0  ;;  %4453 = vmatprep.mubr.bf16.mxu1 %v10725_v0 }
 0x48d   : > { %4962 = vmatprep.subr.bf16.mxu0 %v7573_v55  ;;  %5240 = vmatpush1.bf16.msra.mxu1 %v7580_v40  ;;  %v7610_v55 = vld [vmem:[#allocation10 + $0xe8] ss:$16 sps:$4 sm:$0xff]   ;;  %v7619_v40 = vld [vmem:[#allocation10 + $0x120] ss:$16 sps:$4 sm:$0xff]  }
 0x48e   : > { %4963 = vmatpush1.bf16.msra.mxu0 %v7571_v14  ;;  %5241 = vmatprep.subr.bf16.mxu1 %v7588_v36  ;;  %v7618_v14 = vld [vmem:[#allocation10 + $0x10c] ss:$16 sps:$4 sm:$0xff]   ;;  %v7627_v36 = vld [vmem:[#allocation10 + $0x144] ss:$16 sps:$4 sm:$0xff]  }
 0x48f   : > { %4964 = vmatprep.subr.bf16.mxu0 %v7579_v44  ;;  %v7616_v44 = vld [vmem:[#allocation10 + $0x108] ss:$16 sps:$4 sm:$0xff]  }
 0x491   : > { %5242 = vmatpush1.bf16.msra.mxu1 %v7586_v49  ;;  %v7625_v49 = vld [vmem:[#allocation10 + $0x140] ss:$16 sps:$4 sm:$0xff]  }
 0x492   : > { %5243 = vmatprep.subr.bf16.mxu1 %v7594_v50  ;;  %v3379_v50 = vld [vmem:[%s10564_s5] sm:$0x3] }
 0x493   : > { %4273 = vmatmul.mubr.bf16.gmra.mrb[88].mxu0 %v3270_v54  ;;  %4454 = vmatmul.mubr.bf16.gmra.mrb[120].mxu1 %v3270_v54  ;;  %v7577_v54 = vld [vmem:[#allocation10 + $0x40] ss:$16 sps:$4 sm:$0xff]  }
 0x494   : > { %4282 = vmatprep.mubr.bf16.mxu0 %v10725_v0  ;;  %4463 = vmatprep.mubr.bf16.mxu1 %v10725_v0  ;;  %v7601_v0 = vld [vmem:[#allocation10 + $0xc0] ss:$16 sps:$4 sm:$0xff]  }
 0x495   : > { %4965 = vmatpush1.bf16.msra.mxu0 %v7577_v54  ;;  %5244 = vmatpush1.bf16.msra.mxu1 %v7592_v11  ;;  %v7624_v54 = vld [vmem:[#allocation10 + $0x12c] ss:$16 sps:$4 sm:$0xff]  }
 0x496   : > { %4966 = vmatprep.subr.bf16.mxu0 %v7585_v37  ;;  %5245 = vmatprep.subr.bf16.mxu1 %v7600_v23  ;;  %v7622_v37 = vld [vmem:[#allocation10 + $0x128] ss:$16 sps:$4 sm:$0xff]   ;;  %v7636_v11 = vld [vmem:[#allocation10 + $0x16c] ss:$16 sps:$4 sm:$0xff]  }
 0x499   : > { %4967 = vmatpush1.bf16.msra.mxu0 %v7583_v45  ;;  %5246 = vmatpush1.bf16.msra.mxu1 %v7598_v63  ;;  %v7630_v45 = vld [vmem:[#allocation10 + $0x14c] ss:$16 sps:$4 sm:$0xff]   ;;  %v7634_v63 = vld [vmem:[#allocation10 + $0x168] ss:$16 sps:$4 sm:$0xff]  }
 0x49a   : > { %4968 = vmatprep.subr.bf16.mxu0 %v7591_v31  ;;  %5247 = vmatprep.subr.bf16.mxu1 %v7606_v47  ;;  %v7628_v31 = vld [vmem:[#allocation10 + $0x148] ss:$16 sps:$4 sm:$0xff]  }
 0x49b   : > { %4283 = vmatmul.mubr.bf16.gmra.mrb[92].mxu0 %v3271_v51  ;;  %4464 = vmatmul.mubr.bf16.gmra.mrb[124].mxu1 %v3271_v51  ;;  %v7597_v51 = vld [vmem:[#allocation10 + $0xa4] ss:$16 sps:$4 sm:$0xff]  }
 0x49d   : > { %4969 = vmatpush1.bf16.msra.mxu0 %v7589_v62  ;;  %5248 = vmatpush1.bf16.msra.mxu1 %v7604_v27  ;;  %v7633_v62 = vld [vmem:[#allocation10 + $0x164] ss:$16 sps:$4 sm:$0xff]  }
 0x49e   : > { %4970 = vmatprep.subr.bf16.mxu0 %v7597_v51  ;;  %5249 = vmatprep.subr.bf16.mxu1 %v7612_v15  ;;  %v10726_v51 = vld [vmem:[#allocation16_spill] sm:$0xff] }
 0x49f   : > { %v9776_v23 = vrot.slane %v3379_v50, %v10726_v51  ;;  %v7639_v15 = vld [vmem:[#allocation10 + $0x184] ss:$16 sps:$4 sm:$0xff]  }
 0x4a1   : > { %4971 = vmatpush1.bf16.msra.mxu0 %v7595_v29  ;;  %5250 = vmatpush1.bf16.msra.mxu1 %v7610_v55  ;;  %v7631_v29 = vld [vmem:[#allocation10 + $0x160] ss:$16 sps:$4 sm:$0xff]  }
 0x4a2   : > { %4972 = vmatprep.subr.bf16.mxu0 %v7603_v42  ;;  %5251 = vmatprep.subr.bf16.mxu1 %v7618_v14  ;;  %v10727_v42 = vld [vmem:[#allocation20_spill] sm:$0xff] }
 0x4a3   : > { %v9779_v47 = vrot.slane %v3379_v50, %v10727_v42 }
 0x4a5   : > { %4973 = vmatpush1.bf16.msra.mxu0 %v7601_v0  ;;  %5252 = vmatpush1.bf16.msra.mxu1 %v7616_v44  ;;  %v3691_v0 = vld [vmem:[%s10564_s5 + $0x2] sm:$0x3] }
 0x4a6   : > { %4974 = vmatprep.subr.bf16.mxu0 %v7609_v22  ;;  %5253 = vmatprep.subr.bf16.mxu1 %v7624_v54  ;;  %v7640_v44 = vld [vmem:[#allocation10 + $0x188] ss:$16 sps:$4 sm:$0xff]   ;;  %v9787_v54 = vrot.slane %v3691_v0, %v10727_v42 }
 0x4a9   : > { %4975 = vmatpush1.bf16.msra.mxu0 %v7607_v9  ;;  %5254 = vmatpush1.bf16.msra.mxu1 %v7622_v37  ;;  %v7642_v9 = vld [vmem:[#allocation10 + $0x18c] ss:$16 sps:$4 sm:$0xff]  }
 0x4aa   : > { %4976 = vmatprep.subr.bf16.mxu0 %v7615_v4  ;;  %5255 = vmatprep.subr.bf16.mxu1 %v7630_v45 }
 0x4ad   : > { %4977 = vmatpush1.bf16.msra.mxu0 %v7613_v5  ;;  %5256 = vmatpush1.bf16.msra.mxu1 %v7628_v31  ;;  %v7637_v5 = vld [vmem:[#allocation10 + $0x180] ss:$16 sps:$4 sm:$0xff]  }
 0x4ae   : > { %4978 = vmatprep.subr.bf16.mxu0 %v7621_v20  ;;  %5257 = vmatprep.subr.bf16.mxu1 %v7636_v11  ;;  %v7645_v11 = vld [vmem:[#allocation10 + $0x1a4] ss:$16 sps:$4 sm:$0xff]  }
 0x4b1   : > { %4979 = vmatpush1.bf16.msra.mxu0 %v7619_v40  ;;  %5258 = vmatpush1.bf16.msra.mxu1 %v7634_v63  ;;  %v7643_v63 = vld [vmem:[#allocation10 + $0x1a0] ss:$16 sps:$4 sm:$0xff]  }
 0x4b2   : > { %4980 = vmatprep.subr.bf16.mxu0 %v7627_v36  ;;  %5259 = vmatprep.subr.bf16.mxu1 %v7642_v9  ;;  %v7648_v9 = vld [vmem:[#allocation10 + $0x1ac] ss:$16 sps:$4 sm:$0xff]  }
 0x4b5   : > { %4981 = vmatpush1.bf16.msra.mxu0 %v7625_v49  ;;  %5260 = vmatpush1.bf16.msra.mxu1 %v7640_v44  ;;  %v7654_v44 = vld [vmem:[#allocation10 + $0x1cc] ss:$16 sps:$4 sm:$0xff]  }
 0x4b6   : > { %4982 = vmatprep.subr.bf16.mxu0 %v7633_v62  ;;  %5261 = vmatprep.subr.bf16.mxu1 %v7648_v9 }
 0x4b9   : > { %4983 = vmatpush1.bf16.msra.mxu0 %v7631_v29 }
 0x4ba   : > { %4984 = vmatprep.subr.bf16.mxu0 %v7639_v15 }
 0x4bd   : > { %4985 = vmatpush1.bf16.msra.mxu0 %v7637_v5  ;;  %v7651_v5 = vld [vmem:[#allocation10 + $0x1c4] ss:$16 sps:$4 sm:$0xff]  }
 0x4be   : > { %4986 = vmatprep.subr.bf16.mxu0 %v7645_v11  ;;  %v7658_v11 = vld [vmem:[#allocation10 + $0x1e8] ss:$16 sps:$4 sm:$0xff]  }
 0x4c1   : > { %4987 = vmatpush1.bf16.msra.mxu0 %v7643_v63 }
 0x4c2   : > { %4988 = vmatprep.subr.bf16.mxu0 %v7651_v5 }
 0x522   : > { %v3622_v27 = vpop.f32.mrb[64].mxu0  ;;  %v3897_v22 = vpop.f32.mrb[96].mxu1 }
 0x523   : > { %v3623_v55 = vadd.f32 %v3622_v27, %v9776_v23  ;;  %v3624_v4 = vpop.f32.mrb[65].mxu0  ;;  %v3899_v14 = vpop.f32.mrb[97].mxu1  ;;  %v7646_v27 = vld [vmem:[#allocation10 + $0x1a8] ss:$16 sps:$4 sm:$0xff]  }
 0x524   : > { %v3625_v20 = vadd.f32 %v3624_v4, %v9779_v47  ;;  %v3626_v40 = vpop.f32.mrb[66].mxu0  ;;  %v3901_v37 = vpop.f32.mrb[98].mxu1  ;;  %v3900_v4 = vadd.f32 %v3899_v14, %v9787_v54  ;;  %5262 = vmatpush1.bf16.msra.mxu1 %v7646_v27 }
 0x525   : > { %v6755_v36 = vmul.f32 -1.442695, %v3623_v55  ;;  %v3627_v45 = vadd.f32 %v3626_v40, %v9776_v23  ;;  %v3628_v49 = vpop.f32.mrb[67].mxu0  ;;  %v3903_v31 = vpop.f32.mrb[99].mxu1  ;;  %v9793_v55 = vrot.slane %v3691_v0, %v10726_v51  ;;  %v7652_v40 = vld [vmem:[#allocation10 + $0x1c8] ss:$16 sps:$4 sm:$0xff]   ;;  %5263 = vmatprep.subr.bf16.mxu1 %v7654_v44 }
 0x526   : > { %v6748_v50 = vmul.f32 -1.442695, %v3625_v20  ;;  %v3629_v62 = vadd.f32 %v3628_v49, %v9779_v47  ;;  %v7649_v20 = vld [vmem:[#allocation10 + $0x1c0] ss:$16 sps:$4 sm:$0xff]   ;;  %v7657_v49 = vld [vmem:[#allocation10 + $0x1e4] ss:$16 sps:$4 sm:$0xff]  }
 0x527   : > { %8184 = vpow2.f32 %v6755_v36  ;;  %v6756_v29 = vmul.f32 -1.442695, %v3627_v45  ;;  %v6762_v36 = vmul.f32 -1.442695, %v3900_v4  ;;  %4989 = vmatpush1.bf16.msra.mxu0 %v7649_v20  ;;  %v3898_v14 = vadd.f32 %v3897_v22, %v9793_v55  ;;  %v9801_v22 = vld [vmem:[%s10565_s6] sm:$0xff]  }
 0x528   : > { %8186 = vpow2.f32 %v6748_v50  ;;  %v6749_v15 = vmul.f32 -1.442695, %v3629_v62  ;;  %v3904_v45 = vadd.f32 %v3903_v31, %v9787_v54  ;;  %v7660_v50 = vld [vmem:[#allocation10 + $0x1ec] ss:$16 sps:$4 sm:$0xff]   ;;  %v3902_v0 = vadd.f32 %v3901_v37, %v9793_v55  ;;  %5264 = vmatpush1.bf16.msra.mxu1 %v7652_v40  ;;  %v7655_v62 = vld [vmem:[#allocation10 + $0x1e0] ss:$16 sps:$4 sm:$0xff]   ;;  %4990 = vmatprep.subr.bf16.mxu0 %v7657_v49 }
 0x529   : > { %8188 = vpow2.f32 %v6756_v29  ;;  %5265 = vmatprep.subr.bf16.mxu1 %v7660_v50  ;;  %10728 = vst [vmem:[#allocation26_spill] sm:$0xff] %v9801_v22 }
 0x52a   : > { %8190 = vpow2.f32 %v6749_v15  ;;  %v6763_v4 = vmul.f32 -1.442695, %v3904_v45 }
 0x52b   : > { %8192 = vpow2.f32 %v6762_v36  ;;  %4991 = vmatpush1.bf16.msra.mxu0 %v7655_v62 }
 0x52c   : > { %8194 = vtanh.f32 %v3898_v14  ;;  %5266 = vmatpush1.bf16.msra.mxu1 %v7658_v11  ;;  %7007 = vmatprep.subr.bf16.mxu0 %v9801_v22  ;;  %v10744_v22 = vld [vmem:[#allocation35_spill] sm:$0xff] }
 0x52d   : > { %8196 = vtanh.f32 %v3902_v0 }
 0x531   : > { %v8185_v29 = vpop.eup %8184 }
 0x532   : > { %v8187_v63 = vpop.eup %8186  ;;  %v4004_v27 = vadd.f32 1.0, %v8185_v29 }
 0x533   : > { %v3955_v31 = vadd.f32 1.0, %v8187_v63  ;;  %v3632_v37 = vpop.f32.mrb[68].mxu0  ;;  %v3907_v15 = vpop.f32.mrb[100].mxu1 }
 0x534   : > { %v8189_v9 = vpop.eup %8188  ;;  %8198 = vrcp.f32 %v4004_v27  ;;  %v3633_v5 = vadd.f32 %v3632_v37, %v9776_v23  ;;  %v3634_v44 = vpop.f32.mrb[69].mxu0 }
 0x535   : > { %v3909_v20 = vpop.f32.mrb[101].mxu1  ;;  %8200 = vrcp.f32 %v3955_v31  ;;  %v4005_v40 = vadd.f32 1.0, %v8189_v9  ;;  %v3635_v36 = vadd.f32 %v3634_v44, %v9779_v47  ;;  %v3636_v14 = vpop.f32.mrb[70].mxu0 }
 0x536   : > { %v3911_v45 = vpop.f32.mrb[102].mxu1  ;;  %v8191_v49 = vpop.eup %8190  ;;  %8202 = vpow2.f32 %v6763_v4  ;;  %v6757_v50 = vmul.f32 -1.442695, %v3633_v5  ;;  %v3637_v0 = vadd.f32 %v3636_v14, %v9776_v23  ;;  %v3910_v63 = vadd.f32 %v3909_v20, %v9787_v54 }
 0x537   : > { %v3638_v62 = vpop.f32.mrb[71].mxu0  ;;  %v3913_v11 = vpop.f32.mrb[103].mxu1  ;;  %8204 = vrcp.f32 %v4005_v40  ;;  %v3956_v29 = vadd.f32 1.0, %v8191_v49  ;;  %v6750_v27 = vmul.f32 -1.442695, %v3635_v36  ;;  %v3908_v40 = vadd.f32 %v3907_v15, %v9793_v55 }
 0x538   : > { %8206 = vpow2.f32 %v6757_v50  ;;  %v3639_v31 = vadd.f32 %v3638_v62, %v9779_v47  ;;  %v8193_v37 = vpop.eup %8192  ;;  %v6758_v9 = vmul.f32 -1.442695, %v3637_v0  ;;  %v6764_v44 = vmul.f32 -1.442695, %v3910_v63  ;;  %v10729_v62 = vld [vmem:[#allocation28_spill] sm:$0xff] }
 0x539   : > { %8208 = vrcp.f32 %v3956_v29  ;;  %v3914_v26 = vadd.f32 %v3913_v11, %v9787_v54  ;;  %v8195_v4 = vpop.eup %8194  ;;  %v4067_v32 = vadd.f32 1.0, %v8193_v37 }
 0x53a   : > { %8210 = vpow2.f32 %v6750_v27  ;;  %v6751_v5 = vmul.f32 -1.442695, %v3639_v31  ;;  %v8197_v14 = vpop.eup %8196 }
 0x53b   : > { %8212 = vpow2.f32 %v6758_v9  ;;  %v6765_v36 = vmul.f32 -1.442695, %v3914_v26  ;;  %v10731_v26 = vld [vmem:[#allocation31_spill] sm:$0xff] }
 0x53c   : > { %8214 = vpow2.f32 %v6764_v44 }
 0x53d   : > { %8216 = vpow2.f32 %v6751_v5 }
 0x53e   : > { %v8199_v42 = vpop.eup %8198  ;;  %8218 = vrcp.f32 %v4067_v32 }
 0x53f   : > { %v8201_v20 = vpop.eup %8200  ;;  %v4032_v49 = vmul.f32 %v8199_v42, %v8195_v4  ;;  %8220 = vtanh.f32 %v3908_v40 }
 0x540   : > { %v8203_v50 = vpop.eup %8202  ;;  %v3976_v29 = vmul.f32 %v8201_v20, %v10729_v62  ;;  %8222 = vpow2.f32 %v6765_v36 }
 0x541   : > { %v8205_v0 = vpop.eup %8204  ;;  %v4068_v37 = vadd.f32 1.0, %v8203_v50 }
 0x542   : > { %v8207_v11 = vpop.eup %8206  ;;  %v9812_v63 = vadd.f32 %v4032_v49, %v3976_v29  ;;  %v4033_v27 = vmul.f32 %v8205_v0, %v8197_v14  ;;  %v3912_v49 = vadd.f32 %v3911_v45, %v9793_v55 }
 0x543   : > { %v8209_v31 = vpop.eup %8208  ;;  %v4006_v51 = vadd.f32 1.0, %v8207_v11  ;;  %v3642_v15 = vpop.f32.mrb[72].mxu0 }
 0x544   : > { %10730 = vst [vmem:[#allocation28_spill] sm:$0xff] %v9812_v63  ;;  %v3917_v9 = vpop.f32.mrb[104].mxu1  ;;  %8224 = vtanh.f32 %v9812_v63  ;;  %v3977_v42 = vmul.f32 %v8209_v31, %v10731_v26  ;;  %v3643_v44 = vadd.f32 %v3642_v15, %v9776_v23  ;;  %v3644_v4 = vpop.f32.mrb[73].mxu0 }
 0x545   : > { %v3919_v5 = vpop.f32.mrb[105].mxu1  ;;  %8226 = vrcp.f32 %v4006_v51  ;;  %v3646_v32 = vpop.f32.mrb[74].mxu0  ;;  %v3645_v29 = vadd.f32 %v3644_v4, %v9779_v47 }
 0x546   : > { %v9817_v20 = vpop.f32.mrb[106].mxu1  ;;  %v8211_v14 = vpop.eup %8210  ;;  %v9819_v40 = vadd.f32 %v4033_v27, %v3977_v42  ;;  %8228 = vrcp.f32 %v4068_v37  ;;  %v6759_v11 = vmul.f32 -1.442695, %v3643_v44  ;;  %v3647_v15 = vadd.f32 %v3646_v32, %v9776_v23 }
 0x547   : > { %v3648_v36 = vpop.f32.mrb[75].mxu0  ;;  %v3923_v50 = vpop.f32.mrb[107].mxu1  ;;  %v3957_v62 = vadd.f32 1.0, %v8211_v14  ;;  %v3918_v27 = vadd.f32 %v3917_v9, %v9793_v55  ;;  %v3920_v45 = vadd.f32 %v3919_v5, %v9787_v54  ;;  %v6752_v14 = vmul.f32 -1.442695, %v3645_v29 }
 0x548   : > { %10732 = vst [vmem:[#allocation31_spill] sm:$0xff] %v9819_v40  ;;  %v8213_v0 = vpop.eup %8212  ;;  %8230 = vtanh.f32 %v9819_v40  ;;  %v3649_v4 = vadd.f32 %v3648_v36, %v9779_v47  ;;  %v6760_v32 = vmul.f32 -1.442695, %v3647_v15  ;;  %v3924_v29 = vadd.f32 %v3923_v50, %v9787_v54 }
 0x549   : > { %v8215_v31 = vpop.eup %8214  ;;  %8232 = vrcp.f32 %v3957_v62  ;;  %v4007_v51 = vadd.f32 1.0, %v8213_v0 }
 0x54a   : > { %v8217_v26 = vpop.eup %8216  ;;  %8234 = vtanh.f32 %v3912_v49  ;;  %v4069_v40 = vadd.f32 1.0, %v8215_v31 }
 0x54b   : > { %v8219_v42 = vpop.eup %8218  ;;  %8236 = vrcp.f32 %v4007_v51  ;;  %v3958_v37 = vadd.f32 1.0, %v8217_v26  ;;  %v6766_v51 = vmul.f32 -1.442695, %v3920_v45 }
 0x54c   : > { %v8221_v63 = vpop.eup %8220  ;;  %8238 = vpow2.f32 %v6759_v11  ;;  %v6753_v11 = vmul.f32 -1.442695, %v3649_v4 }
 0x54d   : > { %v8223_v0 = vpop.eup %8222  ;;  %8240 = vrcp.f32 %v3958_v37 }
 0x54e   : > { %v3652_v44 = vpop.f32.mrb[76].mxu0  ;;  %v9828_v62 = vpop.f32.mrb[108].mxu1  ;;  %8242 = vtanh.f32 %v3918_v27 }
 0x54f   : > { %v3653_v49 = vadd.f32 %v3652_v44, %v9776_v23  ;;  %v3654_v9 = vpop.f32.mrb[77].mxu0  ;;  %v3929_v18 = vpop.f32.mrb[109].mxu1  ;;  %8244 = vpow2.f32 %v6752_v14  ;;  %v4070_v23 = vadd.f32 1.0, %v8223_v0 }
 0x550   : > { %v8225_v5 = vpop.eup %8224  ;;  %v3656_v26 = vpop.f32.mrb[78].mxu0  ;;  %v3655_v1 = vadd.f32 %v3654_v9, %v9779_v47  ;;  %8246 = vrcp.f32 %v4069_v40  ;;  %v10735_v9 = vld [vmem:[#allocation47_spill] sm:$0xff] }
 0x551   : > { %v3931_v36 = vpop.f32.mrb[110].mxu1  ;;  %v8227_v25 = vpop.eup %8226  ;;  %v9832_v31 = vmul.f32 %v8225_v5, %v8219_v42  ;;  %8248 = vpow2.f32 %v6760_v32  ;;  %v6761_v50 = vmul.f32 -1.442695, %v3653_v49  ;;  %v6767_v26 = vmul.f32 -1.442695, %v3924_v29  ;;  %v10736_v5 = vld [vmem:[#allocation17_spill] sm:$0xff] }
 0x552   : > { %v3657_v37 = vpop.f32.mrb[79].mxu0  ;;  %v3932_v15 = vpop.f32.mrb[111].mxu1  ;;  %v4034_v7 = vmul.f32 %v8227_v25, %v8221_v63  ;;  %8250 = vpow2.f32 %v6766_v51  ;;  %v6754_v47 = vmul.f32 -1.442695, %v3655_v1  ;;  %v3922_v49 = vadd.f32 %v9817_v20, %v9793_v55 }
 0x553   : > { %10733 = vst [vmem:[#allocation50_spill] sm:$0xff] %v9832_v31  ;;  %v8229_v44 = vpop.eup %8228  ;;  %v6977_v27 = vpack.c.bf16 %v9832_v31, %v9832_v31  ;;  %8252 = vpow2.f32 %v6753_v11  ;;  %v3930_v15 = vadd.f32 %v3929_v18, %v9787_v54 }
 0x554   : > { %v8231_v45 = vpop.eup %8230  ;;  %8254 = vrcp.f32 %v4070_v23 }
 0x555   : > { %v8233_v42 = vpop.eup %8232  ;;  %4705 = vst [vmem:[#allocation3 + $0x4] sm:$0xf] %v6977_v27  ;;  %v9837_v14 = vmul.f32 %v8231_v45, %v8229_v44  ;;  %8256 = vpow2.f32 %v6761_v50  ;;  %v6768_v54 = vmul.f32 -1.442695, %v3930_v15 }
 0x556   : > { %v8235_v4 = vpop.eup %8234  ;;  %v3978_v25 = vmul.f32 %v8233_v42, %v10735_v9  ;;  %v4254_v63 = vpop.f32.mrb[80].mxu0  ;;  %8258 = vpow2.f32 %v6767_v26 }
 0x557   : > { %10734 = vst [vmem:[#allocation51_spill] sm:$0xff] %v9837_v14  ;;  %v9840_v40 = vpop.f32.mrb[112].mxu1  ;;  %v8237_v0 = vpop.eup %8236  ;;  %v6978_v32 = vpack.c.bf16 %v9837_v14, %v9837_v14  ;;  %v4255_v51 = vadd.f32 %v4254_v63, %v10736_v5  ;;  %8260 = vpow2.f32 %v6754_v47  ;;  %v10738_v63 = vld [vmem:[#allocation34_spill] sm:$0xff] }
 0x558   : > { %v4256_v29 = vpop.f32.mrb[81].mxu0  ;;  %v4437_v36 = vpop.f32.mrb[113].mxu1  ;;  %v9847_v11 = vadd.f32 %v4034_v7, %v3978_v25  ;;  %v4035_v37 = vmul.f32 %v8237_v0, %v8235_v4 }
 0x559   : > { %v8239_v1 = vpop.eup %8238  ;;  %v4258_v23 = vpop.f32.mrb[82].mxu0  ;;  %4706 = vst [vmem:[#allocation3 + $0xc] sm:$0xf] %v6978_v32  ;;  %v6808_v20 = vmul.f32 -1.442695, %v4255_v51 }
 0x55a   : > { %10737 = vst [vmem:[#allocation47_spill] sm:$0xff] %v9847_v11  ;;  %v9850_v44 = vpop.f32.mrb[114].mxu1  ;;  %v8241_v27 = vpop.eup %8240  ;;  %v4008_v45 = vadd.f32 1.0, %v8239_v1  ;;  %8262 = vtanh.f32 %v9847_v11  ;;  %v10741_v1 = vld [vmem:[#allocation22_spill] sm:$0xff] }
 0x55b   : > { %v4260_v50 = vpop.f32.mrb[83].mxu0  ;;  %v4441_v42 = vpop.f32.mrb[115].mxu1  ;;  %v3979_v7 = vmul.f32 %v8241_v27, %v10738_v63 }
 0x55c   : > { %v8243_v9 = vpop.eup %8242  ;;  %8264 = vrcp.f32 %v4008_v45  ;;  %v10740_v45 = vld [vmem:[#allocation33_spill] sm:$0xff]  ;;  %v4261_v24 = vadd.f32 %v4260_v50, %v10744_v22 }
 0x55d   : > { %v8245_v25 = vpop.eup %8244  ;;  %v9854_v4 = vadd.f32 %v4035_v37, %v3979_v7  ;;  %8266 = vtanh.f32 %v3922_v49  ;;  %v3928_v37 = vadd.f32 %v9828_v62, %v9793_v55  ;;  %v4257_v49 = vadd.f32 %v4256_v29, %v10740_v45 }
 0x55e   : > { %v8247_v26 = vpop.eup %8246  ;;  %v3959_v18 = vadd.f32 1.0, %v8245_v25  ;;  %8268 = vpow2.f32 %v6808_v20  ;;  %v4264_v5 = vpop.f32.mrb[84].mxu0 }
 0x55f   : > { %10739 = vst [vmem:[#allocation17_spill] sm:$0xff] %v9854_v4  ;;  %v8249_v0 = vpop.eup %8248  ;;  %8270 = vtanh.f32 %v9854_v4  ;;  %v9857_v51 = vpop.f32.mrb[116].mxu1 }
 0x560   : > { %v8251_v32 = vpop.eup %8250  ;;  %v4009_v47 = vadd.f32 1.0, %v8249_v0  ;;  %8272 = vrcp.f32 %v3959_v18  ;;  %v4266_v15 = vpop.f32.mrb[85].mxu0  ;;  %v4438_v18 = vadd.f32 %v4437_v36, %v10741_v1 }
 0x561   : > { %v8253_v27 = vpop.eup %8252  ;;  %v9864_v63 = vpop.f32.mrb[117].mxu1  ;;  %8274 = vpow2.f32 %v6768_v54  ;;  %v4071_v11 = vadd.f32 1.0, %v8251_v32  ;;  %v10742_v54 = vld [vmem:[#allocation18_spill] sm:$0xff]  ;;  %v4436_v32 = vadd.f32 %v9840_v40, %v10743_v10  ;;  %v10745_v40 = vld [vmem:[#allocation24_spill] sm:$0xff] }
 0x562   : > { %v8255_v20 = vpop.eup %8254  ;;  %v3960_v7 = vadd.f32 1.0, %v8253_v27  ;;  %v9866_v25 = vpop.f32.mrb[86].mxu0  ;;  %8276 = vrcp.f32 %v4009_v47  ;;  %v6801_v27 = vmul.f32 -1.442695, %v4257_v49  ;;  %v4259_v14 = vadd.f32 %v4258_v23, %v10742_v54 }
 0x563   : > { %v9868_v0 = vpop.f32.mrb[118].mxu1  ;;  %v8257_v4 = vpop.eup %8256  ;;  %v6815_v1 = vmul.f32 -1.442695, %v4438_v18 }
 0x564   : > { %v9871_v31 = vpop.f32.mrb[87].mxu0  ;;  %v9873_v55 = vpop.f32.mrb[119].mxu1  ;;  %8278 = vrcp.f32 %v3960_v7  ;;  %v4010_v29 = vadd.f32 1.0, %v8257_v4  ;;  %v6809_v10 = vmul.f32 -1.442695, %v4259_v14 }
 0x565   : > { %v8259_v62 = vpop.eup %8258  ;;  %8280 = vtanh.f32 %v3928_v37  ;;  %v6802_v14 = vmul.f32 -1.442695, %v4261_v24 }
 0x566   : > { %v8261_v45 = vpop.eup %8260  ;;  %8282 = vrcp.f32 %v4010_v29  ;;  %v9881_v37 = vpop.f32.mrb[88].mxu0  ;;  %v4072_v50 = vadd.f32 1.0, %v8259_v62 }
 0x567   : > { %v8263_v13 = vpop.eup %8262  ;;  %v3961_v28 = vadd.f32 1.0, %v8261_v45  ;;  %8284 = vrcp.f32 %v4071_v11  ;;  %v9883_v49 = vpop.f32.mrb[120].mxu1 }
 0x568   : > { %v8265_v47 = vpop.eup %8264  ;;  %v9878_v36 = vmul.f32 %v8263_v13, %v8247_v26  ;;  %v4442_v13 = vadd.f32 %v4441_v42, %v10745_v40  ;;  %v9888_v26 = vpop.f32.mrb[89].mxu0 }
 0x569   : > { %v8267_v7 = vpop.eup %8266  ;;  %v4036_v4 = vmul.f32 %v8265_v47, %v8243_v9  ;;  %8286 = vrcp.f32 %v3961_v28  ;;  %v9890_v11 = vpop.f32.mrb[121].mxu1  ;;  %v10746_v28 = vld [vmem:[#allocation19_spill] sm:$0xff] }
 0x56a   : > { %v8269_v23 = vpop.eup %8268  ;;  %v6979_v29 = vpack.c.bf16 %v9878_v36, %v9878_v36  ;;  %8288 = vpow2.f32 %v6801_v27  ;;  %v4265_v18 = vadd.f32 %v4264_v5, %v10746_v28  ;;  %v9893_v45 = vpop.f32.mrb[90].mxu0 }
 0x56b   : > { %v8271_v22 = vpop.eup %8270  ;;  %v4542_v9 = vadd.f32 1.0, %v8269_v23  ;;  %8290 = vtanh.f32 %v4436_v32  ;;  %v9895_v54 = vpop.f32.mrb[122].mxu1  ;;  %v6816_v23 = vmul.f32 -1.442695, %v4442_v13 }
 0x56c   : > { %v8273_v47 = vpop.eup %8272  ;;  %4707 = vst [vmem:[#allocation3 + $0x14] sm:$0xf] %v6979_v29  ;;  %v9897_v27 = vmul.f32 %v8271_v22, %v8255_v20  ;;  %8292 = vpow2.f32 %v6815_v1  ;;  %v9899_v42 = vpop.f32.mrb[91].mxu0  ;;  %v4267_v29 = vadd.f32 %v4266_v15, %v10711_v34  ;;  %v6810_v1 = vmul.f32 -1.442695, %v4265_v18 }
 0x56d   : > { %v9901_v40 = vpop.f32.mrb[123].mxu1  ;;  %v8275_v38 = vpop.eup %8274  ;;  %v3980_v62 = vmul.f32 %v8273_v47, %v9653_v17  ;;  %8294 = vrcp.f32 %v4542_v9 }
 0x56e   : > { %v8277_v32 = vpop.eup %8276  ;;  %v6980_v5 = vpack.c.bf16 %v9897_v27, %v9897_v27  ;;  %8296 = vpow2.f32 %v6809_v10  ;;  %v4073_v9 = vadd.f32 1.0, %v8275_v38  ;;  %v4448_v10 = vadd.f32 %v9864_v63, %v9173_v43  ;;  %v9913_v13 = vpop.f32.mrb[92].mxu0 }
 0x56f   : > { %v8279_v20 = vpop.eup %8278  ;;  %v9907_v22 = vadd.f32 %v4036_v4, %v3980_v62  ;;  %v4037_v24 = vmul.f32 %v8277_v32, %v8267_v7  ;;  %8298 = vrcp.f32 %v4072_v50  ;;  %v9915_v34 = vpop.f32.mrb[124].mxu1  ;;  %v5518_v15 = vpack.c.bf16 %v9897_v27, %v9878_v36  ;;  %v5063_v36 = vld [vmem:[%s10564_s5 + $0x2] sm:$0x3] }
 0x570   : > { %v8281_v28 = vpop.eup %8280  ;;  %4708 = vst [vmem:[#allocation3 + $0x1c] sm:$0xf] %v6980_v5  ;;  %v3981_v53 = vmul.f32 %v8279_v20, %v9665_v58  ;;  %8300 = vpow2.f32 %v6802_v14  ;;  %v6803_v58 = vmul.f32 -1.442695, %v4267_v29  ;;  %v9921_v18 = vpop.f32.mrb[93].mxu0  ;;  %v4440_v20 = vadd.f32 %v9850_v44, %v10713_v12 }
 0x571   : > { %v8283_v17 = vpop.eup %8282  ;;  %8302 = vtanh.f32 %v9907_v22  ;;  %v9923_v47 = vpop.f32.mrb[125].mxu1  ;;  %v4446_v12 = vadd.f32 %v9857_v51, %v9170_v41  ;;  %v4450_v51 = vadd.f32 %v9868_v0, %v9177_v60 }
 0x572   : > { %v8285_v7 = vpop.eup %8284  ;;  %v9919_v4 = vadd.f32 %v4037_v24, %v3981_v53  ;;  %v4038_v50 = vmul.f32 %v8283_v17, %v8281_v28  ;;  %8304 = vpow2.f32 %v6816_v23  ;;  %v4288_v43 = vpop.f32.mrb[94].mxu0  ;;  %v4269_v53 = vadd.f32 %v9866_v25, %v9123_v33 }
 0x573   : > { %v8287_v38 = vpop.eup %8286  ;;  %8306 = vpow2.f32 %v6810_v1  ;;  %v4469_v63 = vpop.f32.mrb[126].mxu1  ;;  %v6817_v28 = vmul.f32 -1.442695, %v4448_v10 }
 0x574   : > { %v8289_v14 = vpop.eup %8288  ;;  %8308 = vtanh.f32 %v9919_v4  ;;  %v3982_v62 = vmul.f32 %v8287_v38, %v9677_v3  ;;  %v4289_v32 = vpop.f32.mrb[95].mxu0  ;;  %v6811_v33 = vmul.f32 -1.442695, %v4269_v53 }
 0x575   : > { %v4470_v5 = vpop.f32.mrb[127].mxu1  ;;  %v8291_v23 = vpop.eup %8290  ;;  %8310 = vrcp.f32 %v4073_v9  ;;  %v4493_v29 = vadd.f32 1.0, %v8289_v14  ;;  %v4271_v9 = vadd.f32 %v9871_v31, %v9415_v16 }
 0x576   : > { %v8293_v24 = vpop.eup %8292  ;;  %v9931_v1 = vadd.f32 %v4038_v50, %v3982_v62  ;;  %8312 = vpow2.f32 %v6803_v58  ;;  %v4275_v62 = vadd.f32 %v9881_v37, %v9125_v35 }
 0x577   : > { %v8295_v17 = vpop.eup %8294  ;;  %8314 = vrcp.f32 %v4493_v29  ;;  %v4605_v10 = vadd.f32 1.0, %v8293_v24  ;;  %v6804_v32 = vmul.f32 -1.442695, %v4271_v9 }
 0x578   : > { %v8297_v43 = vpop.eup %8296  ;;  %8316 = vtanh.f32 %v9931_v1  ;;  %v4570_v3 = vmul.f32 %v8295_v17, %v8291_v23  ;;  %v6812_v29 = vmul.f32 -1.442695, %v4275_v62  ;;  %v4281_v62 = vadd.f32 %v9899_v42, %v9460_v59 }
 0x579   : > { %v8299_v25 = vpop.eup %8298  ;;  %v4543_v38 = vadd.f32 1.0, %v8297_v43  ;;  %8318 = vtanh.f32 %v4440_v20  ;;  %v4277_v20 = vadd.f32 %v9888_v26, %v9442_v6  ;;  %v4279_v6 = vadd.f32 %v9893_v45, %v9130_v39 }
 0x57a   : > { %v8301_v63 = vpop.eup %8300  ;;  %8320 = vpow2.f32 %v6817_v28  ;;  %v4458_v39 = vadd.f32 %v9890_v11, %v9194_v30  ;;  %v6806_v11 = vmul.f32 -1.442695, %v4281_v62  ;;  %v10748_v62 = vld [vmem:[#allocation29_spill] sm:$0xff] }
 0x57b   : > { %v8303_v44 = vpop.eup %8302  ;;  %8322 = vrcp.f32 %v4543_v38  ;;  %v4494_v50 = vadd.f32 1.0, %v8301_v63  ;;  %v6805_v38 = vmul.f32 -1.442695, %v4277_v20  ;;  %v6813_v45 = vmul.f32 -1.442695, %v4279_v6 }
 0x57c   : > { %v8305_v58 = vpop.eup %8304  ;;  %v9938_v14 = vmul.f32 %v8303_v44, %v8285_v7  ;;  %8324 = vpow2.f32 %v6811_v33  ;;  %v4452_v7 = vadd.f32 %v9873_v55, %v9181_v2  ;;  %v4456_v44 = vadd.f32 %v9883_v49, %v9190_v21 }
 0x57d   : > { %v8307_v53 = vpop.eup %8306  ;;  %8326 = vrcp.f32 %v4494_v50  ;;  %v4606_v37 = vadd.f32 1.0, %v8305_v58 }
 0x57e   : > { %v8309_v16 = vpop.eup %8308  ;;  %v6981_v31 = vpack.c.bf16 %v9938_v14, %v9938_v14  ;;  %v4544_v41 = vadd.f32 1.0, %v8307_v53  ;;  %8328 = vtanh.f32 %v4446_v12  ;;  %v6818_v33 = vmul.f32 -1.442695, %v4452_v7 }
 0x57f   : > { %v8311_v5 = vpop.eup %8310  ;;  %v9946_v23 = vmul.f32 %v8309_v16, %v8299_v25  ;;  %8330 = vrcp.f32 %v4605_v10 }
 0x580   : > { %v8313_v35 = vpop.eup %8312  ;;  %4709 = vst [vmem:[#allocation3 + $0x24] sm:$0xf] %v6981_v31  ;;  %8332 = vrcp.f32 %v4544_v41  ;;  %v6819_v41 = vmul.f32 -1.442695, %v4458_v39  ;;  %v10747_v39 = vld [vmem:[#allocation30_spill] sm:$0xff] }
 0x581   : > { %v8315_v24 = vpop.eup %8314  ;;  %v6982_v28 = vpack.c.bf16 %v9946_v23, %v9946_v23  ;;  %v4495_v60 = vadd.f32 1.0, %v8313_v35  ;;  %8334 = vpow2.f32 %v6804_v32  ;;  %v5519_v0 = vpack.c.bf16 %v9946_v23, %v9938_v14 }
 0x582   : > { %v8317_v17 = vpop.eup %8316  ;;  %v4514_v2 = vmul.f32 %v8315_v24, %v9707_v48  ;;  %8336 = vtanh.f32 %v4450_v51 }
 0x583   : > { %v8319_v55 = vpop.eup %8318  ;;  %4710 = vst [vmem:[#allocation3 + $0x2c] sm:$0xf] %v6982_v28  ;;  %v9957_v43 = vmul.f32 %v8317_v17, %v8311_v5  ;;  %8338 = vrcp.f32 %v4495_v60  ;;  %v4287_v60 = vadd.f32 %v9921_v18, %v9478_v8 }
 0x584   : > { %v8321_v26 = vpop.eup %8320  ;;  %v4577_v25 = vadd.f32 %v4570_v3, %v4514_v2  ;;  %8340 = vpow2.f32 %v6812_v29 }
 0x585   : > { %v8323_v9 = vpop.eup %8322  ;;  %v6983_v63 = vpack.c.bf16 %v9957_v43, %v9957_v43  ;;  %8342 = vrcp.f32 %v4606_v37  ;;  %v4607_v32 = vadd.f32 1.0, %v8321_v26 }
 0x586   : > { %v8325_v48 = vpop.eup %8324  ;;  %8344 = vtanh.f32 %v4577_v25  ;;  %v4571_v12 = vmul.f32 %v8323_v9, %v8319_v55  ;;  %v4462_v55 = vadd.f32 %v9901_v40, %v10688_v61  ;;  %v6807_v25 = vmul.f32 -1.442695, %v4287_v60 }
 0x587   : > { %v8327_v10 = vpop.eup %8326  ;;  %4711 = vst [vmem:[#allocation3 + $0x34] sm:$0xf] %v6983_v63  ;;  %v4545_v50 = vadd.f32 1.0, %v8325_v48  ;;  %8346 = vpow2.f32 %v6818_v33 }
 0x588   : > { %v8329_v3 = vpop.eup %8328  ;;  %v4515_v58 = vmul.f32 %v8327_v10, %v9721_v19  ;;  %8348 = vpow2.f32 %v6805_v38  ;;  %v4285_v19 = vadd.f32 %v9913_v13, %v9137_v57  ;;  %v6820_v63 = vmul.f32 -1.442695, %v4462_v55 }
 0x589   : > { %v8331_v53 = vpop.eup %8330  ;;  %8350 = vrcp.f32 %v4545_v50 }
 0x58a   : > { %v8333_v16 = vpop.eup %8332  ;;  %v4578_v21 = vadd.f32 %v4571_v12, %v4515_v58  ;;  %8352 = vtanh.f32 %v4456_v44  ;;  %v6814_v20 = vmul.f32 -1.442695, %v4285_v19 }
 0x58b   : > { %v8335_v49 = vpop.eup %8334  ;;  %v4572_v31 = vmul.f32 %v8333_v16, %v8329_v3  ;;  %8354 = vpow2.f32 %v6813_v45  ;;  %v4468_v45 = vadd.f32 %v9923_v47, %v10747_v39 }
 0x58c   : > { %v8337_v51 = vpop.eup %8336  ;;  %8356 = vtanh.f32 %v4578_v21  ;;  %v4496_v30 = vadd.f32 1.0, %v8335_v49 }
 0x58d   : > { %v8339_v5 = vpop.eup %8338  ;;  %8358 = vrcp.f32 %v4607_v32 }
 0x58e   : > { %v8341_v59 = vpop.eup %8340  ;;  %v4516_v42 = vmul.f32 %v8339_v5, %v9727_v52  ;;  %8360 = vrcp.f32 %v4496_v30  ;;  %v4460_v52 = vadd.f32 %v9895_v54, %v10687_v56 }
 0x58f   : > { %v8343_v7 = vpop.eup %8342  ;;  %v4546_v35 = vadd.f32 1.0, %v8341_v59  ;;  %8362 = vpow2.f32 %v6819_v41  ;;  %v6821_v41 = vmul.f32 -1.442695, %v4468_v45 }
 0x590   : > { %v8345_v37 = vpop.eup %8344  ;;  %v4579_v29 = vadd.f32 %v4572_v31, %v4516_v42  ;;  %8364 = vpow2.f32 %v6806_v11 }
 0x591   : > { %v8347_v24 = vpop.eup %8346  ;;  %v4633_v28 = vmul.f32 %v8345_v37, %v8331_v53  ;;  %8366 = vrcp.f32 %v4546_v35  ;;  %v4466_v53 = vadd.f32 %v9915_v34, %v10748_v62  ;;  %v7663_v34 = vld [vmem:[#allocation3 + $0x4] ss:$8 sps:$4 sm:$0xff]  }
 0x592   : > { %v8349_v57 = vpop.eup %8348  ;;  %8368 = vtanh.f32 %v4579_v29  ;;  %v4608_v12 = vadd.f32 1.0, %v8347_v24  ;;  %4992 = vmatprep.mubr.bf16.mxu0 %v7663_v34  ;;  %5267 = vmatprep.mubr.bf16.mxu1 %v7663_v34  ;;  %v10757_v34 = vld [vmem:[#allocation41_spill] sm:$0xff] }
 0x593   : > { %v8351_v13 = vpop.eup %8350  ;;  %v6970_v17 = vpack.c.bf16 %v4633_v28, %v4633_v28  ;;  %v4497_v2 = vadd.f32 1.0, %v8349_v57  ;;  %8370 = vpow2.f32 %v6814_v20  ;;  %v10750_v20 = vld [vmem:[#allocation26_spill] sm:$0xff]  ;;  %v7669_v28 = vld [vmem:[%s10565_s6 + $0x10] sm:$0xff]  }
 0x594   : > { %v8353_v33 = vpop.eup %8352  ;;  %v4573_v6 = vmul.f32 %v8351_v13, %v8337_v51  ;;  %v10749_v51 = vld [vmem:[#allocation23_spill] sm:$0xff] }
 0x595   : > { %v8355_v26 = vpop.eup %8354  ;;  %4669 = vst [vmem:[#allocation3] sm:$0xf] %v6970_v17  ;;  %8372 = vrcp.f32 %v4497_v2  ;;  %v10751_v17 = vld [vmem:[#allocation27_spill] sm:$0xff] }
 0x596   : > { %v8357_v38 = vpop.eup %8356  ;;  %v4547_v8 = vadd.f32 1.0, %v8355_v26  ;;  %8374 = vtanh.f32 %v4460_v52  ;;  %v7670_v26 = vld [vmem:[%s10565_s6 + $0x18] sm:$0xff]  }
 0x597   : > { %v8359_v18 = vpop.eup %8358  ;;  %v4634_v9 = vmul.f32 %v8357_v38, %v8343_v7  ;;  %v7665_v7 = vld [vmem:[%s10565_s6 + $0x8] sm:$0xff]  }
 0x598   : > { %v8361_v48 = vpop.eup %8360  ;;  %8376 = vrcp.f32 %v4547_v8 }
 0x599   : > { %v8363_v56 = vpop.eup %8362  ;;  %v6971_v54 = vpack.c.bf16 %v4634_v9, %v4634_v9  ;;  %v4517_v61 = vmul.f32 %v8361_v48, %v9739_v46  ;;  %8378 = vpow2.f32 %v6807_v25 }
 0x59a   : > { %v8365_v40 = vpop.eup %8364  ;;  %8380 = vpow2.f32 %v6820_v63  ;;  %v4609_v46 = vadd.f32 1.0, %v8363_v56  ;;  %v7674_v63 = vld [vmem:[%s10565_s6 + $0x20] sm:$0xff]  }
 0x59b   : > { %v8367_v44 = vpop.eup %8366  ;;  %4670 = vst [vmem:[#allocation3 + $0x8] sm:$0xf] %v6971_v54  ;;  %v4580_v10 = vadd.f32 %v4573_v6, %v4517_v61  ;;  %v4498_v50 = vadd.f32 1.0, %v8365_v40  ;;  %8382 = vrcp.f32 %v4608_v12  ;;  %v10752_v54 = vld [vmem:[#allocation25_spill] sm:$0xff] }
 0x59c   : > { %v8369_v3 = vpop.eup %8368  ;;  %v4574_v58 = vmul.f32 %v8367_v44, %v8353_v33  ;;  %v7666_v44 = vld [vmem:[#allocation3 + $0x14] ss:$8 sps:$4 sm:$0xff]  }
 0x59d   : > { %v4635_v32 = vmul.f32 %v8369_v3, %v8359_v18  ;;  %8384 = vtanh.f32 %v4580_v10  ;;  %v8371_v16 = vpop.eup %8370 }
 0x59e   : > { %8386 = vrcp.f32 %v4498_v50  ;;  %v4548_v31 = vadd.f32 1.0, %v8371_v16  ;;  %v7675_v50 = vld [vmem:[%s10565_s6 + $0x28] sm:$0xff]  }
 0x59f   : > { %v8373_v21 = vpop.eup %8372  ;;  %v6972_v49 = vpack.c.bf16 %v4635_v32, %v4635_v32  ;;  %8388 = vtanh.f32 %v4466_v53  ;;  %v7679_v53 = vld [vmem:[%s10565_s6 + $0x38] sm:$0xff]  }
 0x5a0   : > { %v4518_v30 = vmul.f32 %v8373_v21, %v10749_v51  ;;  %v8375_v11 = vpop.eup %8374  ;;  %8390 = vrcp.f32 %v4548_v31 }
 0x5a1   : > { %4671 = vst [vmem:[#allocation3 + $0x10] sm:$0xf] %v6972_v49  ;;  %8392 = vrcp.f32 %v4609_v46  ;;  %v7671_v49 = vld [vmem:[#allocation3 + $0x24] ss:$8 sps:$4 sm:$0xff]  }
 0x5a2   : > { %v8377_v47 = vpop.eup %8376  ;;  %v4581_v19 = vadd.f32 %v4574_v58, %v4518_v30  ;;  %v7661_v5 = vld [vmem:[#allocation3] ss:$8 sps:$4 sm:$0xff]   ;;  %8394 = vpow2.f32 %v6821_v41  ;;  %v7678_v58 = vld [vmem:[%s10565_s6 + $0x30] sm:$0xff]  }
 0x5a3   : > { %v8379_v59 = vpop.eup %8378  ;;  %v4575_v42 = vmul.f32 %v8377_v47, %v8375_v11  ;;  %4993 = vmatmul.mubr.bf16.vlgmr.msra.gmra.mrb[96].mxu0 %v7661_v5  ;;  %5268 = vmatmul.mubr.bf16.vlgmr.msra.gmra.mrb[128].mxu1 %v7661_v5  ;;  %v10753_v11 = vld [vmem:[#allocation37_spill] sm:$0xff]  ;;  %v10754_v47 = vld [vmem:[#allocation36_spill] sm:$0xff]  ;;  %v10756_v5 = vld [vmem:[#allocation42_spill] sm:$0xff] }
 0x5a4   : > { %8396 = vtanh.f32 %v4581_v19  ;;  %v4499_v35 = vadd.f32 1.0, %v8379_v59  ;;  %v8381_v37 = vpop.eup %8380  ;;  %7008 = vmatpush3.bf16.msra.mxu0 %v10750_v20  ;;  %5002 = vmatprep.mubr.bf16.mxu0 %v7666_v44  ;;  %v10755_v19 = vpack.c.bf16 %v10753_v11, %v10754_v47  ;;  %v10758_v59 = vpack.c.bf16 %v10756_v5, %v10757_v34 }
 0x5a5   : > { %v8383_v29 = vpop.eup %8382  ;;  %7009 = vmatprep.subr.bf16.mxu0 %v7665_v7  ;;  %v4610_v13 = vadd.f32 1.0, %v8381_v37  ;;  %5277 = vmatprep.mubr.bf16.mxu1 %v7666_v44  ;;  %v10762_v37 = vld [vmem:[#allocation45_spill] sm:$0xff] }
 0x5a6   : > { %8398 = vrcp.f32 %v4499_v35 }
 0x5a7   : > { %v8385_v24 = vpop.eup %8384  ;;  %8400 = vrcp.f32 %v4610_v13  ;;  %v10768_v13 = vld [vmem:[#allocation49_spill] sm:$0xff] }
 0x5a8   : > { %v8387_v60 = vpop.eup %8386  ;;  %v4636_v57 = vmul.f32 %v8385_v24, %v8383_v29  ;;  %7010 = vmatpush3.bf16.msra.mxu0 %v7665_v7  ;;  %v10760_v7 = vld [vmem:[#allocation43_spill] sm:$0xff]  ;;  %v10763_v29 = vld [vmem:[#allocation32_spill] sm:$0xff] }
 0x5a9   : > { %v4519_v2 = vmul.f32 %v8387_v60, %v10751_v17  ;;  %v8389_v52 = vpop.eup %8388  ;;  %7011 = vmatprep.subr.bf16.mxu0 %v7669_v28  ;;  %v5513_v20 = vpack.c.bf16 %v10763_v29, %v10762_v37  ;;  %v10764_v24 = vld [vmem:[#allocation48_spill] sm:$0xff] }
 0x5aa   : > { %v6973_v55 = vpack.c.bf16 %v4636_v57, %v4636_v57  ;;  %v8391_v33 = vpop.eup %8390  ;;  %v10767_v57 = vld [vmem:[#allocation38_spill] sm:$0xff] }
 0x5ab   : > { %v4582_v6 = vadd.f32 %v4575_v42, %v4519_v2  ;;  %v8393_v25 = vpop.eup %8392  ;;  %v4576_v38 = vmul.f32 %v8391_v33, %v8389_v52  ;;  %v10759_v42 = vld [vmem:[#allocation44_spill] sm:$0xff]  ;;  %v10769_v17 = vpack.c.bf16 %v10767_v57, %v10768_v13  ;;  %v10771_v52 = vld [vmem:[#allocation39_spill] sm:$0xff] }
 0x5ac   : > { %4672 = vst [vmem:[#allocation3 + $0x18] sm:$0xf] %v6973_v55  ;;  %v8395_v8 = vpop.eup %8394  ;;  %7012 = vmatpush3.bf16.msra.mxu0 %v7669_v28  ;;  %v10761_v35 = vpack.c.bf16 %v10759_v42, %v10760_v7  ;;  %v10765_v28 = vld [vmem:[#allocation46_spill] sm:$0xff]  ;;  %v10770_v2 = vld [vmem:[#allocation40_spill] sm:$0xff]  ;;  %v10773_v33 = vld [vmem:[#allocation51_spill] sm:$0xff] }
 0x5ad   : > { %8402 = vtanh.f32 %v4582_v6  ;;  %7013 = vmatprep.subr.bf16.mxu0 %v7670_v26  ;;  %v4611_v12 = vadd.f32 1.0, %v8395_v8  ;;  %v10766_v60 = vpack.c.bf16 %v10764_v24, %v10765_v28  ;;  %v10772_v55 = vpack.c.bf16 %v10770_v2, %v10771_v52  ;;  %v10774_v6 = vld [vmem:[#allocation50_spill] sm:$0xff] }
 0x5ae   : > { %v8397_v18 = vpop.eup %8396 }
 0x5af   : > { %v4637_v9 = vmul.f32 %v8397_v18, %v8393_v25  ;;  %8404 = vrcp.f32 %v4611_v12  ;;  %v4751_v25 = vld [vmem:[%s10564_s5] sm:$0x3]  ;;  %v10777_v18 = vld [vmem:[#allocation20_spill] sm:$0xff] }
 0x5b0   : > { %v8399_v48 = vpop.eup %8398  ;;  %7014 = vmatpush3.bf16.msra.mxu0 %v7670_v26  ;;  %v10775_v26 = vpack.c.bf16 %v10773_v33, %v10774_v6 }
 0x5b1   : > { %v6974_v56 = vpack.c.bf16 %v4637_v9, %v4637_v9  ;;  %v4520_v61 = vmul.f32 %v8399_v48, %v10752_v54  ;;  %7015 = vmatprep.subr.bf16.mxu0 %v7674_v63  ;;  %v8401_v39 = vpop.eup %8400  ;;  %v10045_v9 = vrot.slane %v4751_v25, %v10777_v18  ;;  %v10053_v54 = vrot.slane %v5063_v36, %v10777_v18 }
 0x5b3   : > { %4673 = vst [vmem:[#allocation3 + $0x20] sm:$0xf] %v6974_v56  ;;  %v4583_v40 = vadd.f32 %v4576_v38, %v4520_v61  ;;  %v7668_v10 = vld [vmem:[#allocation3 + $0x10] ss:$8 sps:$4 sm:$0xff]   ;;  %v10776_v38 = vld [vmem:[#allocation16_spill] sm:$0xff] }
 0x5b4   : > { %5003 = vmatmul.mubr.bf16.gmra.mrb[100].mxu0 %v7668_v10  ;;  %5278 = vmatmul.mubr.bf16.gmra.mrb[132].mxu1 %v7668_v10  ;;  %v10042_v8 = vrot.slane %v4751_v25, %v10776_v38 }
 0x5b5   : > { %8406 = vtanh.f32 %v4583_v40  ;;  %7016 = vmatpush3.bf16.msra.mxu0 %v7674_v63  ;;  %5012 = vmatprep.mubr.bf16.mxu0 %v7671_v49 }
 0x5b6   : > { %7017 = vmatprep.subr.bf16.mxu0 %v7675_v50  ;;  %5287 = vmatprep.mubr.bf16.mxu1 %v7671_v49 }
 0x5b7   : > { %v8403_v45 = vpop.eup %8402 }
 0x5b8   : > { %v4638_v3 = vmul.f32 %v8403_v45, %v8401_v39 }
 0x5b9   : > { %7018 = vmatpush3.bf16.msra.mxu0 %v7675_v50  ;;  %v8405_v32 = vpop.eup %8404 }
 0x5ba   : > { %v6975_v62 = vpack.c.bf16 %v4638_v3, %v4638_v3  ;;  %7019 = vmatprep.subr.bf16.mxu0 %v7678_v58 }
 0x5bc   : > { %4674 = vst [vmem:[#allocation3 + $0x28] sm:$0xf] %v6975_v62 }
 0x5bd   : > { %7020 = vmatpush3.bf16.msra.mxu0 %v7678_v58  ;;  %v10059_v58 = vrot.slane %v5063_v36, %v10776_v38 }
 0x5be   : > { %7021 = vmatprep.subr.bf16.mxu0 %v7679_v53 }
 0x5bf   : > { %v8407_v16 = vpop.eup %8406 }
 0x5c0   : > { %v4639_v46 = vmul.f32 %v8407_v16, %v8405_v32 }
 0x5c1   : > { %7022 = vmatpush3.bf16.msra.mxu0 %v7679_v53 }
 0x5c2   : > { %v6976_v21 = vpack.c.bf16 %v4639_v46, %v4639_v46 }
 0x5c3   : > { %v7673_v31 = vld [vmem:[#allocation3 + $0x20] ss:$8 sps:$4 sm:$0xff]  }
 0x5c4   : > { %4675 = vst [vmem:[#allocation3 + $0x30] sm:$0xf] %v6976_v21  ;;  %5013 = vmatmul.mubr.bf16.gmra.mrb[104].mxu0 %v7673_v31  ;;  %5288 = vmatmul.mubr.bf16.gmra.mrb[136].mxu1 %v7673_v31 }
 0x5cb   : > { %v4718_v41 = vld [vmem:[#allocation3 + $0x30] sm:$0xff] }
 0x5cc   : > { %v6843_v51 = vcombine.high %v4718_v41, %v4718_v41  ;;  %v6842_v30 = vcombine.low %v4718_v41, %v4718_v41 }
 0x5ce   : > { %5022 = vmatprep.mubr.bf16.mxu0 %v6843_v51  ;;  %5297 = vmatprep.mubr.bf16.mxu1 %v6843_v51 }
 0x5cf   : > { %5023 = vmatmul.mubr.bf16.gmra.mrb[108].mxu0 %v6842_v30  ;;  %5298 = vmatmul.mubr.bf16.gmra.mrb[140].mxu1 %v6842_v30 }
 0x5d0   : > { %7023 = vmatprep.mubr.bf16.mxu0 %v10755_v19 }
 0x5d7   : > { %7024 = vmatmul.mubr.bf16.vlgmr.msra.gmra.mrb[112].mxu0 %v10758_v59 }
 0x5d8   : > { %7027 = vmatprep.mubr.bf16.mxu0 %v10761_v35 }
 0x5df   : > { %7028 = vmatmul.mubr.bf16.gmra.mrb[116].mxu0 %v5513_v20 }
 0x5e0   : > { %7031 = vmatprep.mubr.bf16.mxu0 %v10766_v60 }
 0x5e7   : > { %7032 = vmatmul.mubr.bf16.gmra.mrb[120].mxu0 %v10769_v17 }
 0x5e8   : > { %7035 = vmatprep.mubr.bf16.mxu0 %v10772_v55 }
 0x5ef   : > { %7036 = vmatmul.mubr.bf16.gmra.mrb[124].mxu0 %v10775_v26 }
 0x5f0   : > { %7039 = vmatprep.mubr.bf16.mxu0 %v5518_v15 }
 0x5f7   : > { %7040 = vmatmul.mubr.bf16.gmra.mrb[128].mxu0 %v5519_v0 }
 0x676   : > { %v4994_v63 = vpop.f32.mrb[96].mxu0  ;;  %v5269_v27 = vpop.f32.mrb[128].mxu1 }
 0x677   : > { %v4995_v15 = vadd.f32 %v4994_v63, %v10042_v8  ;;  %v4996_v14 = vpop.f32.mrb[97].mxu0  ;;  %v5271_v23 = vpop.f32.mrb[129].mxu1  ;;  %v5270_v53 = vadd.f32 %v5269_v27, %v10059_v58 }
 0x678   : > { %v4997_v0 = vadd.f32 %v4996_v14, %v10045_v9  ;;  %v4998_v48 = vpop.f32.mrb[98].mxu0  ;;  %v5273_v12 = vpop.f32.mrb[130].mxu1  ;;  %v5272_v3 = vadd.f32 %v5271_v23, %v10053_v54  ;;  %v10778_v14 = vld [vmem:[#allocation28_spill] sm:$0xff] }
 0x679   : > { %v6915_v56 = vmul.f32 -1.442695, %v4995_v15  ;;  %v4999_v61 = vadd.f32 %v4998_v48, %v10042_v8  ;;  %v5000_v40 = vpop.f32.mrb[99].mxu0  ;;  %v5275_v44 = vpop.f32.mrb[131].mxu1  ;;  %v5274_v16 = vadd.f32 %v5273_v12, %v10059_v58 }
 0x67a   : > { %v6908_v10 = vmul.f32 -1.442695, %v4997_v0  ;;  %v5001_v50 = vadd.f32 %v5000_v40, %v10045_v9  ;;  %v6922_v62 = vmul.f32 -1.442695, %v5272_v3  ;;  %v5276_v32 = vadd.f32 %v5275_v44, %v10053_v54 }
 0x67b   : > { %8408 = vpow2.f32 %v6915_v56  ;;  %v6916_v39 = vmul.f32 -1.442695, %v4999_v61 }
 0x67c   : > { %8410 = vpow2.f32 %v6908_v10  ;;  %v6909_v45 = vmul.f32 -1.442695, %v5001_v50  ;;  %v6923_v31 = vmul.f32 -1.442695, %v5276_v32 }
 0x67d   : > { %8412 = vpow2.f32 %v6916_v39 }
 0x67e   : > { %8414 = vpow2.f32 %v6909_v45 }
 0x67f   : > { %8416 = vpow2.f32 %v6922_v62  ;;  %v10779_v62 = vld [vmem:[#allocation31_spill] sm:$0xff] }
 0x680   : > { %8418 = vtanh.f32 %v5270_v53 }
 0x681   : > { %8420 = vtanh.f32 %v5274_v16 }
 0x685   : > { %v8409_v46 = vpop.eup %8408 }
 0x686   : > { %v8411_v21 = vpop.eup %8410  ;;  %v5376_v49 = vadd.f32 1.0, %v8409_v46 }
 0x687   : > { %v5327_v41 = vadd.f32 1.0, %v8411_v21  ;;  %v5004_v51 = vpop.f32.mrb[100].mxu0  ;;  %v5279_v30 = vpop.f32.mrb[132].mxu1 }
 0x688   : > { %v8413_v11 = vpop.eup %8412  ;;  %8422 = vrcp.f32 %v5376_v49  ;;  %v5005_v47 = vadd.f32 %v5004_v51, %v10042_v8  ;;  %v5006_v19 = vpop.f32.mrb[101].mxu0  ;;  %v5280_v27 = vadd.f32 %v5279_v30, %v10059_v58 }
 0x689   : > { %v5281_v5 = vpop.f32.mrb[133].mxu1  ;;  %8424 = vrcp.f32 %v5327_v41  ;;  %v5377_v34 = vadd.f32 1.0, %v8413_v11  ;;  %v5007_v59 = vadd.f32 %v5006_v19, %v10045_v9  ;;  %v5008_v7 = vpop.f32.mrb[102].mxu0 }
 0x68a   : > { %v5282_v42 = vadd.f32 %v5281_v5, %v10053_v54  ;;  %v5283_v35 = vpop.f32.mrb[134].mxu1  ;;  %v8415_v37 = vpop.eup %8414  ;;  %8426 = vpow2.f32 %v6923_v31  ;;  %v6917_v29 = vmul.f32 -1.442695, %v5005_v47  ;;  %v5009_v20 = vadd.f32 %v5008_v7, %v10042_v8 }
 0x68b   : > { %v5010_v24 = vpop.f32.mrb[103].mxu0  ;;  %v5285_v28 = vpop.f32.mrb[135].mxu1  ;;  %8428 = vrcp.f32 %v5377_v34  ;;  %v5328_v60 = vadd.f32 1.0, %v8415_v37  ;;  %v6910_v57 = vmul.f32 -1.442695, %v5007_v59  ;;  %v5284_v49 = vadd.f32 %v5283_v35, %v10059_v58 }
 0x68c   : > { %8430 = vpow2.f32 %v6917_v29  ;;  %v5011_v13 = vadd.f32 %v5010_v24, %v10045_v9  ;;  %v6924_v17 = vmul.f32 -1.442695, %v5282_v42  ;;  %v5286_v2 = vadd.f32 %v5285_v28, %v10053_v54  ;;  %v8417_v55 = vpop.eup %8416 }
 0x68d   : > { %8432 = vrcp.f32 %v5328_v60  ;;  %v6918_v52 = vmul.f32 -1.442695, %v5009_v20  ;;  %v8419_v33 = vpop.eup %8418  ;;  %v5439_v18 = vadd.f32 1.0, %v8417_v55 }
 0x68e   : > { %8434 = vpow2.f32 %v6910_v57  ;;  %v6911_v6 = vmul.f32 -1.442695, %v5011_v13  ;;  %v8421_v26 = vpop.eup %8420  ;;  %v6925_v25 = vmul.f32 -1.442695, %v5286_v2 }
 0x68f   : > { %8436 = vpow2.f32 %v6924_v17 }
 0x690   : > { %8438 = vpow2.f32 %v6918_v52 }
 0x691   : > { %8440 = vpow2.f32 %v6911_v6 }
 0x692   : > { %v8423_v38 = vpop.eup %8422  ;;  %8442 = vpow2.f32 %v6925_v25 }
 0x693   : > { %v8425_v63 = vpop.eup %8424  ;;  %v5404_v36 = vmul.f32 %v8423_v38, %v8419_v33  ;;  %8444 = vrcp.f32 %v5439_v18 }
 0x694   : > { %v8427_v15 = vpop.eup %8426  ;;  %v5348_v23 = vmul.f32 %v8425_v63, %v10778_v14  ;;  %8446 = vtanh.f32 %v5280_v27 }
 0x695   : > { %v8429_v0 = vpop.eup %8428  ;;  %v5440_v40 = vadd.f32 1.0, %v8427_v15 }
 0x696   : > { %v8431_v48 = vpop.eup %8430  ;;  %v5405_v12 = vmul.f32 %v8429_v0, %v8421_v26  ;;  %v5411_v56 = vadd.f32 %v5404_v36, %v5348_v23 }
 0x697   : > { %v8433_v61 = vpop.eup %8432  ;;  %v5378_v44 = vadd.f32 1.0, %v8431_v48  ;;  %v5014_v10 = vpop.f32.mrb[104].mxu0 }
 0x698   : > { %v5289_v50 = vpop.f32.mrb[136].mxu1  ;;  %v5015_v39 = vadd.f32 %v5014_v10, %v10042_v8  ;;  %v5016_v45 = vpop.f32.mrb[105].mxu0  ;;  %8448 = vtanh.f32 %v5411_v56  ;;  %v5349_v53 = vmul.f32 %v8433_v61, %v10779_v62 }
 0x699   : > { %v5291_v3 = vpop.f32.mrb[137].mxu1  ;;  %8450 = vrcp.f32 %v5378_v44  ;;  %v5017_v32 = vadd.f32 %v5016_v45, %v10045_v9  ;;  %v5018_v16 = vpop.f32.mrb[106].mxu0  ;;  %v5290_v7 = vadd.f32 %v5289_v50, %v10059_v58 }
 0x69a   : > { %v5293_v46 = vpop.f32.mrb[138].mxu1  ;;  %v8435_v21 = vpop.eup %8434  ;;  %v6919_v31 = vmul.f32 -1.442695, %v5015_v39  ;;  %8452 = vrcp.f32 %v5440_v40  ;;  %v5019_v5 = vadd.f32 %v5018_v16, %v10042_v8  ;;  %v10077_v59 = vadd.f32 %v5405_v12, %v5349_v53  ;;  %v10780_v39 = vld [vmem:[#allocation47_spill] sm:$0xff] }
 0x69b   : > { %v5020_v41 = vpop.f32.mrb[107].mxu0  ;;  %v5295_v51 = vpop.f32.mrb[139].mxu1  ;;  %v5329_v11 = vadd.f32 1.0, %v8435_v21  ;;  %v6912_v19 = vmul.f32 -1.442695, %v5017_v32  ;;  %v5292_v24 = vadd.f32 %v5291_v3, %v10053_v54  ;;  %v5294_v61 = vadd.f32 %v5293_v46, %v10059_v58 }
 0x69c   : > { %v8437_v30 = vpop.eup %8436  ;;  %8454 = vpow2.f32 %v6919_v31  ;;  %v5021_v35 = vadd.f32 %v5020_v41, %v10045_v9  ;;  %v6920_v60 = vmul.f32 -1.442695, %v5019_v5  ;;  %v5296_v0 = vadd.f32 %v5295_v51, %v10053_v54  ;;  %v10781_v5 = vld [vmem:[#allocation17_spill] sm:$0xff] }
 0x69d   : > { %v8439_v47 = vpop.eup %8438  ;;  %8456 = vrcp.f32 %v5329_v11  ;;  %v5441_v29 = vadd.f32 1.0, %v8437_v30  ;;  %v6926_v63 = vmul.f32 -1.442695, %v5292_v24 }
 0x69e   : > { %v5379_v34 = vadd.f32 1.0, %v8439_v47  ;;  %v8441_v42 = vpop.eup %8440  ;;  %8458 = vtanh.f32 %v5284_v49  ;;  %v6913_v26 = vmul.f32 -1.442695, %v5021_v35  ;;  %v6927_v3 = vmul.f32 -1.442695, %v5296_v0 }
 0x69f   : > { %v8443_v37 = vpop.eup %8442  ;;  %v5330_v20 = vadd.f32 1.0, %v8441_v42 }
 0x6a0   : > { %8460 = vrcp.f32 %v5379_v34  ;;  %v8445_v28 = vpop.eup %8444  ;;  %v5442_v2 = vadd.f32 1.0, %v8443_v37 }
 0x6a1   : > { %8462 = vpow2.f32 %v6912_v19  ;;  %v8447_v17 = vpop.eup %8446 }
 0x6a2   : > { %v5024_v57 = vpop.f32.mrb[108].mxu0  ;;  %v5299_v13 = vpop.f32.mrb[140].mxu1  ;;  %8464 = vrcp.f32 %v5330_v20 }
 0x6a3   : > { %v5025_v52 = vadd.f32 %v5024_v57, %v10042_v8  ;;  %v5026_v55 = vpop.f32.mrb[109].mxu0  ;;  %v5301_v33 = vpop.f32.mrb[141].mxu1  ;;  %8466 = vtanh.f32 %v5290_v7  ;;  %v5300_v53 = vadd.f32 %v5299_v13, %v10059_v58 }
 0x6a4   : > { %v8449_v6 = vpop.eup %8448  ;;  %v5028_v25 = vpop.f32.mrb[110].mxu0  ;;  %8468 = vrcp.f32 %v5441_v29  ;;  %v5027_v36 = vadd.f32 %v5026_v55, %v10045_v9  ;;  %v10092_v9 = vld [vmem:[%s10566_s7] ss:$0 sm:$0xff]  ;;  %v5302_v32 = vadd.f32 %v5301_v33, %v10053_v54 }
 0x6a5   : > { %v5303_v38 = vpop.f32.mrb[142].mxu1  ;;  %v8451_v18 = vpop.eup %8450  ;;  %v5467_v14 = vmul.f32 %v8449_v6, %v8445_v28  ;;  %8470 = vpow2.f32 %v6920_v60  ;;  %v6921_v8 = vmul.f32 -1.442695, %v5025_v52 }
 0x6a6   : > { %v5029_v27 = vpop.f32.mrb[111].mxu0  ;;  %v5304_v15 = vpop.f32.mrb[143].mxu1  ;;  %v5406_v23 = vmul.f32 %v8451_v18, %v8447_v17  ;;  %8472 = vrcp.f32 %v5442_v2  ;;  %v6914_v10 = vmul.f32 -1.442695, %v5027_v36  ;;  %v6928_v57 = vmul.f32 -1.442695, %v5302_v32 }
 0x6a7   : > { %v10085_v48 = vpop.eup %8452  ;;  %v5520_v12 = vpack.c.bf16 %v5467_v14, %v9957_v43  ;;  %8474 = vpow2.f32 %v6913_v26 }
 0x6a8   : > { %v8455_v56 = vpop.eup %8454  ;;  %8476 = vpow2.f32 %v6926_v63 }
 0x6a9   : > { %v8457_v40 = vpop.eup %8456  ;;  %v5380_v44 = vadd.f32 1.0, %v8455_v56  ;;  %7043 = vmatprep.mubr.bf16.mxu0 %v5520_v12  ;;  %8478 = vpow2.f32 %v6921_v8 }
 0x6aa   : > { %v8459_v50 = vpop.eup %8458  ;;  %v5350_v45 = vmul.f32 %v8457_v40, %v10780_v39  ;;  %v7025_v43 = vpop.f32.mrb[112].mxu0 }
 0x6ab   : > { %v8461_v62 = vpop.eup %8460  ;;  %8480 = vrcp.f32 %v5380_v44  ;;  %v10098_v16 = vadd.f32 %v7025_v43, %v10092_v9  ;;  %v5629_v46 = vpop.f32.mrb[113].mxu0 }
 0x6ac   : > { %v8463_v21 = vpop.eup %8462  ;;  %v5407_v49 = vmul.f32 %v8461_v62, %v8459_v50  ;;  %8482 = vtanh.f32 %v5294_v61  ;;  %v10101_v31 = vadd.f32 %v10092_v9, %v5629_v46  ;;  %v7026_v41 = vpop.f32.mrb[114].mxu0  ;;  %v5413_v51 = vadd.f32 %v5406_v23, %v5350_v45 }
 0x6ad   : > { %v8465_v30 = vpop.eup %8464  ;;  %v5331_v11 = vadd.f32 1.0, %v8463_v21  ;;  %8484 = vpow2.f32 %v6914_v10  ;;  %v10104_v47 = vadd.f32 %v7026_v41, %v10092_v9  ;;  %v5632_v58 = vpop.f32.mrb[115].mxu0  ;;  %v5747_v54 = vsel %vm5740_vm0, %v10098_v16, -inf }
 0x6ae   : > { %v8467_v19 = vpop.eup %8466  ;;  %v5351_v34 = vmul.f32 %v8465_v30, %v10781_v5  ;;  %8486 = vpow2.f32 %v6927_v3  ;;  %v10110_v42 = vadd.f32 %v10092_v9, %v5632_v58  ;;  %5748 = vmax.xlane.f32.xlu1 %v5747_v54  ;;  %v5741_v7 = vsel %vm5740_vm0, %v10101_v31, -inf }
 0x6af   : > { %v8469_v35 = vpop.eup %8468  ;;  %8488 = vrcp.f32 %v5331_v11  ;;  %5742 = vmax.xlane.f32.xlu0 %v5741_v7  ;;  %v5750_v28 = vsel %vm5740_vm0, %v10104_v47, -inf }
 0x6b0   : > { %v8471_v37 = vpop.eup %8470  ;;  %8490 = vtanh.f32 %v10077_v59  ;;  %v5414_v29 = vadd.f32 %v5407_v49, %v5351_v34  ;;  %v5744_v17 = vsel %vm5740_vm0, %v10110_v42, -inf }
 0x6b1   : > { %v10115_v20 = vpop.eup %8472  ;;  %v5381_v24 = vadd.f32 1.0, %v8471_v37  ;;  %8492 = vtanh.f32 %v5413_v51 }
 0x6b2   : > { %v8475_v60 = vpop.eup %8474  ;;  %8494 = vtanh.f32 %v5300_v53  ;;  %5751 = vmax.xlane.f32.xlu1 %v5750_v28  ;;  %v7029_v13 = vpop.f32.mrb[116].mxu0 }
 0x6b3   : > { %v8477_v2 = vpop.eup %8476  ;;  %8496 = vrcp.f32 %v5381_v24  ;;  %v5332_v52 = vadd.f32 1.0, %v8475_v60  ;;  %v10122_v59 = vadd.f32 %v7029_v13, %v10092_v9  ;;  %v5645_v55 = vpop.f32.mrb[117].mxu0  ;;  %5745 = vmax.xlane.f32.xlu0 %v5744_v17 }
 0x6b4   : > { %v8479_v33 = vpop.eup %8478  ;;  %v7030_v6 = vpop.f32.mrb[118].mxu0  ;;  %8498 = vtanh.f32 %v5414_v29  ;;  %v10130_v15 = vadd.f32 %v10092_v9, %v5645_v55  ;;  %v5443_v61 = vadd.f32 1.0, %v8477_v2 }
 0x6b5   : > { %v8481_v26 = vpop.eup %8480  ;;  %8500 = vrcp.f32 %v5332_v52  ;;  %v5382_v25 = vadd.f32 1.0, %v8479_v33  ;;  %v10125_v38 = vadd.f32 %v7030_v6, %v10092_v9  ;;  %v5648_v18 = vpop.f32.mrb[119].mxu0  ;;  %v5759_v63 = vsel %vm5740_vm0, %v10122_v59, -inf }
 0x6b6   : > { %v8483_v36 = vpop.eup %8482  ;;  %v5408_v27 = vmul.f32 %v8481_v26, %v8467_v19  ;;  %8502 = vpow2.f32 %v6928_v57  ;;  %v10133_v23 = vadd.f32 %v10092_v9, %v5648_v18  ;;  %v5753_v50 = vsel %vm5740_vm0, %v10130_v15, -inf }
 0x6b7   : > { %v8485_v14 = vpop.eup %8484  ;;  %8504 = vrcp.f32 %v5382_v25  ;;  %5760 = vmax.xlane.f32.xlu0 %v5759_v63  ;;  %v5762_v0 = vsel %vm5740_vm0, %v10125_v38, -inf }
 0x6b8   : > { %v8487_v8 = vpop.eup %8486  ;;  %v5333_v12 = vadd.f32 1.0, %v8485_v14  ;;  %5763 = vmax.xlane.f32.xlu1 %v5762_v0  ;;  %v5756_v43 = vsel %vm5740_vm0, %v10133_v23, -inf }
 0x6b9   : > { %v8489_v56 = vpop.eup %8488  ;;  %v5444_v58 = vadd.f32 1.0, %v8487_v8 }
 0x6ba   : > { %v8491_v40 = vpop.eup %8490  ;;  %v5352_v44 = vmul.f32 %v8489_v56, %v9907_v22  ;;  %8506 = vrcp.f32 %v5333_v12  ;;  %v7033_v10 = vpop.f32.mrb[120].mxu0 }
 0x6bb   : > { %v8493_v39 = vpop.eup %8492  ;;  %v10141_v45 = vadd.f32 %v7033_v10, %v10092_v9  ;;  %v5661_v3 = vpop.f32.mrb[121].mxu0  ;;  %5754 = vmax.xlane.f32.xlu0 %v5753_v50  ;;  %v5468_v62 = vmul.f32 %v8491_v40, %v10085_v48  ;;  %8508 = vrcp.f32 %v5443_v61 }
 0x6bc   : > { %v8495_v53 = vpop.eup %8494  ;;  %v7034_v32 = vpop.f32.mrb[122].mxu0  ;;  %5757 = vmax.xlane.f32.xlu1 %v5756_v43  ;;  %v5469_v22 = vmul.f32 %v8493_v39, %v8469_v35  ;;  %v5415_v46 = vadd.f32 %v5408_v27, %v5352_v44  ;;  %v10152_v54 = vadd.f32 %v10092_v9, %v5661_v3 }
 0x6bd   : > { %v8497_v21 = vpop.eup %8496  ;;  %v10147_v49 = vadd.f32 %v7034_v32, %v10092_v9  ;;  %v5664_v41 = vpop.f32.mrb[123].mxu0  ;;  %v5771_v51 = vsel %vm5740_vm0, %v10141_v45, -inf }
 0x6be   : > { %v8499_v30 = vpop.eup %8498  ;;  %v5409_v11 = vmul.f32 %v8497_v21, %v8483_v36  ;;  %v5521_v48 = vpack.c.bf16 %v5469_v22, %v5468_v62  ;;  %v10155_v5 = vadd.f32 %v10092_v9, %v5664_v41  ;;  %8510 = vtanh.f32 %v5415_v46 }
 0x6bf   : > { %v8501_v19 = vpop.eup %8500  ;;  %5772 = vmax.xlane.f32.xlu0 %v5771_v51  ;;  %v5774_v34 = vsel %vm5740_vm0, %v10147_v49, -inf  ;;  %v5470_v7 = vmul.f32 %v8499_v30, %v10115_v20  ;;  %v5765_v60 = vsel %vm5740_vm0, %v10152_v54, -inf  ;;  %8512 = vrcp.f32 %v5444_v58 }
 0x6c0   : > { %v8503_v35 = vpop.eup %8502  ;;  %v5353_v37 = vmul.f32 %v8501_v19, %v9919_v4  ;;  %5775 = vmax.xlane.f32.xlu1 %v5774_v34  ;;  %7044 = vmatmul.mubr.bf16.gmra.mrb[132].mxu0 %v5521_v48  ;;  %v5768_v20 = vsel %vm5740_vm0, %v10155_v5, -inf }
 0x6c1   : > { %v8505_v29 = vpop.eup %8504  ;;  %v5445_v4 = vadd.f32 1.0, %v8503_v35 }
 0x6c2   : > { %v5410_v24 = vmul.f32 %v8505_v29, %v8495_v53  ;;  %v7037_v28 = vpop.f32.mrb[124].mxu0  ;;  %v5416_v57 = vadd.f32 %v5409_v11, %v5353_v37 }
 0x6c3   : > { %v10164_v13 = vadd.f32 %v7037_v28, %v10092_v9  ;;  %v5677_v17 = vpop.f32.mrb[125].mxu0  ;;  %5766 = vmax.xlane.f32.xlu0 %v5765_v60 }
 0x6c4   : > { %v8507_v2 = vpop.eup %8506  ;;  %v7038_v52 = vpop.f32.mrb[126].mxu0  ;;  %5769 = vmax.xlane.f32.xlu1 %v5768_v20  ;;  %8514 = vtanh.f32 %v5416_v57  ;;  %v10175_v25 = vadd.f32 %v10092_v9, %v5677_v17 }
 0x6c5   : > { %v5354_v55 = vmul.f32 %v8507_v2, %v9931_v1  ;;  %v10170_v33 = vadd.f32 %v7038_v52, %v10092_v9  ;;  %v5680_v6 = vpop.f32.mrb[127].mxu0  ;;  %v5783_v26 = vsel %vm5740_vm0, %v10164_v13, -inf  ;;  %v8509_v18 = vpop.eup %8508  ;;  %8516 = vrcp.f32 %v5445_v4 }
 0x6c6   : > { %v10178_v63 = vadd.f32 %v10092_v9, %v5680_v6  ;;  %v5777_v0 = vsel %vm5740_vm0, %v10175_v25, -inf }
 0x6c7   : > { %5784 = vmax.xlane.f32.xlu0 %v5783_v26  ;;  %v5786_v36 = vsel %vm5740_vm0, %v10170_v33, -inf  ;;  %v5417_v27 = vadd.f32 %v5410_v24, %v5354_v55 }
 0x6c8   : > { %5787 = vmax.xlane.f32.xlu1 %v5786_v36  ;;  %v8511_v1 = vpop.eup %8510  ;;  %v5780_v61 = vsel %vm5740_vm0, %v10178_v63, -inf }
 0x6c9   : > { %8518 = vtanh.f32 %v5417_v27  ;;  %v5471_v8 = vmul.f32 %v8511_v1, %v8509_v18  ;;  %v8513_v10 = vpop.eup %8512 }
 0x6ca   : > { %v7041_v14 = vpop.f32.mrb[128].mxu0 }
 0x6cb   : > { %v10185_v12 = vadd.f32 %v7041_v14, %v10092_v9  ;;  %v5693_v56 = vpop.f32.mrb[129].mxu0  ;;  %5778 = vmax.xlane.f32.xlu0 %v5777_v0  ;;  %v5522_v40 = vpack.c.bf16 %v5471_v8, %v5470_v7 }
 0x6cc   : > { %v7042_v44 = vpop.f32.mrb[130].mxu0  ;;  %5781 = vmax.xlane.f32.xlu1 %v5780_v61  ;;  %v10195_v62 = vadd.f32 %v10092_v9, %v5693_v56 }
 0x6cd   : > { %v10190_v50 = vadd.f32 %v7042_v44, %v10092_v9  ;;  %v5696_v39 = vpop.f32.mrb[131].mxu0  ;;  %v5795_v3 = vsel %vm5740_vm0, %v10185_v12, -inf  ;;  %7047 = vmatprep.mubr.bf16.mxu0 %v5522_v40 }
 0x6ce   : > { %v8515_v43 = vpop.eup %8514  ;;  %v10198_v53 = vadd.f32 %v10092_v9, %v5696_v39  ;;  %v5789_v21 = vsel %vm5740_vm0, %v10195_v62, -inf }
 0x6cf   : > { %5796 = vmax.xlane.f32.xlu0 %v5795_v3  ;;  %v5798_v32 = vsel %vm5740_vm0, %v10190_v50, -inf  ;;  %v5472_v22 = vmul.f32 %v8515_v43, %v8513_v10  ;;  %v8517_v46 = vpop.eup %8516 }
 0x6d0   : > { %5799 = vmax.xlane.f32.xlu1 %v5798_v32  ;;  %v5792_v51 = vsel %vm5740_vm0, %v10198_v53, -inf }
 0x6d3   : > { %v8519_v41 = vpop.eup %8518  ;;  %5790 = vmax.xlane.f32.xlu0 %v5789_v21 }
 0x6d4   : > { %v5473_v30 = vmul.f32 %v8519_v41, %v8517_v46  ;;  %5793 = vmax.xlane.f32.xlu1 %v5792_v51 }
 0x6d6   : > { %v5523_v11 = vpack.c.bf16 %v5473_v30, %v5472_v22 }
 0x6d8   : > { %7048 = vmatmul.mubr.bf16.gmra.mrb[136].mxu0 %v5523_v11 }
 0x73b   : > { %v5749_v48 = vpop.xlane.xlu1 %5748 }
 0x73c   : > { %v5743_v58 = vpop.xlane.xlu0 %5742  ;;  %v5827_v14 = vsub.f32 %v10098_v16, %v5749_v48 }
 0x73d   : > { %v5825_v36 = vsub.f32 %v10101_v31, %v5743_v58 }
 0x73e   : > { %v5857_v44 = vmul.f32 1.442695, %v5827_v14 }
 0x73f   : > { %v5752_v34 = vpop.xlane.xlu1 %5751  ;;  %v5853_v0 = vmul.f32 1.442695, %v5825_v36 }
 0x740   : > { %v5746_v19 = vpop.xlane.xlu0 %5745  ;;  %v5828_v56 = vsub.f32 %v10104_v47, %v5752_v34 }
 0x741   : > { %v5826_v1 = vsub.f32 %v10110_v42, %v5746_v19  ;;  %8520 = vpow2.f32 %v5853_v0 }
 0x742   : > { %v5859_v3 = vmul.f32 1.442695, %v5828_v56 }
 0x743   : > { %v5855_v61 = vmul.f32 1.442695, %v5826_v1 }
 0x744   : > { %v5761_v29 = vpop.xlane.xlu0 %5760 }
 0x745   : > { %v5764_v20 = vpop.xlane.xlu1 %5763  ;;  %8522 = vpow2.f32 %v5855_v61  ;;  %v5831_v47 = vsub.f32 %v10122_v59, %v5761_v29 }
 0x746   : > { %8524 = vpow2.f32 %v5857_v44  ;;  %v5832_v51 = vsub.f32 %v10125_v38, %v5764_v20 }
 0x747   : > { %8526 = vpow2.f32 %v5859_v3  ;;  %v5865_v58 = vmul.f32 1.442695, %v5831_v47 }
 0x748   : > { %v5755_v55 = vpop.xlane.xlu0 %5754  ;;  %v5867_v38 = vmul.f32 1.442695, %v5832_v51 }
 0x749   : > { %v5758_v26 = vpop.xlane.xlu1 %5757  ;;  %v5829_v10 = vsub.f32 %v10130_v15, %v5755_v55 }
 0x74a   : > { %v5830_v31 = vsub.f32 %v10133_v23, %v5758_v26 }
 0x74b   : > { %v5861_v22 = vmul.f32 1.442695, %v5829_v10 }
 0x74c   : > { %v5773_v18 = vpop.xlane.xlu0 %5772  ;;  %v5863_v30 = vmul.f32 1.442695, %v5830_v31 }
 0x74d   : > { %v10227_v27 = vpop.xlane.xlu1 %5775  ;;  %8528 = vpow2.f32 %v5861_v22 }
 0x74e   : > { %8530 = vpow2.f32 %v5863_v30 }
 0x74f   : > { %8532 = vpow2.f32 %v5865_v58 }
 0x750   : > { %v5767_v8 = vpop.xlane.xlu0 %5766  ;;  %8534 = vpow2.f32 %v5867_v38 }
 0x751   : > { %v5770_v40 = vpop.xlane.xlu1 %5769  ;;  %v5833_v48 = vsub.f32 %v10152_v54, %v5767_v8  ;;  %v5835_v54 = vsub.f32 %v10141_v45, %v5773_v18 }
 0x753   : > { %v5873_v45 = vmul.f32 1.442695, %v5835_v54 }
 0x754   : > { %v10234_v32 = vpop.xlane.xlu0 %5784 }
 0x755   : > { %v10240_v21 = vpop.xlane.xlu1 %5787 }
 0x758   : > { %v5779_v19 = vpop.xlane.xlu0 %5778 }
 0x759   : > { %v5837_v26 = vsub.f32 %v10175_v25, %v5779_v19  ;;  %v5839_v25 = vsub.f32 %v10164_v13, %v10234_v32 }
 0x75b   : > { %v5877_v8 = vmul.f32 1.442695, %v5837_v26  ;;  %v5881_v13 = vmul.f32 1.442695, %v5839_v25 }
 0x793   : > { %v7045_v7 = vpop.f32.mrb[132].mxu0 }
 0x794   : > { %v10207_v35 = vadd.f32 %v7045_v7, %v10092_v9  ;;  %v5709_v37 = vpop.f32.mrb[133].mxu0  ;;  %v10259_v7 = vpop.eup %8520 }
 0x795   : > { %v7046_v24 = vpop.f32.mrb[134].mxu0  ;;  %v10210_v28 = vadd.f32 %v10092_v9, %v5709_v37  ;;  %v5834_v37 = vsub.f32 %v10155_v5, %v5770_v40  ;;  %v5836_v5 = vsub.f32 %v10147_v49, %v10227_v27 }
 0x796   : > { %v10213_v60 = vadd.f32 %v7046_v24, %v10092_v9  ;;  %v5712_v57 = vpop.f32.mrb[135].mxu0  ;;  %v5807_v17 = vsel %vm5740_vm0, %v10207_v35, -inf  ;;  %v10264_v24 = vpop.eup %8522 }
 0x797   : > { %5808 = vmax.xlane.f32.xlu0 %v5807_v17  ;;  %v10218_v2 = vadd.f32 %v10092_v9, %v5712_v57  ;;  %v5801_v52 = vsel %vm5740_vm0, %v10210_v28, -inf  ;;  %v5869_v57 = vmul.f32 1.442695, %v5833_v48  ;;  %v5909_v17 = vsel %vm5740_vm0, %v10259_v7, 0.0  ;;  %v10269_v20 = vpop.eup %8524 }
 0x798   : > { %v5810_v4 = vsel %vm5740_vm0, %v10213_v60, -inf  ;;  %v5912_v55 = vsel %vm5740_vm0, %v10264_v24, 0.0  ;;  %v5915_v36 = vsel %vm5740_vm0, %v10269_v20, 0.0  ;;  %v5875_v49 = vmul.f32 1.442695, %v5836_v5 }
 0x799   : > { %5811 = vmax.xlane.f32.xlu1 %v5810_v4  ;;  %v5804_v6 = vsel %vm5740_vm0, %v10218_v2, -inf  ;;  %v5871_v4 = vmul.f32 1.442695, %v5834_v37  ;;  %8536 = vpow2.f32 %v5869_v57 }
 0x79b   : > { %5802 = vmax.xlane.f32.xlu0 %v5801_v52  ;;  %v5797_v52 = vpop.xlane.xlu0 %5796  ;;  %8538 = vpow2.f32 %v5871_v4 }
 0x79c   : > { %8540 = vpow2.f32 %v5873_v45 }
 0x79d   : > { %5805 = vmax.xlane.f32.xlu1 %v5804_v6  ;;  %v10275_v6 = vpop.eup %8526  ;;  %8542 = vpow2.f32 %v5875_v49 }
 0x79e   : > { %v10280_v1 = vpop.eup %8528  ;;  %v5918_v14 = vsel %vm5740_vm0, %v10275_v6, 0.0  ;;  %8544 = vpow2.f32 %v5877_v8 }
 0x79f   : > { %v10285_v0 = vpop.eup %8530  ;;  %v5791_v56 = vpop.xlane.xlu0 %5790  ;;  %v5921_v61 = vsel %vm5740_vm0, %v10280_v1, 0.0 }
 0x7a0   : > { %v10291_v40 = vpop.eup %8532  ;;  %v5841_v31 = vsub.f32 %v10195_v62, %v5791_v56 }
 0x7a1   : > { %v10297_v3 = vpop.eup %8534 }
 0x7a2   : > { %v5930_v47 = vsel %vm5740_vm0, %v10297_v3, 0.0  ;;  %v5885_v62 = vmul.f32 1.442695, %v5841_v31 }
 0x7a3   : > { %v10302_v32 = vpop.eup %8536 }
 0x7a5   : > { %v10307_v22 = vpop.eup %8538 }
 0x7a6   : > { %v5936_v30 = vsel %vm5740_vm0, %v10307_v22, 0.0 }
 0x7ab   : > { %v7049_v39 = vpop.f32.mrb[136].mxu0 }
 0x7ac   : > { %v5725_v43 = vpop.f32.mrb[137].mxu0  ;;  %v10243_v15 = vadd.f32 %v7049_v39, %v10092_v9  ;;  %v5924_v39 = vsel %vm5740_vm0, %v10285_v0, 0.0 }
 0x7ad   : > { %v10237_v16 = vadd.f32 %v10092_v9, %v5725_v43  ;;  %v7050_v42 = vpop.f32.mrb[138].mxu0  ;;  %v5927_v43 = vsel %vm5740_vm0, %v10291_v40, 0.0 }
 0x7ae   : > { %v5728_v46 = vpop.f32.mrb[139].mxu0  ;;  %v10252_v59 = vadd.f32 %v7050_v42, %v10092_v9  ;;  %v5819_v34 = vsel %vm5740_vm0, %v10243_v15, -inf }
 0x7af   : > { %v10246_v41 = vadd.f32 %v10092_v9, %v5728_v46  ;;  %v5813_v23 = vsel %vm5740_vm0, %v10237_v16, -inf  ;;  %v5782_v9 = vpop.xlane.xlu1 %5781  ;;  %v5843_v46 = vsub.f32 %v10185_v12, %v5797_v52 }
 0x7b0   : > { %5814 = vmax.xlane.f32.xlu0 %v5813_v23  ;;  %v5822_v29 = vsel %vm5740_vm0, %v10252_v59, -inf  ;;  %v5838_v27 = vsub.f32 %v10178_v63, %v5782_v9  ;;  %v5840_v63 = vsub.f32 %v10170_v33, %v10240_v21  ;;  %v5933_v21 = vsel %vm5740_vm0, %v10302_v32, 0.0  ;;  %v10312_v23 = vpop.eup %8540 }
 0x7b1   : > { %v5816_v11 = vsel %vm5740_vm0, %v10246_v41, -inf  ;;  %v5889_v58 = vmul.f32 1.442695, %v5843_v46  ;;  %v5939_v12 = vsel %vm5740_vm0, %v10312_v23, 0.0 }
 0x7b2   : > { %5817 = vmax.xlane.f32.xlu1 %v5816_v11  ;;  %v5879_v44 = vmul.f32 1.442695, %v5838_v27  ;;  %v5883_v42 = vmul.f32 1.442695, %v5840_v63  ;;  %v10317_v11 = vpop.eup %8542 }
 0x7b3   : > { %v5800_v18 = vpop.xlane.xlu1 %5799  ;;  %v10321_v48 = vpop.eup %8544 }
 0x7b4   : > { %5820 = vmax.xlane.f32.xlu0 %v5819_v34  ;;  %8546 = vpow2.f32 %v5879_v44  ;;  %v5844_v51 = vsub.f32 %v10190_v50, %v5800_v18  ;;  %v5942_v50 = vsel %vm5740_vm0, %v10317_v11, 0.0  ;;  %v5945_v38 = vsel %vm5740_vm0, %v10321_v48, 0.0 }
 0x7b5   : > { %8548 = vpow2.f32 %v5881_v13 }
 0x7b6   : > { %5823 = vmax.xlane.f32.xlu1 %v5822_v29  ;;  %8550 = vpow2.f32 %v5883_v42  ;;  %v5891_v19 = vmul.f32 1.442695, %v5844_v51 }
 0x7b7   : > { %v5794_v10 = vpop.xlane.xlu1 %5793  ;;  %8552 = vpow2.f32 %v5885_v62 }
 0x7b8   : > { %5910 = vadd.xlane.f32.xlu0 %v5909_v17  ;;  %v5842_v33 = vsub.f32 %v10198_v53, %v5794_v10 }
 0x7ba   : > { %5913 = vadd.xlane.f32.xlu1 %v5912_v55  ;;  %v5887_v53 = vmul.f32 1.442695, %v5842_v33 }
 0x7bc   : > { %5916 = vadd.xlane.f32.xlu0 %v5915_v36  ;;  %8554 = vpow2.f32 %v5887_v53 }
 0x7bd   : > { %8556 = vpow2.f32 %v5889_v58 }
 0x7be   : > { %5919 = vadd.xlane.f32.xlu1 %v5918_v14  ;;  %v10325_v34 = vpop.eup %8546  ;;  %8558 = vpow2.f32 %v5891_v19 }
 0x7bf   : > { %v10329_v37 = vpop.eup %8548  ;;  %v5948_v9 = vsel %vm5740_vm0, %v10325_v34, 0.0 }
 0x7c0   : > { %5922 = vadd.xlane.f32.xlu0 %v5921_v61  ;;  %v10333_v29 = vpop.eup %8550  ;;  %v5951_v54 = vsel %vm5740_vm0, %v10329_v37, 0.0 }
 0x7c1   : > { %v10337_v57 = vpop.eup %8552  ;;  %v5954_v17 = vsel %vm5740_vm0, %v10333_v29, 0.0 }
 0x7c2   : > { %5925 = vadd.xlane.f32.xlu1 %v5924_v39  ;;  %v5957_v4 = vsel %vm5740_vm0, %v10337_v57, 0.0 }
 0x7c4   : > { %5928 = vadd.xlane.f32.xlu0 %v5927_v43 }
 0x7c6   : > { %5931 = vadd.xlane.f32.xlu1 %v5930_v47  ;;  %v10341_v5 = vpop.eup %8554 }
 0x7c7   : > { %v10345_v52 = vpop.eup %8556  ;;  %v5960_v55 = vsel %vm5740_vm0, %v10341_v5, 0.0 }
 0x7c8   : > { %5934 = vadd.xlane.f32.xlu0 %v5933_v21  ;;  %v10349_v45 = vpop.eup %8558  ;;  %v5963_v26 = vsel %vm5740_vm0, %v10345_v52, 0.0 }
 0x7c9   : > { %v5966_v18 = vsel %vm5740_vm0, %v10349_v45, 0.0 }
 0x7ca   : > { %5937 = vadd.xlane.f32.xlu1 %v5936_v30 }
 0x7cc   : > { %5940 = vadd.xlane.f32.xlu0 %v5939_v12 }
 0x7ce   : > { %5943 = vadd.xlane.f32.xlu1 %v5942_v50 }
 0x7d0   : > { %5946 = vadd.xlane.f32.xlu0 %v5945_v38 }
 0x7d2   : > { %5949 = vadd.xlane.f32.xlu1 %v5948_v9 }
 0x7d4   : > { %5952 = vadd.xlane.f32.xlu0 %v5951_v54 }
 0x7d6   : > { %5955 = vadd.xlane.f32.xlu1 %v5954_v17 }
 0x7d8   : > { %5958 = vadd.xlane.f32.xlu0 %v5957_v4 }
 0x7da   : > { %5961 = vadd.xlane.f32.xlu1 %v5960_v55 }
 0x7dc   : > { %5964 = vadd.xlane.f32.xlu0 %v5963_v26 }
 0x7de   : > { %5967 = vadd.xlane.f32.xlu1 %v5966_v18 }
 0x824   : > { %v5809_v36 = vpop.xlane.xlu0 %5808 }
 0x825   : > { %v5847_v49 = vsub.f32 %v10207_v35, %v5809_v36 }
 0x826   : > { %v5812_v27 = vpop.xlane.xlu1 %5811 }
 0x827   : > { %v5897_v14 = vmul.f32 1.442695, %v5847_v49  ;;  %v5848_v25 = vsub.f32 %v10213_v60, %v5812_v27 }
 0x828   : > { %v5803_v8 = vpop.xlane.xlu0 %5802 }
 0x829   : > { %8560 = vpow2.f32 %v5897_v14  ;;  %v5899_v56 = vmul.f32 1.442695, %v5848_v25  ;;  %v5845_v61 = vsub.f32 %v10210_v28, %v5803_v8 }
 0x82a   : > { %v5806_v63 = vpop.xlane.xlu1 %5805 }
 0x82b   : > { %8562 = vpow2.f32 %v5899_v56  ;;  %v5893_v44 = vmul.f32 1.442695, %v5845_v61  ;;  %v5846_v10 = vsub.f32 %v10218_v2, %v5806_v63 }
 0x82d   : > { %8564 = vpow2.f32 %v5893_v44  ;;  %v5895_v39 = vmul.f32 1.442695, %v5846_v10 }
 0x82f   : > { %8566 = vpow2.f32 %v5895_v39 }
 0x833   : > { %v10359_v13 = vpop.eup %8560 }
 0x834   : > { %v5975_v35 = vsel %vm5740_vm0, %v10359_v13, 0.0 }
 0x835   : > { %v10363_v31 = vpop.eup %8562  ;;  %5976 = vadd.xlane.f32.xlu0 %v5975_v35 }
 0x836   : > { %v5978_v60 = vsel %vm5740_vm0, %v10363_v31, 0.0 }
 0x837   : > { %v10367_v28 = vpop.eup %8564  ;;  %5979 = vadd.xlane.f32.xlu1 %v5978_v60 }
 0x838   : > { %v5969_v2 = vsel %vm5740_vm0, %v10367_v28, 0.0 }
 0x839   : > { %v10371_v43 = vpop.eup %8566  ;;  %5970 = vadd.xlane.f32.xlu0 %v5969_v2 }
 0x83a   : > { %v5972_v42 = vsel %vm5740_vm0, %v10371_v43, 0.0 }
 0x83b   : > { %5973 = vadd.xlane.f32.xlu1 %v5972_v42 }
 0x83d   : > { %v5815_v33 = vpop.xlane.xlu0 %5814 }
 0x83e   : > { %v5849_v47 = vsub.f32 %v10237_v16, %v5815_v33 }
 0x83f   : > { %v5818_v46 = vpop.xlane.xlu1 %5817 }
 0x840   : > { %v5901_v62 = vmul.f32 1.442695, %v5849_v47  ;;  %v5850_v21 = vsub.f32 %v10246_v41, %v5818_v46 }
 0x841   : > { %v5821_v51 = vpop.xlane.xlu0 %5820 }
 0x842   : > { %8568 = vpow2.f32 %v5901_v62  ;;  %v5903_v53 = vmul.f32 1.442695, %v5850_v21  ;;  %v5851_v30 = vsub.f32 %v10243_v15, %v5821_v51 }
 0x843   : > { %v5824_v58 = vpop.xlane.xlu1 %5823 }
 0x844   : > { %8570 = vpow2.f32 %v5903_v53  ;;  %v5905_v12 = vmul.f32 1.442695, %v5851_v30  ;;  %v5852_v19 = vsub.f32 %v10252_v59, %v5824_v58 }
 0x845   : > { %v5911_v50 = vpop.xlane.xlu0 %5910 }
 0x846   : > { %8572 = vpow2.f32 %v5905_v12  ;;  %v5907_v38 = vmul.f32 1.442695, %v5852_v19 }
 0x847   : > { %8574 = vrcp.f32 %v5911_v50  ;;  %v5914_v16 = vpop.xlane.xlu1 %5913 }
 0x848   : > { %8576 = vpow2.f32 %v5907_v38 }
 0x849   : > { %8578 = vrcp.f32 %v5914_v16  ;;  %v5917_v9 = vpop.xlane.xlu0 %5916 }
 0x84a   : > { %8580 = vrcp.f32 %v5917_v9 }
 0x84b   : > { %v5920_v41 = vpop.xlane.xlu1 %5919 }
 0x84c   : > { %v10379_v54 = vpop.eup %8568  ;;  %8582 = vrcp.f32 %v5920_v41 }
 0x84d   : > { %v5923_v15 = vpop.xlane.xlu0 %5922  ;;  %v5981_v17 = vsel %vm5740_vm0, %v10379_v54, 0.0 }
 0x84e   : > { %v10384_v4 = vpop.eup %8570  ;;  %8584 = vrcp.f32 %v5923_v15  ;;  %5982 = vadd.xlane.f32.xlu0 %v5981_v17 }
 0x84f   : > { %v5926_v59 = vpop.xlane.xlu1 %5925  ;;  %v5984_v55 = vsel %vm5740_vm0, %v10384_v4, 0.0 }
 0x850   : > { %v10388_v26 = vpop.eup %8572  ;;  %8586 = vrcp.f32 %v5926_v59  ;;  %5985 = vadd.xlane.f32.xlu1 %v5984_v55 }
 0x851   : > { %v8575_v18 = vpop.eup %8574  ;;  %v5929_v36 = vpop.xlane.xlu0 %5928  ;;  %v5987_v49 = vsel %vm5740_vm0, %v10388_v26, 0.0 }
 0x852   : > { %v10392_v27 = vpop.eup %8576  ;;  %v6049_v14 = vmul.f32 %v8575_v18, %v10259_v7  ;;  %8588 = vrcp.f32 %v5929_v36  ;;  %5988 = vadd.xlane.f32.xlu0 %v5987_v49 }
 0x853   : > { %v8579_v25 = vpop.eup %8578  ;;  %v5932_v8 = vpop.xlane.xlu1 %5931  ;;  %v5990_v56 = vsel %vm5740_vm0, %v10392_v27, 0.0 }
 0x854   : > { %v8581_v61 = vpop.eup %8580  ;;  %6077 = vst.msk [vmem:[%s10397_s14] sm:$0xff] %vm5740_vm0, %v6049_v14  ;;  %v6050_v63 = vmul.f32 %v8579_v25, %v10264_v24  ;;  %8590 = vrcp.f32 %v5932_v8  ;;  %5991 = vadd.xlane.f32.xlu1 %v5990_v56 }
 0x855   : > { %v6051_v7 = vmul.f32 %v8581_v61, %v10269_v20  ;;  %v5935_v44 = vpop.xlane.xlu0 %5934 }
 0x856   : > { %v8583_v10 = vpop.eup %8582  ;;  %6078 = vst.msk [vmem:[%s10397_s14 + $0x8] sm:$0xff] %vm5740_vm0, %v6050_v63  ;;  %8592 = vrcp.f32 %v5935_v44 }
 0x857   : > { %6079 = vst.msk [vmem:[%s10397_s14 + $0x10] sm:$0xff] %vm5740_vm0, %v6051_v7  ;;  %v6052_v39 = vmul.f32 %v8583_v10, %v10275_v6  ;;  %v5938_v35 = vpop.xlane.xlu1 %5937 }
 0x858   : > { %v8585_v60 = vpop.eup %8584  ;;  %8594 = vrcp.f32 %v5938_v35 }
 0x859   : > { %6080 = vst.msk [vmem:[%s10397_s14 + $0x18] sm:$0xff] %vm5740_vm0, %v6052_v39  ;;  %v6053_v24 = vmul.f32 %v8585_v60, %v10280_v1  ;;  %v5941_v2 = vpop.xlane.xlu0 %5940 }
 0x85a   : > { %v8587_v20 = vpop.eup %8586  ;;  %8596 = vrcp.f32 %v5941_v2 }
 0x85b   : > { %6081 = vst.msk [vmem:[%s10397_s14 + $0x20] sm:$0xff] %vm5740_vm0, %v6053_v24  ;;  %v6054_v42 = vmul.f32 %v8587_v20, %v10285_v0  ;;  %v5944_v33 = vpop.xlane.xlu1 %5943 }
 0x85c   : > { %v8589_v47 = vpop.eup %8588  ;;  %8598 = vrcp.f32 %v5944_v33 }
 0x85d   : > { %6082 = vst.msk [vmem:[%s10397_s14 + $0x28] sm:$0xff] %vm5740_vm0, %v6054_v42  ;;  %v6055_v6 = vmul.f32 %v8589_v47, %v10291_v40  ;;  %v5947_v46 = vpop.xlane.xlu0 %5946 }
 0x85e   : > { %v8591_v62 = vpop.eup %8590  ;;  %8600 = vrcp.f32 %v5947_v46 }
 0x85f   : > { %6083 = vst.msk [vmem:[%s10397_s14 + $0x30] sm:$0xff] %vm5740_vm0, %v6055_v6  ;;  %v6056_v1 = vmul.f32 %v8591_v62, %v10297_v3  ;;  %v5950_v21 = vpop.xlane.xlu1 %5949 }
 0x860   : > { %v8593_v51 = vpop.eup %8592  ;;  %8602 = vrcp.f32 %v5950_v21 }
 0x861   : > { %6084 = vst.msk [vmem:[%s10397_s14 + $0x38] sm:$0xff] %vm5740_vm0, %v6056_v1  ;;  %v6057_v0 = vmul.f32 %v8593_v51, %v10302_v32  ;;  %v5953_v53 = vpop.xlane.xlu0 %5952 }
 0x862   : > { %v8595_v30 = vpop.eup %8594  ;;  %8604 = vrcp.f32 %v5953_v53  ;;  %v6204_v47 = vld [vmem:[%s10397_s14 + $0x20] sm:$0xff] (%p8975_p6) }
 0x863   : > { %6085 = vst.msk [vmem:[%s10397_s14 + $0x40] sm:$0xff] %vm5740_vm0, %v6057_v0  ;;  %v6058_v40 = vmul.f32 %v8595_v30, %v10307_v22  ;;  %v5956_v58 = vpop.xlane.xlu1 %5955  ;;  %6205 = vst [vmem:[%s10494_s12 + $0x20] sm:$0xff] (%p8975_p6), %v6204_v47 }
 0x864   : > { %v8597_v12 = vpop.eup %8596  ;;  %8606 = vrcp.f32 %v5956_v58  ;;  %v6206_v6 = vld [vmem:[%s10397_s14 + $0x28] sm:$0xff] (%p8975_p6) }
 0x865   : > { %6086 = vst.msk [vmem:[%s10397_s14 + $0x48] sm:$0xff] %vm5740_vm0, %v6058_v40  ;;  %v6059_v3 = vmul.f32 %v8597_v12, %v10312_v23  ;;  %v5959_v19 = vpop.xlane.xlu0 %5958  ;;  %6207 = vst [vmem:[%s10494_s12 + $0x28] sm:$0xff] (%p8975_p6), %v6206_v6 }
 0x866   : > { %v8599_v50 = vpop.eup %8598  ;;  %8608 = vrcp.f32 %v5959_v19  ;;  %v6208_v46 = vld [vmem:[%s10397_s14 + $0x30] sm:$0xff] (%p8975_p6) }
 0x867   : > { %6087 = vst.msk [vmem:[%s10397_s14 + $0x50] sm:$0xff] %vm5740_vm0, %v6059_v3  ;;  %v6060_v32 = vmul.f32 %v8599_v50, %v10317_v11  ;;  %v5962_v38 = vpop.xlane.xlu1 %5961  ;;  %6209 = vst [vmem:[%s10494_s12 + $0x30] sm:$0xff] (%p8975_p6), %v6208_v46 }
 0x868   : > { %v8601_v16 = vpop.eup %8600  ;;  %8610 = vrcp.f32 %v5962_v38  ;;  %v6210_v62 = vld [vmem:[%s10397_s14 + $0x38] sm:$0xff] (%p8975_p6) }
 0x869   : > { %6088 = vst.msk [vmem:[%s10397_s14 + $0x58] sm:$0xff] %vm5740_vm0, %v6060_v32  ;;  %v6061_v22 = vmul.f32 %v8601_v16, %v10321_v48  ;;  %v5965_v9 = vpop.xlane.xlu0 %5964  ;;  %6211 = vst [vmem:[%s10494_s12 + $0x70] sm:$0xff] (%p8975_p6), %v6210_v62 }
 0x86a   : > { %v8603_v41 = vpop.eup %8602  ;;  %8612 = vrcp.f32 %v5965_v9  ;;  %v6212_v1 = vld [vmem:[%s10397_s14 + $0x40] sm:$0xff] (%p8975_p6) }
 0x86b   : > { %6089 = vst.msk [vmem:[%s10397_s14 + $0x60] sm:$0xff] %vm5740_vm0, %v6061_v22  ;;  %v6062_v23 = vmul.f32 %v8603_v41, %v10325_v34  ;;  %v5968_v15 = vpop.xlane.xlu1 %5967  ;;  %6213 = vst [vmem:[%s10494_s12 + $0x78] sm:$0xff] (%p8975_p6), %v6212_v1 }
 0x86c   : > { %v8605_v11 = vpop.eup %8604  ;;  %8614 = vrcp.f32 %v5968_v15  ;;  %v6214_v21 = vld [vmem:[%s10397_s14 + $0x48] sm:$0xff] (%p8975_p6) }
 0x86d   : > { %6090 = vst.msk [vmem:[%s10397_s14 + $0x68] sm:$0xff] %vm5740_vm0, %v6062_v23  ;;  %v6063_v17 = vmul.f32 %v8605_v11, %v10329_v37  ;;  %6215 = vst [vmem:[%s10494_s12 + $0x80] sm:$0xff] (%p8975_p6), %v6214_v21 }
 0x86e   : > { %v8607_v59 = vpop.eup %8606  ;;  %v6216_v51 = vld [vmem:[%s10397_s14 + $0x50] sm:$0xff] (%p8975_p6) }
 0x86f   : > { %6091 = vst.msk [vmem:[%s10397_s14 + $0x70] sm:$0xff] %vm5740_vm0, %v6063_v17  ;;  %v6064_v48 = vmul.f32 %v8607_v59, %v10333_v29  ;;  %6217 = vst [vmem:[%s10494_s12 + $0x88] sm:$0xff] (%p8975_p6), %v6216_v51 }
 0x870   : > { %v8609_v55 = vpop.eup %8608  ;;  %v6218_v0 = vld [vmem:[%s10397_s14 + $0x58] sm:$0xff] (%p8975_p6) }
 0x871   : > { %6092 = vst.msk [vmem:[%s10397_s14 + $0x78] sm:$0xff] %vm5740_vm0, %v6064_v48  ;;  %v6065_v34 = vmul.f32 %v8609_v55, %v10337_v57  ;;  %6219 = vst [vmem:[%s10494_s12 + $0x90] sm:$0xff] (%p8975_p6), %v6218_v0 }
 0x872   : > { %v8611_v18 = vpop.eup %8610  ;;  %v6220_v53 = vld [vmem:[%s10397_s14 + $0x60] sm:$0xff] (%p8975_p6) }
 0x873   : > { %6093 = vst.msk [vmem:[%s10397_s14 + $0x80] sm:$0xff] %vm5740_vm0, %v6065_v34  ;;  %v6066_v36 = vmul.f32 %v8611_v18, %v10341_v5  ;;  %6221 = vst [vmem:[%s10494_s12 + $0x98] sm:$0xff] (%p8975_p6), %v6220_v53 }
 0x874   : > { %v8613_v49 = vpop.eup %8612  ;;  %v6222_v30 = vld [vmem:[%s10397_s14 + $0x68] sm:$0xff] (%p8975_p6) }
 0x875   : > { %6094 = vst.msk [vmem:[%s10397_s14 + $0x88] sm:$0xff] %vm5740_vm0, %v6066_v36  ;;  %v6067_v37 = vmul.f32 %v8613_v49, %v10345_v52  ;;  %6223 = vst [vmem:[%s10494_s12 + $0xa0] sm:$0xff] (%p8975_p6), %v6222_v30 }
 0x876   : > { %v8615_v14 = vpop.eup %8614  ;;  %v6224_v40 = vld [vmem:[%s10397_s14 + $0x70] sm:$0xff] (%p8975_p6) }
 0x877   : > { %6095 = vst.msk [vmem:[%s10397_s14 + $0x90] sm:$0xff] %vm5740_vm0, %v6067_v37  ;;  %v6068_v29 = vmul.f32 %v8615_v14, %v10349_v45  ;;  %6225 = vst [vmem:[%s10494_s12 + $0xe0] sm:$0xff] (%p8975_p6), %v6224_v40 }
 0x878   : > { %v6226_v58 = vld [vmem:[%s10397_s14 + $0x78] sm:$0xff] (%p8975_p6) }
 0x879   : > { %6096 = vst.msk [vmem:[%s10397_s14 + $0x98] sm:$0xff] %vm5740_vm0, %v6068_v29  ;;  %6227 = vst [vmem:[%s10494_s12 + $0xe8] sm:$0xff] (%p8975_p6), %v6226_v58 }
 0x87a   : > { %v6228_v12 = vld [vmem:[%s10397_s14 + $0x80] sm:$0xff] (%p8975_p6) }
 0x87b   : > { %6229 = vst [vmem:[%s10494_s12 + $0xf0] sm:$0xff] (%p8975_p6), %v6228_v12 }
 0x87c   : > { %v6230_v3 = vld [vmem:[%s10397_s14 + $0x88] sm:$0xff] (%p8975_p6) }
 0x87d   : > { %6231 = vst [vmem:[%s10494_s12 + $0xf8] sm:$0xff] (%p8975_p6), %v6230_v3 }
 0x87e   : > { %v6232_v19 = vld [vmem:[%s10397_s14 + $0x90] sm:$0xff] (%p8975_p6) }
 0x87f   : > { %6233 = vst [vmem:[%s10494_s12 + $0x100] sm:$0xff] (%p8975_p6), %v6232_v19 }
 0x880   : > { %v6234_v50 = vld [vmem:[%s10397_s14 + $0x98] sm:$0xff] (%p8975_p6) }
 0x881   : > { %6235 = vst [vmem:[%s10494_s12 + $0x108] sm:$0xff] (%p8975_p6), %v6234_v50 }
 0x8c2   : > { %v5977_v57 = vpop.xlane.xlu0 %5976 }
 0x8c3   : > { %8616 = vrcp.f32 %v5977_v57 }
 0x8c4   : > { %v5980_v25 = vpop.xlane.xlu1 %5979 }
 0x8c5   : > { %8618 = vrcp.f32 %v5980_v25 }
 0x8c6   : > { %v5971_v5 = vpop.xlane.xlu0 %5970 }
 0x8c7   : > { %8620 = vrcp.f32 %v5971_v5 }
 0x8c8   : > { %v5974_v8 = vpop.xlane.xlu1 %5973 }
 0x8c9   : > { %8622 = vrcp.f32 %v5974_v8 }
 0x8cd   : > { %v8617_v52 = vpop.eup %8616 }
 0x8ce   : > { %v6071_v56 = vmul.f32 %v8617_v52, %v10359_v13 }
 0x8cf   : > { %v8619_v61 = vpop.eup %8618 }
 0x8d0   : > { %6099 = vst.msk [vmem:[%s10397_s14 + $0xb0] sm:$0xff] %vm5740_vm0, %v6071_v56  ;;  %v6072_v45 = vmul.f32 %v8619_v61, %v10363_v31 }
 0x8d1   : > { %v8621_v63 = vpop.eup %8620 }
 0x8d2   : > { %6100 = vst.msk [vmem:[%s10397_s14 + $0xb8] sm:$0xff] %vm5740_vm0, %v6072_v45  ;;  %v6069_v7 = vmul.f32 %v8621_v63, %v10367_v28 }
 0x8d3   : > { %v8623_v44 = vpop.eup %8622 }
 0x8d4   : > { %6097 = vst.msk [vmem:[%s10397_s14 + $0xa0] sm:$0xff] %vm5740_vm0, %v6069_v7  ;;  %v6070_v10 = vmul.f32 %v8623_v44, %v10371_v43 }
 0x8d6   : > { %6098 = vst.msk [vmem:[%s10397_s14 + $0xa8] sm:$0xff] %vm5740_vm0, %v6070_v10 }
 0x8d7   : > { %v6240_v16 = vld [vmem:[%s10397_s14 + $0xb0] sm:$0xff] (%p8975_p6) }
 0x8d8   : > { %6241 = vst [vmem:[%s10494_s12 + $0x158] sm:$0xff] (%p8975_p6), %v6240_v16 }
 0x8d9   : > { %v6242_v22 = vld [vmem:[%s10397_s14 + $0xb8] sm:$0xff] (%p8975_p6) }
 0x8da   : > { %6243 = vst [vmem:[%s10494_s12 + $0x160] sm:$0xff] (%p8975_p6), %v6242_v22 }
 0x8db   : > { %v5983_v13 = vpop.xlane.xlu0 %5982  ;;  %v6236_v32 = vld [vmem:[%s10397_s14 + $0xa0] sm:$0xff] (%p8975_p6) }
 0x8dc   : > { %8624 = vrcp.f32 %v5983_v13  ;;  %6237 = vst [vmem:[%s10494_s12 + $0x110] sm:$0xff] (%p8975_p6), %v6236_v32 }
 0x8dd   : > { %v5986_v39 = vpop.xlane.xlu1 %5985  ;;  %v6238_v38 = vld [vmem:[%s10397_s14 + $0xa8] sm:$0xff] (%p8975_p6) }
 0x8de   : > { %8626 = vrcp.f32 %v5986_v39  ;;  %6239 = vst [vmem:[%s10494_s12 + $0x150] sm:$0xff] (%p8975_p6), %v6238_v38 }
 0x8df   : > { %v5989_v31 = vpop.xlane.xlu0 %5988 }
 0x8e0   : > { %8628 = vrcp.f32 %v5989_v31 }
 0x8e1   : > { %v5992_v35 = vpop.xlane.xlu1 %5991 }
 0x8e2   : > { %8630 = vrcp.f32 %v5992_v35 }
 0x8e6   : > { %v8625_v28 = vpop.eup %8624 }
 0x8e7   : > { %v6073_v60 = vmul.f32 %v8625_v28, %v10379_v54  ;;  %v6196_v54 = vld [vmem:[%s10397_s14] sm:$0xff] (%p8975_p6) }
 0x8e8   : > { %v8627_v24 = vpop.eup %8626  ;;  %6197 = vst [vmem:[%s10494_s12] sm:$0xff] (%p8975_p6), %v6196_v54 }
 0x8e9   : > { %6101 = vst.msk [vmem:[%s10397_s14 + $0xc0] sm:$0xff] %vm5740_vm0, %v6073_v60  ;;  %v6074_v43 = vmul.f32 %v8627_v24, %v10384_v4  ;;  %6111 = sbr.rel (!%p8975_p6) target bundleno = 2296 (0x8f8), region = 72  ;;  %v6198_v4 = vld [vmem:[%s10397_s14 + $0x8] sm:$0xff] (%p8975_p6) }
 0x8ea   : > { %v8629_v2 = vpop.eup %8628  ;;  %6199 = vst [vmem:[%s10494_s12 + $0x8] sm:$0xff] (%p8975_p6), %v6198_v4 }
 0x8eb   : > { %6102 = vst.msk [vmem:[%s10397_s14 + $0xc8] sm:$0xff] %vm5740_vm0, %v6074_v43  ;;  %v6075_v20 = vmul.f32 %v8629_v2, %v10388_v26  ;;  %v6200_v26 = vld [vmem:[%s10397_s14 + $0x10] sm:$0xff] (%p8975_p6) }
 0x8ec   : > { %v8631_v42 = vpop.eup %8630  ;;  %6201 = vst [vmem:[%s10494_s12 + $0x10] sm:$0xff] (%p8975_p6), %v6200_v26 }
 0x8ed   : > { %6103 = vst.msk [vmem:[%s10397_s14 + $0xd0] sm:$0xff] %vm5740_vm0, %v6075_v20  ;;  %v6076_v33 = vmul.f32 %v8631_v42, %v10392_v27  ;;  %v6202_v27 = vld [vmem:[%s10397_s14 + $0x18] sm:$0xff] (%p8975_p6) }
 0x8ee   : > { %6203 = vst [vmem:[%s10494_s12 + $0x18] sm:$0xff] (%p8975_p6), %v6202_v27 }
 0x8ef   : > { %6104 = vst.msk [vmem:[%s10397_s14 + $0xd8] sm:$0xff] %vm5740_vm0, %v6076_v33 }
 0x8f0   : > { %v6244_v9 = vld [vmem:[%s10397_s14 + $0xc0] sm:$0xff] }
 0x8f1   : > { %6245 = vst [vmem:[%s10494_s12 + $0x168] sm:$0xff] %v6244_v9 }
 0x8f2   : > { %v6246_v41 = vld [vmem:[%s10397_s14 + $0xc8] sm:$0xff] }
 0x8f3   : > { %6247 = vst [vmem:[%s10494_s12 + $0x170] sm:$0xff] %v6246_v41 }
 0x8f4   : > { %v6248_v23 = vld [vmem:[%s10397_s14 + $0xd0] sm:$0xff] }
 0x8f5   : > { %6249 = vst [vmem:[%s10494_s12 + $0x178] sm:$0xff] %v6248_v23 }
 0x8f6   : > { %v6250_v15 = vld [vmem:[%s10397_s14 + $0xd8] sm:$0xff] }
 0x8f7   : > { %6251 = vst [vmem:[%s10494_s12 + $0x180] sm:$0xff] %v6250_v15 }
 0x8f8 PF: > { %p20_p6 = scmp.ge.s32.totalorder %s8965_s22, 4   ;;  %s10782_s27 = smov %s8780_s28 }
 0x8f9   : > { %s10783_s28 = smov %s8784_s29  ;;  %s10784_s29 = smov %s8981_s19 }
 0x8fa   : > { %s10785_s30 = smov %s8965_s22  ;;  %22 = sbr.rel (!%p20_p6) target bundleno = 5 (0x5), region = 145 }
 0x901   :  { %6267 = vsyncpa [#allocation6], 1 }
 0x902   :  { %6269 = vsyncpa [#allocation6 + $0x1], 1 }
 0x903   :  { %6270 = vsyncpa [#allocation8], 1 }
 0x904   :  { %6271 = vsyncpa [#allocation11], 1 }

</bundles_post_ra>
